<compile_context>
chip_gen: v5e
topology: v5e:2x2
jax: 0.10.0
libtpu: 0.0.40
codegen_flags: <defaults>
</compile_context>

<pallas_src>
import functools

import jax
import jax.numpy as jnp
from jax import lax
from jax.experimental import pallas as pl
from jax.experimental.pallas import tpu as pltpu

BN_EPS = 1e-5
VMEM = pl.BlockSpec(memory_space=pltpu.MemorySpace.VMEM)


# --------------------------------------------------------------------------
# Pallas kernels
# --------------------------------------------------------------------------
def _conv_bn_act_kernel(*refs, m_total, relu, has_residual):
    """Fully fused conv GEMM -> BN(train stats) -> affine -> (+res) -> ReLU.

    w_ref   : (Cout, Kp) bf16   conv weights, K zero-padded to 128-multiple
    x_ref   : (Kp, M)   bf16   im2col patches (lane-dense M = N*Ho*Wo)
    g_ref   : (Cout, 1) f32    BN gamma
    b_ref   : (Cout, 1) f32    BN beta
    res_ref : (Cout, M) f32    optional residual (fused add before ReLU)
    o_ref   : (Cout, M) f32    output, written exactly once
    """
    if has_residual:
        w_ref, x_ref, g_ref, b_ref, res_ref, o_ref = refs
    else:
        w_ref, x_ref, g_ref, b_ref, o_ref = refs
        res_ref = None

    # MXU GEMM, f32 accumulation.
    y = jnp.dot(w_ref[...], x_ref[...], preferred_element_type=jnp.float32)

    # Training-mode BatchNorm moments over the full (unpadded) M, in-register.
    inv_m = 1.0 / m_total
    mean = jnp.sum(y, axis=-1, keepdims=True) * inv_m          # (Cout, 1)
    msq = jnp.sum(y * y, axis=-1, keepdims=True) * inv_m       # (Cout, 1)
    var = jnp.maximum(msq - mean * mean, 0.0)                  # biased var
    scale = g_ref[...] * lax.rsqrt(var + BN_EPS)
    shift = b_ref[...] - mean * scale

    y = y * scale + shift                                      # FMA epilogue
    if has_residual:
        y = y + res_ref[...]
    if relu:
        y = jnp.maximum(y, 0.0)
    o_ref[...] = y


def _maxpool3x3_kernel(x_ref, o_ref, *, h, w):
    # x_ref: (C, N, h+2, w+2), padded with -inf.  Running max over the 9
    # shifted 3x3 stride-1 windows (no 9x HBM stacking).  The stride-2
    # subsample is a free XLA slice on the tiny pooled map.
    m = x_ref[:, :, 0:h, 0:w]
    for ki in range(3):
        for kj in range(3):
            if ki == 0 and kj == 0:
                continue
            m = jnp.maximum(m, x_ref[:, :, ki:ki + h, kj:kj + w])
    o_ref[...] = m


def _pool_fc_kernel(x_ref, w_ref, b_ref, o_ref):
    # x_ref: (C, N, H*W) f32, w_ref: (classes, C) bf16, b_ref: (classes, 1)
    pooled = jnp.mean(x_ref[...], axis=-1)                     # (C, N)
    out = jnp.dot(w_ref[...], pooled.astype(jnp.bfloat16),
                  preferred_element_type=jnp.float32)          # (classes, N)
    o_ref[...] = out + b_ref[...]


# --------------------------------------------------------------------------
# Wrappers (plain-JAX glue + pallas_call)
# --------------------------------------------------------------------------
def _pad_axis_to(a, axis, mult):
    rem = (-a.shape[axis]) % mult
    if rem == 0:
        return a
    pads = [(0, 0)] * a.ndim
    pads[axis] = (0, rem)
    return jnp.pad(a, pads)


def _im2col_cm(x, kh, kw, stride, pad):
    """x: (C, N, H, W) channel-major -> patches (K=kh*kw*C, M=N*Ho*Wo)."""
    c, n, h, w = x.shape
    xp = jnp.pad(x, ((0, 0), (0, 0), (pad, pad), (pad, pad)))
    ho = (h + 2 * pad - kh) // stride + 1
    wo = (w + 2 * pad - kw) // stride + 1
    cols = []
    for ki in range(kh):
        for kj in range(kw):
            cols.append(xp[:, :, ki:ki + stride * (ho - 1) + 1:stride,
                              kj:kj + stride * (wo - 1) + 1:stride])
    p = jnp.stack(cols, axis=0)                    # (kh*kw, C, N, Ho, Wo)
    return p.reshape(kh * kw * c, n * ho * wo), (n, ho, wo)


def conv_bn(x, w_oihw, gamma, beta, *, stride, pad, relu, residual=None):
    """Conv2d(bias=False) + training-mode BN + optional residual + ReLU,
    fused into ONE pallas_call (everything VMEM resident at this size).

    x        : (Cin, N, H, W) f32
    residual : optional (Cout, N, Ho, Wo) f32, fused as relu(bn(conv)+res)
    returns  : (Cout, N, Ho, Wo) f32
    """
    cout, cin, kh, kw = w_oihw.shape
    patches, (n, ho, wo) = _im2col_cm(x, kh, kw, stride, pad)
    m = patches.shape[1]

    # Contraction dim K zero-padded to a 128-multiple (bf16 sublane packing on
    # the RHS + unmasked lane loads on the LHS); M stays unpadded so the BN
    # statistics are exact.
    patches = _pad_axis_to(patches, 0, 128).astype(jnp.bfloat16)   # (Kp, M)
    w2 = jnp.transpose(w_oihw, (0, 2, 3, 1)).reshape(cout, kh * kw * cin)
    w2 = _pad_axis_to(w2, 1, 128).astype(jnp.bfloat16)             # (Cout, Kp)

    inputs = [w2, patches,
              gamma.reshape(cout, 1).astype(jnp.float32),
              beta.reshape(cout, 1).astype(jnp.float32)]
    in_specs = [VMEM, VMEM, VMEM, VMEM]
    if residual is not None:
        inputs.append(residual.reshape(cout, m))
        in_specs.append(VMEM)

    out = pl.pallas_call(
        functools.partial(_conv_bn_act_kernel, m_total=float(m), relu=relu,
                          has_residual=residual is not None),
        out_shape=jax.ShapeDtypeStruct((cout, m), jnp.float32),
        in_specs=in_specs,
        out_specs=VMEM,
    )(*inputs)
    return out.reshape(cout, n, ho, wo)


def maxpool_3x3_s2_p1(x):
    """MaxPool2d(kernel=3, stride=2, padding=1) on (C, N, H, W)."""
    c, n, h, w = x.shape
    xp = jnp.pad(x, ((0, 0), (0, 0), (1, 1), (1, 1)),
                 constant_values=-jnp.inf)
    dense = pl.pallas_call(
        functools.partial(_maxpool3x3_kernel, h=h, w=w),
        out_shape=jax.ShapeDtypeStruct((c, n, h, w), jnp.float32),
        in_specs=[VMEM],
        out_specs=VMEM,
    )(xp)
    # stride-2 subsample of the stride-1 pooled map == k3/s2/p1 max-pool.
    return dense[:, :, ::2, ::2]


def global_avgpool_fc(x, fc_w, fc_b):
    """Global average pool over spatial dims + Linear.  x: (C, N, H, W)."""
    c, n, h, w = x.shape
    n_classes = fc_w.shape[0]
    out = pl.pallas_call(
        _pool_fc_kernel,
        out_shape=jax.ShapeDtypeStruct((n_classes, n), jnp.float32),
        in_specs=[VMEM, VMEM, VMEM],
        out_specs=VMEM,
    )(x.reshape(c, n, h * w),
      fc_w.astype(jnp.bfloat16),
      fc_b.reshape(n_classes, 1).astype(jnp.float32))
    return out.T                                   # (N, n_classes)


# --------------------------------------------------------------------------
# Parameter initialization (arrays only — structure stays Python-static)
# --------------------------------------------------------------------------
def _kaiming_conv(key, cout, cin, kh, kw):
    # kaiming_normal_, mode='fan_out', nonlinearity='relu'
    std = (2.0 / (cout * kh * kw)) ** 0.5
    return jax.random.normal(key, (cout, cin, kh, kw), jnp.float32) * std


def init_resnet_params(key, n_channels, n_classes, blocks, filters):
    keys = iter(jax.random.split(key, 64))
    params = {}
    params["init_conv_w"] = _kaiming_conv(next(keys), filters[0], n_channels, 7, 7)
    params["init_bn_g"] = jnp.ones((filters[0],), jnp.float32)
    params["init_bn_b"] = jnp.zeros((filters[0],), jnp.float32)

    encoder = []
    for i, num_layers in enumerate(blocks):
        c_in = filters[i] if i == 0 else filters[i - 1]
        c_out = filters[i]
        downsampling = i != 0            # Python bool, NOT stored in params
        layers = []
        for li in range(num_layers):
            lin = c_in if li == 0 else c_out
            lp = {
                "conv1_w": _kaiming_conv(next(keys), c_out, lin, 3, 3),
                "bn1_g": jnp.ones((c_out,), jnp.float32),
                "bn1_b": jnp.zeros((c_out,), jnp.float32),
                "conv2_w": _kaiming_conv(next(keys), c_out, c_out, 3, 3),
                "bn2_g": jnp.ones((c_out,), jnp.float32),
                "bn2_b": jnp.zeros((c_out,), jnp.float32),
            }
            if li == 0 and (downsampling or lin != c_out):
                lp["short_w"] = _kaiming_conv(next(keys), c_out, lin, 1, 1)
                lp["short_g"] = jnp.ones((c_out,), jnp.float32)
                lp["short_b"] = jnp.zeros((c_out,), jnp.float32)
            layers.append(lp)
        encoder.append(layers)
    params["encoder"] = encoder

    # torch.nn.Linear default init
    bound = 1.0 / (filters[-1] ** 0.5)
    params["fc_w"] = jax.random.uniform(
        next(keys), (n_classes, filters[-1]), jnp.float32, -bound, bound)
    params["fc_b"] = jax.random.uniform(
        next(keys), (n_classes,), jnp.float32, -bound, bound)
    return params


# --------------------------------------------------------------------------
# Forward pass
# --------------------------------------------------------------------------
def _res_block(x, layers, downsampling):
    for li, lp in enumerate(layers):
        stride = 2 if (downsampling and li == 0) else 1   # static Python ints
        identity = x
        out = conv_bn(x, lp["conv1_w"], lp["bn1_g"], lp["bn1_b"],
                      stride=stride, pad=1, relu=True)
        if "short_w" in lp:
            identity = conv_bn(identity, lp["short_w"], lp["short_g"],
                               lp["short_b"], stride=stride, pad=0, relu=False)
        # conv2 + BN with fused residual add + ReLU epilogue
        x = conv_bn(out, lp["conv2_w"], lp["bn2_g"], lp["bn2_b"],
                    stride=1, pad=1, relu=True, residual=identity)
    return x


def resnet_forward(params, x_nchw):
    # PyTorch NCHW -> internal channel-major (C, N, H, W)
    x = jnp.transpose(x_nchw, (1, 0, 2, 3)).astype(jnp.float32)
    # init_conv: Conv2d(k=7,s=2,p=3,bias=False) -> BN -> ReLU -> MaxPool(3,2,1)
    x = conv_bn(x, params["init_conv_w"], params["init_bn_g"],
                params["init_bn_b"], stride=2, pad=3, relu=True)
    x = maxpool_3x3_s2_p1(x)
    for i, layers in enumerate(params["encoder"]):
        x = _res_block(x, layers, downsampling=(i != 0))
    # avg_pool2d over full spatial extent + Linear
    return global_avgpool_fc(x, params["fc_w"], params["fc_b"])


# --------------------------------------------------------------------------
if __name__ == "__main__":
    n_channels, n_classes = 4, 10
    blocks, filters = [1, 1], [8, 16]
    image_size = (32, 32)
    batch = 2

    key = jax.random.PRNGKey(0)
    k_params, k_x = jax.random.split(key)
    params = init_resnet_params(k_params, n_channels, n_classes, blocks, filters)
    x = jax.random.normal(k_x, (batch, n_channels) + image_size, jnp.float32)

    y = jax.jit(resnet_forward)(params, x)
    y = jax.block_until_ready(y)
    assert y.shape == (batch, n_classes), y.shape
    assert bool(jnp.all(jnp.isfinite(y)))
    print("KERNEL_OK")
</pallas_src>

<mosaic_0001>
module attributes {stable_mosaic.version = 11 : i64} {
  func.func @_conv_bn_act_kernel(%arg0: memref<8x256xbf16, #tpu.memory_space<vmem>>, %arg1: memref<256x512xbf16, #tpu.memory_space<vmem>>, %arg2: memref<8x1xf32, #tpu.memory_space<vmem>>, %arg3: memref<8x1xf32, #tpu.memory_space<vmem>>, %arg4: memref<8x512xf32, #tpu.memory_space<vmem>>) attributes {dimension_semantics = [], scalar_prefetch = 0 : i64, scratch_operands = 0 : i64, tpu.core_type = #tpu.core_type<tc>} {
    %c0 = arith.constant 0 : index
    %c0_0 = arith.constant 0 : index
    %0 = vector.load %arg0[%c0, %c0_0] : memref<8x256xbf16, #tpu.memory_space<vmem>>, vector<8x256xbf16>
    %c0_1 = arith.constant 0 : index
    %c0_2 = arith.constant 0 : index
    %1 = vector.load %arg1[%c0_1, %c0_2] : memref<256x512xbf16, #tpu.memory_space<vmem>>, vector<256x512xbf16>
    %cst = arith.constant dense<0.000000e+00> : vector<8x512xf32>
    %2 = tpu.matmul %0, %1, %cst {dimension_numbers = #tpu.dot_dimension_numbers<[1], [0], [0], [1], [0, 0, 1, 1], [], []>} : vector<8x256xbf16>, vector<256x512xbf16>, vector<8x512xf32> -> vector<8x512xf32>
    %cst_3 = arith.constant dense<0.000000e+00> : vector<8xf32>
    %3 = vector.multi_reduction <add>, %2, %cst_3 [1] : vector<8x512xf32> to vector<8xf32>
    %4 = vector.shape_cast %3 : vector<8xf32> to vector<8x1xf32>
    %cst_4 = arith.constant 0.001953125 : f32
    %5 = vector.broadcast %cst_4 : f32 to vector<8x1xf32>
    %6 = arith.mulf %4, %5 : vector<8x1xf32>
    %7 = arith.mulf %2, %2 : vector<8x512xf32>
    %cst_5 = arith.constant dense<0.000000e+00> : vector<8xf32>
    %8 = vector.multi_reduction <add>, %7, %cst_5 [1] : vector<8x512xf32> to vector<8xf32>
    %9 = vector.shape_cast %8 : vector<8xf32> to vector<8x1xf32>
    %cst_6 = arith.constant 0.001953125 : f32
    %10 = vector.broadcast %cst_6 : f32 to vector<8x1xf32>
    %11 = arith.mulf %9, %10 : vector<8x1xf32>
    %12 = arith.mulf %6, %6 : vector<8x1xf32>
    %13 = arith.subf %11, %12 : vector<8x1xf32>
    %cst_7 = arith.constant 0.000000e+00 : f32
    %14 = vector.broadcast %cst_7 : f32 to vector<8x1xf32>
    %15 = arith.maximumf %13, %14 : vector<8x1xf32>
    %c0_8 = arith.constant 0 : index
    %c0_9 = arith.constant 0 : index
    %16 = vector.load %arg2[%c0_8, %c0_9] : memref<8x1xf32, #tpu.memory_space<vmem>>, vector<8x1xf32>
    %cst_10 = arith.constant 9.99999974E-6 : f32
    %17 = vector.broadcast %cst_10 : f32 to vector<8x1xf32>
    %18 = arith.addf %15, %17 : vector<8x1xf32>
    %19 = math.rsqrt %18 : vector<8x1xf32>
    %20 = arith.mulf %16, %19 : vector<8x1xf32>
    %c0_11 = arith.constant 0 : index
    %c0_12 = arith.constant 0 : index
    %21 = vector.load %arg3[%c0_11, %c0_12] : memref<8x1xf32, #tpu.memory_space<vmem>>, vector<8x1xf32>
    %22 = arith.mulf %6, %20 : vector<8x1xf32>
    %23 = arith.subf %21, %22 : vector<8x1xf32>
    %24 = vector.broadcast %20 : vector<8x1xf32> to vector<8x512xf32>
    %25 = arith.mulf %2, %24 : vector<8x512xf32>
    %26 = vector.broadcast %23 : vector<8x1xf32> to vector<8x512xf32>
    %27 = arith.addf %25, %26 : vector<8x512xf32>
    %cst_13 = arith.constant 0.000000e+00 : f32
    %28 = vector.broadcast %cst_13 : f32 to vector<8x512xf32>
    %29 = arith.maximumf %27, %28 : vector<8x512xf32>
    %c0_14 = arith.constant 0 : index
    %c0_15 = arith.constant 0 : index
    %30 = vector.load %arg4[%c0_14, %c0_15] : memref<8x512xf32, #tpu.memory_space<vmem>>, vector<8x512xf32>
    tpu.vector_store %arg4[%c0_14, %c0_15], %29 {strides = array<i32>} : memref<8x512xf32, #tpu.memory_space<vmem>>, vector<8x512xf32>,
    return
  }
}

module attributes {stable_mosaic.version = 11 : i64} {
  func.func @_maxpool3x3_kernel(%arg0: memref<8x2x18x18xf32, #tpu.memory_space<vmem>>, %arg1: memref<8x2x16x16xf32, #tpu.memory_space<vmem>>) attributes {dimension_semantics = [], scalar_prefetch = 0 : i64, scratch_operands = 0 : i64, tpu.core_type = #tpu.core_type<tc>} {
    %c0 = arith.constant 0 : index
    %c0_0 = arith.constant 0 : index
    %c0_1 = arith.constant 0 : index
    %c0_2 = arith.constant 0 : index
    %0 = vector.load %arg0[%c0, %c0_0, %c0_1, %c0_2] : memref<8x2x18x18xf32, #tpu.memory_space<vmem>>, vector<8x2x16x16xf32>
    %c0_3 = arith.constant 0 : index
    %c0_4 = arith.constant 0 : index
    %c0_5 = arith.constant 0 : index
    %c1 = arith.constant 1 : index
    %1 = vector.load %arg0[%c0_3, %c0_4, %c0_5, %c1] : memref<8x2x18x18xf32, #tpu.memory_space<vmem>>, vector<8x2x16x16xf32>
    %2 = arith.maximumf %0, %1 : vector<8x2x16x16xf32>
    %c0_6 = arith.constant 0 : index
    %c0_7 = arith.constant 0 : index
    %c0_8 = arith.constant 0 : index
    %c2 = arith.constant 2 : index
    %3 = vector.load %arg0[%c0_6, %c0_7, %c0_8, %c2] : memref<8x2x18x18xf32, #tpu.memory_space<vmem>>, vector<8x2x16x16xf32>
    %4 = arith.maximumf %2, %3 : vector<8x2x16x16xf32>
    %c0_9 = arith.constant 0 : index
    %c0_10 = arith.constant 0 : index
    %c1_11 = arith.constant 1 : index
    %c0_12 = arith.constant 0 : index
    %5 = vector.load %arg0[%c0_9, %c0_10, %c1_11, %c0_12] : memref<8x2x18x18xf32, #tpu.memory_space<vmem>>, vector<8x2x16x16xf32>
    %6 = arith.maximumf %4, %5 : vector<8x2x16x16xf32>
    %c0_13 = arith.constant 0 : index
    %c0_14 = arith.constant 0 : index
    %c1_15 = arith.constant 1 : index
    %c1_16 = arith.constant 1 : index
    %7 = vector.load %arg0[%c0_13, %c0_14, %c1_15, %c1_16] : memref<8x2x18x18xf32, #tpu.memory_space<vmem>>, vector<8x2x16x16xf32>
    %8 = arith.maximumf %6, %7 : vector<8x2x16x16xf32>
    %c0_17 = arith.constant 0 : index
    %c0_18 = arith.constant 0 : index
    %c1_19 = arith.constant 1 : index
    %c2_20 = arith.constant 2 : index
    %9 = vector.load %arg0[%c0_17, %c0_18, %c1_19, %c2_20] : memref<8x2x18x18xf32, #tpu.memory_space<vmem>>, vector<8x2x16x16xf32>
    %10 = arith.maximumf %8, %9 : vector<8x2x16x16xf32>
    %c0_21 = arith.constant 0 : index
    %c0_22 = arith.constant 0 : index
    %c2_23 = arith.constant 2 : index
    %c0_24 = arith.constant 0 : index
    %11 = vector.load %arg0[%c0_21, %c0_22, %c2_23, %c0_24] : memref<8x2x18x18xf32, #tpu.memory_space<vmem>>, vector<8x2x16x16xf32>
    %12 = arith.maximumf %10, %11 : vector<8x2x16x16xf32>
    %c0_25 = arith.constant 0 : index
    %c0_26 = arith.constant 0 : index
    %c2_27 = arith.constant 2 : index
    %c1_28 = arith.constant 1 : index
    %13 = vector.load %arg0[%c0_25, %c0_26, %c2_27, %c1_28] : memref<8x2x18x18xf32, #tpu.memory_space<vmem>>, vector<8x2x16x16xf32>
    %14 = arith.maximumf %12, %13 : vector<8x2x16x16xf32>
    %c0_29 = arith.constant 0 : index
    %c0_30 = arith.constant 0 : index
    %c2_31 = arith.constant 2 : index
    %c2_32 = arith.constant 2 : index
    %15 = vector.load %arg0[%c0_29, %c0_30, %c2_31, %c2_32] : memref<8x2x18x18xf32, #tpu.memory_space<vmem>>, vector<8x2x16x16xf32>
    %16 = arith.maximumf %14, %15 : vector<8x2x16x16xf32>
    %c0_33 = arith.constant 0 : index
    %c0_34 = arith.constant 0 : index
    %c0_35 = arith.constant 0 : index
    %c0_36 = arith.constant 0 : index
    %17 = vector.load %arg1[%c0_33, %c0_34, %c0_35, %c0_36] : memref<8x2x16x16xf32, #tpu.memory_space<vmem>>, vector<8x2x16x16xf32>
    tpu.vector_store %arg1[%c0_33, %c0_34, %c0_35, %c0_36], %16 {strides = array<i32>} : memref<8x2x16x16xf32, #tpu.memory_space<vmem>>, vector<8x2x16x16xf32>,
    return
  }
}

module attributes {stable_mosaic.version = 11 : i64} {
  func.func @_conv_bn_act_kernel(%arg0: memref<8x128xbf16, #tpu.memory_space<vmem>>, %arg1: memref<128x128xbf16, #tpu.memory_space<vmem>>, %arg2: memref<8x1xf32, #tpu.memory_space<vmem>>, %arg3: memref<8x1xf32, #tpu.memory_space<vmem>>, %arg4: memref<8x128xf32, #tpu.memory_space<vmem>>) attributes {dimension_semantics = [], scalar_prefetch = 0 : i64, scratch_operands = 0 : i64, tpu.core_type = #tpu.core_type<tc>} {
    %c0 = arith.constant 0 : index
    %c0_0 = arith.constant 0 : index
    %0 = vector.load %arg0[%c0, %c0_0] : memref<8x128xbf16, #tpu.memory_space<vmem>>, vector<8x128xbf16>
    %c0_1 = arith.constant 0 : index
    %c0_2 = arith.constant 0 : index
    %1 = vector.load %arg1[%c0_1, %c0_2] : memref<128x128xbf16, #tpu.memory_space<vmem>>, vector<128x128xbf16>
    %cst = arith.constant dense<0.000000e+00> : vector<8x128xf32>
    %2 = tpu.matmul %0, %1, %cst {dimension_numbers = #tpu.dot_dimension_numbers<[1], [0], [0], [1], [0, 0, 1, 1], [], []>} : vector<8x128xbf16>, vector<128x128xbf16>, vector<8x128xf32> -> vector<8x128xf32>
    %cst_3 = arith.constant dense<0.000000e+00> : vector<8xf32>
    %3 = vector.multi_reduction <add>, %2, %cst_3 [1] : vector<8x128xf32> to vector<8xf32>
    %4 = vector.shape_cast %3 : vector<8xf32> to vector<8x1xf32>
    %cst_4 = arith.constant 7.812500e-03 : f32
    %5 = vector.broadcast %cst_4 : f32 to vector<8x1xf32>
    %6 = arith.mulf %4, %5 : vector<8x1xf32>
    %7 = arith.mulf %2, %2 : vector<8x128xf32>
    %cst_5 = arith.constant dense<0.000000e+00> : vector<8xf32>
    %8 = vector.multi_reduction <add>, %7, %cst_5 [1] : vector<8x128xf32> to vector<8xf32>
    %9 = vector.shape_cast %8 : vector<8xf32> to vector<8x1xf32>
    %cst_6 = arith.constant 7.812500e-03 : f32
    %10 = vector.broadcast %cst_6 : f32 to vector<8x1xf32>
    %11 = arith.mulf %9, %10 : vector<8x1xf32>
    %12 = arith.mulf %6, %6 : vector<8x1xf32>
    %13 = arith.subf %11, %12 : vector<8x1xf32>
    %cst_7 = arith.constant 0.000000e+00 : f32
    %14 = vector.broadcast %cst_7 : f32 to vector<8x1xf32>
    %15 = arith.maximumf %13, %14 : vector<8x1xf32>
    %c0_8 = arith.constant 0 : index
    %c0_9 = arith.constant 0 : index
    %16 = vector.load %arg2[%c0_8, %c0_9] : memref<8x1xf32, #tpu.memory_space<vmem>>, vector<8x1xf32>
    %cst_10 = arith.constant 9.99999974E-6 : f32
    %17 = vector.broadcast %cst_10 : f32 to vector<8x1xf32>
    %18 = arith.addf %15, %17 : vector<8x1xf32>
    %19 = math.rsqrt %18 : vector<8x1xf32>
    %20 = arith.mulf %16, %19 : vector<8x1xf32>
    %c0_11 = arith.constant 0 : index
    %c0_12 = arith.constant 0 : index
    %21 = vector.load %arg3[%c0_11, %c0_12] : memref<8x1xf32, #tpu.memory_space<vmem>>, vector<8x1xf32>
    %22 = arith.mulf %6, %20 : vector<8x1xf32>
    %23 = arith.subf %21, %22 : vector<8x1xf32>
    %24 = vector.broadcast %20 : vector<8x1xf32> to vector<8x128xf32>
    %25 = arith.mulf %2, %24 : vector<8x128xf32>
    %26 = vector.broadcast %23 : vector<8x1xf32> to vector<8x128xf32>
    %27 = arith.addf %25, %26 : vector<8x128xf32>
    %cst_13 = arith.constant 0.000000e+00 : f32
    %28 = vector.broadcast %cst_13 : f32 to vector<8x128xf32>
    %29 = arith.maximumf %27, %28 : vector<8x128xf32>
    %c0_14 = arith.constant 0 : index
    %c0_15 = arith.constant 0 : index
    %30 = vector.load %arg4[%c0_14, %c0_15] : memref<8x128xf32, #tpu.memory_space<vmem>>, vector<8x128xf32>
    tpu.vector_store %arg4[%c0_14, %c0_15], %29 {strides = array<i32>} : memref<8x128xf32, #tpu.memory_space<vmem>>, vector<8x128xf32>,
    return
  }
}

module attributes {stable_mosaic.version = 11 : i64} {
  func.func @_conv_bn_act_kernel(%arg0: memref<8x128xbf16, #tpu.memory_space<vmem>>, %arg1: memref<128x128xbf16, #tpu.memory_space<vmem>>, %arg2: memref<8x1xf32, #tpu.memory_space<vmem>>, %arg3: memref<8x1xf32, #tpu.memory_space<vmem>>, %arg4: memref<8x128xf32, #tpu.memory_space<vmem>>, %arg5: memref<8x128xf32, #tpu.memory_space<vmem>>) attributes {dimension_semantics = [], scalar_prefetch = 0 : i64, scratch_operands = 0 : i64, tpu.core_type = #tpu.core_type<tc>} {
    %c0 = arith.constant 0 : index
    %c0_0 = arith.constant 0 : index
    %0 = vector.load %arg0[%c0, %c0_0] : memref<8x128xbf16, #tpu.memory_space<vmem>>, vector<8x128xbf16>
    %c0_1 = arith.constant 0 : index
    %c0_2 = arith.constant 0 : index
    %1 = vector.load %arg1[%c0_1, %c0_2] : memref<128x128xbf16, #tpu.memory_space<vmem>>, vector<128x128xbf16>
    %cst = arith.constant dense<0.000000e+00> : vector<8x128xf32>
    %2 = tpu.matmul %0, %1, %cst {dimension_numbers = #tpu.dot_dimension_numbers<[1], [0], [0], [1], [0, 0, 1, 1], [], []>} : vector<8x128xbf16>, vector<128x128xbf16>, vector<8x128xf32> -> vector<8x128xf32>
    %cst_3 = arith.constant dense<0.000000e+00> : vector<8xf32>
    %3 = vector.multi_reduction <add>, %2, %cst_3 [1] : vector<8x128xf32> to vector<8xf32>
    %4 = vector.shape_cast %3 : vector<8xf32> to vector<8x1xf32>
    %cst_4 = arith.constant 7.812500e-03 : f32
    %5 = vector.broadcast %cst_4 : f32 to vector<8x1xf32>
    %6 = arith.mulf %4, %5 : vector<8x1xf32>
    %7 = arith.mulf %2, %2 : vector<8x128xf32>
    %cst_5 = arith.constant dense<0.000000e+00> : vector<8xf32>
    %8 = vector.multi_reduction <add>, %7, %cst_5 [1] : vector<8x128xf32> to vector<8xf32>
    %9 = vector.shape_cast %8 : vector<8xf32> to vector<8x1xf32>
    %cst_6 = arith.constant 7.812500e-03 : f32
    %10 = vector.broadcast %cst_6 : f32 to vector<8x1xf32>
    %11 = arith.mulf %9, %10 : vector<8x1xf32>
    %12 = arith.mulf %6, %6 : vector<8x1xf32>
    %13 = arith.subf %11, %12 : vector<8x1xf32>
    %cst_7 = arith.constant 0.000000e+00 : f32
    %14 = vector.broadcast %cst_7 : f32 to vector<8x1xf32>
    %15 = arith.maximumf %13, %14 : vector<8x1xf32>
    %c0_8 = arith.constant 0 : index
    %c0_9 = arith.constant 0 : index
    %16 = vector.load %arg2[%c0_8, %c0_9] : memref<8x1xf32, #tpu.memory_space<vmem>>, vector<8x1xf32>
    %cst_10 = arith.constant 9.99999974E-6 : f32
    %17 = vector.broadcast %cst_10 : f32 to vector<8x1xf32>
    %18 = arith.addf %15, %17 : vector<8x1xf32>
    %19 = math.rsqrt %18 : vector<8x1xf32>
    %20 = arith.mulf %16, %19 : vector<8x1xf32>
    %c0_11 = arith.constant 0 : index
    %c0_12 = arith.constant 0 : index
    %21 = vector.load %arg3[%c0_11, %c0_12] : memref<8x1xf32, #tpu.memory_space<vmem>>, vector<8x1xf32>
    %22 = arith.mulf %6, %20 : vector<8x1xf32>
    %23 = arith.subf %21, %22 : vector<8x1xf32>
    %24 = vector.broadcast %20 : vector<8x1xf32> to vector<8x128xf32>
    %25 = arith.mulf %2, %24 : vector<8x128xf32>
    %26 = vector.broadcast %23 : vector<8x1xf32> to vector<8x128xf32>
    %27 = arith.addf %25, %26 : vector<8x128xf32>
    %c0_13 = arith.constant 0 : index
    %c0_14 = arith.constant 0 : index
    %28 = vector.load %arg4[%c0_13, %c0_14] : memref<8x128xf32, #tpu.memory_space<vmem>>, vector<8x128xf32>
    %29 = arith.addf %27, %28 : vector<8x128xf32>
    %cst_15 = arith.constant 0.000000e+00 : f32
    %30 = vector.broadcast %cst_15 : f32 to vector<8x128xf32>
    %31 = arith.maximumf %29, %30 : vector<8x128xf32>
    %c0_16 = arith.constant 0 : index
    %c0_17 = arith.constant 0 : index
    %32 = vector.load %arg5[%c0_16, %c0_17] : memref<8x128xf32, #tpu.memory_space<vmem>>, vector<8x128xf32>
    tpu.vector_store %arg5[%c0_16, %c0_17], %31 {strides = array<i32>} : memref<8x128xf32, #tpu.memory_space<vmem>>, vector<8x128xf32>,
    return
  }
}

module attributes {stable_mosaic.version = 11 : i64} {
  func.func @_conv_bn_act_kernel(%arg0: memref<16x128xbf16, #tpu.memory_space<vmem>>, %arg1: memref<128x32xbf16, #tpu.memory_space<vmem>>, %arg2: memref<16x1xf32, #tpu.memory_space<vmem>>, %arg3: memref<16x1xf32, #tpu.memory_space<vmem>>, %arg4: memref<16x32xf32, #tpu.memory_space<vmem>>) attributes {dimension_semantics = [], scalar_prefetch = 0 : i64, scratch_operands = 0 : i64, tpu.core_type = #tpu.core_type<tc>} {
    %c0 = arith.constant 0 : index
    %c0_0 = arith.constant 0 : index
    %0 = vector.load %arg0[%c0, %c0_0] : memref<16x128xbf16, #tpu.memory_space<vmem>>, vector<16x128xbf16>
    %c0_1 = arith.constant 0 : index
    %c0_2 = arith.constant 0 : index
    %1 = vector.load %arg1[%c0_1, %c0_2] : memref<128x32xbf16, #tpu.memory_space<vmem>>, vector<128x32xbf16>
    %cst = arith.constant dense<0.000000e+00> : vector<16x32xf32>
    %2 = tpu.matmul %0, %1, %cst {dimension_numbers = #tpu.dot_dimension_numbers<[1], [0], [0], [1], [0, 0, 1, 1], [], []>} : vector<16x128xbf16>, vector<128x32xbf16>, vector<16x32xf32> -> vector<16x32xf32>
    %cst_3 = arith.constant dense<0.000000e+00> : vector<16xf32>
    %3 = vector.multi_reduction <add>, %2, %cst_3 [1] : vector<16x32xf32> to vector<16xf32>
    %4 = vector.shape_cast %3 : vector<16xf32> to vector<16x1xf32>
    %cst_4 = arith.constant 3.125000e-02 : f32
    %5 = vector.broadcast %cst_4 : f32 to vector<16x1xf32>
    %6 = arith.mulf %4, %5 : vector<16x1xf32>
    %7 = arith.mulf %2, %2 : vector<16x32xf32>
    %cst_5 = arith.constant dense<0.000000e+00> : vector<16xf32>
    %8 = vector.multi_reduction <add>, %7, %cst_5 [1] : vector<16x32xf32> to vector<16xf32>
    %9 = vector.shape_cast %8 : vector<16xf32> to vector<16x1xf32>
    %cst_6 = arith.constant 3.125000e-02 : f32
    %10 = vector.broadcast %cst_6 : f32 to vector<16x1xf32>
    %11 = arith.mulf %9, %10 : vector<16x1xf32>
    %12 = arith.mulf %6, %6 : vector<16x1xf32>
    %13 = arith.subf %11, %12 : vector<16x1xf32>
    %cst_7 = arith.constant 0.000000e+00 : f32
    %14 = vector.broadcast %cst_7 : f32 to vector<16x1xf32>
    %15 = arith.maximumf %13, %14 : vector<16x1xf32>
    %c0_8 = arith.constant 0 : index
    %c0_9 = arith.constant 0 : index
    %16 = vector.load %arg2[%c0_8, %c0_9] : memref<16x1xf32, #tpu.memory_space<vmem>>, vector<16x1xf32>
    %cst_10 = arith.constant 9.99999974E-6 : f32
    %17 = vector.broadcast %cst_10 : f32 to vector<16x1xf32>
    %18 = arith.addf %15, %17 : vector<16x1xf32>
    %19 = math.rsqrt %18 : vector<16x1xf32>
    %20 = arith.mulf %16, %19 : vector<16x1xf32>
    %c0_11 = arith.constant 0 : index
    %c0_12 = arith.constant 0 : index
    %21 = vector.load %arg3[%c0_11, %c0_12] : memref<16x1xf32, #tpu.memory_space<vmem>>, vector<16x1xf32>
    %22 = arith.mulf %6, %20 : vector<16x1xf32>
    %23 = arith.subf %21, %22 : vector<16x1xf32>
    %24 = vector.broadcast %20 : vector<16x1xf32> to vector<16x32xf32>
    %25 = arith.mulf %2, %24 : vector<16x32xf32>
    %26 = vector.broadcast %23 : vector<16x1xf32> to vector<16x32xf32>
    %27 = arith.addf %25, %26 : vector<16x32xf32>
    %cst_13 = arith.constant 0.000000e+00 : f32
    %28 = vector.broadcast %cst_13 : f32 to vector<16x32xf32>
    %29 = arith.maximumf %27, %28 : vector<16x32xf32>
    %c0_14 = arith.constant 0 : index
    %c0_15 = arith.constant 0 : index
    %30 = vector.load %arg4[%c0_14, %c0_15] : memref<16x32xf32, #tpu.memory_space<vmem>>, vector<16x32xf32>
    tpu.vector_store %arg4[%c0_14, %c0_15], %29 {strides = array<i32>} : memref<16x32xf32, #tpu.memory_space<vmem>>, vector<16x32xf32>,
    return
  }
}

module attributes {stable_mosaic.version = 11 : i64} {
  func.func @_conv_bn_act_kernel(%arg0: memref<16x128xbf16, #tpu.memory_space<vmem>>, %arg1: memref<128x32xbf16, #tpu.memory_space<vmem>>, %arg2: memref<16x1xf32, #tpu.memory_space<vmem>>, %arg3: memref<16x1xf32, #tpu.memory_space<vmem>>, %arg4: memref<16x32xf32, #tpu.memory_space<vmem>>) attributes {dimension_semantics = [], scalar_prefetch = 0 : i64, scratch_operands = 0 : i64, tpu.core_type = #tpu.core_type<tc>} {
    %c0 = arith.constant 0 : index
    %c0_0 = arith.constant 0 : index
    %0 = vector.load %arg0[%c0, %c0_0] : memref<16x128xbf16, #tpu.memory_space<vmem>>, vector<16x128xbf16>
    %c0_1 = arith.constant 0 : index
    %c0_2 = arith.constant 0 : index
    %1 = vector.load %arg1[%c0_1, %c0_2] : memref<128x32xbf16, #tpu.memory_space<vmem>>, vector<128x32xbf16>
    %cst = arith.constant dense<0.000000e+00> : vector<16x32xf32>
    %2 = tpu.matmul %0, %1, %cst {dimension_numbers = #tpu.dot_dimension_numbers<[1], [0], [0], [1], [0, 0, 1, 1], [], []>} : vector<16x128xbf16>, vector<128x32xbf16>, vector<16x32xf32> -> vector<16x32xf32>
    %cst_3 = arith.constant dense<0.000000e+00> : vector<16xf32>
    %3 = vector.multi_reduction <add>, %2, %cst_3 [1] : vector<16x32xf32> to vector<16xf32>
    %4 = vector.shape_cast %3 : vector<16xf32> to vector<16x1xf32>
    %cst_4 = arith.constant 3.125000e-02 : f32
    %5 = vector.broadcast %cst_4 : f32 to vector<16x1xf32>
    %6 = arith.mulf %4, %5 : vector<16x1xf32>
    %7 = arith.mulf %2, %2 : vector<16x32xf32>
    %cst_5 = arith.constant dense<0.000000e+00> : vector<16xf32>
    %8 = vector.multi_reduction <add>, %7, %cst_5 [1] : vector<16x32xf32> to vector<16xf32>
    %9 = vector.shape_cast %8 : vector<16xf32> to vector<16x1xf32>
    %cst_6 = arith.constant 3.125000e-02 : f32
    %10 = vector.broadcast %cst_6 : f32 to vector<16x1xf32>
    %11 = arith.mulf %9, %10 : vector<16x1xf32>
    %12 = arith.mulf %6, %6 : vector<16x1xf32>
    %13 = arith.subf %11, %12 : vector<16x1xf32>
    %cst_7 = arith.constant 0.000000e+00 : f32
    %14 = vector.broadcast %cst_7 : f32 to vector<16x1xf32>
    %15 = arith.maximumf %13, %14 : vector<16x1xf32>
    %c0_8 = arith.constant 0 : index
    %c0_9 = arith.constant 0 : index
    %16 = vector.load %arg2[%c0_8, %c0_9] : memref<16x1xf32, #tpu.memory_space<vmem>>, vector<16x1xf32>
    %cst_10 = arith.constant 9.99999974E-6 : f32
    %17 = vector.broadcast %cst_10 : f32 to vector<16x1xf32>
    %18 = arith.addf %15, %17 : vector<16x1xf32>
    %19 = math.rsqrt %18 : vector<16x1xf32>
    %20 = arith.mulf %16, %19 : vector<16x1xf32>
    %c0_11 = arith.constant 0 : index
    %c0_12 = arith.constant 0 : index
    %21 = vector.load %arg3[%c0_11, %c0_12] : memref<16x1xf32, #tpu.memory_space<vmem>>, vector<16x1xf32>
    %22 = arith.mulf %6, %20 : vector<16x1xf32>
    %23 = arith.subf %21, %22 : vector<16x1xf32>
    %24 = vector.broadcast %20 : vector<16x1xf32> to vector<16x32xf32>
    %25 = arith.mulf %2, %24 : vector<16x32xf32>
    %26 = vector.broadcast %23 : vector<16x1xf32> to vector<16x32xf32>
    %27 = arith.addf %25, %26 : vector<16x32xf32>
    %c0_13 = arith.constant 0 : index
    %c0_14 = arith.constant 0 : index
    %28 = vector.load %arg4[%c0_13, %c0_14] : memref<16x32xf32, #tpu.memory_space<vmem>>, vector<16x32xf32>
    tpu.vector_store %arg4[%c0_13, %c0_14], %27 {strides = array<i32>} : memref<16x32xf32, #tpu.memory_space<vmem>>, vector<16x32xf32>,
    return
  }
}

module attributes {stable_mosaic.version = 11 : i64} {
  func.func @_conv_bn_act_kernel(%arg0: memref<16x256xbf16, #tpu.memory_space<vmem>>, %arg1: memref<256x32xbf16, #tpu.memory_space<vmem>>, %arg2: memref<16x1xf32, #tpu.memory_space<vmem>>, %arg3: memref<16x1xf32, #tpu.memory_space<vmem>>, %arg4: memref<16x32xf32, #tpu.memory_space<vmem>>, %arg5: memref<16x32xf32, #tpu.memory_space<vmem>>) attributes {dimension_semantics = [], scalar_prefetch = 0 : i64, scratch_operands = 0 : i64, tpu.core_type = #tpu.core_type<tc>} {
    %c0 = arith.constant 0 : index
    %c0_0 = arith.constant 0 : index
    %0 = vector.load %arg0[%c0, %c0_0] : memref<16x256xbf16, #tpu.memory_space<vmem>>, vector<16x256xbf16>
    %c0_1 = arith.constant 0 : index
    %c0_2 = arith.constant 0 : index
    %1 = vector.load %arg1[%c0_1, %c0_2] : memref<256x32xbf16, #tpu.memory_space<vmem>>, vector<256x32xbf16>
    %cst = arith.constant dense<0.000000e+00> : vector<16x32xf32>
    %2 = tpu.matmul %0, %1, %cst {dimension_numbers = #tpu.dot_dimension_numbers<[1], [0], [0], [1], [0, 0, 1, 1], [], []>} : vector<16x256xbf16>, vector<256x32xbf16>, vector<16x32xf32> -> vector<16x32xf32>
    %cst_3 = arith.constant dense<0.000000e+00> : vector<16xf32>
    %3 = vector.multi_reduction <add>, %2, %cst_3 [1] : vector<16x32xf32> to vector<16xf32>
    %4 = vector.shape_cast %3 : vector<16xf32> to vector<16x1xf32>
    %cst_4 = arith.constant 3.125000e-02 : f32
    %5 = vector.broadcast %cst_4 : f32 to vector<16x1xf32>
    %6 = arith.mulf %4, %5 : vector<16x1xf32>
    %7 = arith.mulf %2, %2 : vector<16x32xf32>
    %cst_5 = arith.constant dense<0.000000e+00> : vector<16xf32>
    %8 = vector.multi_reduction <add>, %7, %cst_5 [1] : vector<16x32xf32> to vector<16xf32>
    %9 = vector.shape_cast %8 : vector<16xf32> to vector<16x1xf32>
    %cst_6 = arith.constant 3.125000e-02 : f32
    %10 = vector.broadcast %cst_6 : f32 to vector<16x1xf32>
    %11 = arith.mulf %9, %10 : vector<16x1xf32>
    %12 = arith.mulf %6, %6 : vector<16x1xf32>
    %13 = arith.subf %11, %12 : vector<16x1xf32>
    %cst_7 = arith.constant 0.000000e+00 : f32
    %14 = vector.broadcast %cst_7 : f32 to vector<16x1xf32>
    %15 = arith.maximumf %13, %14 : vector<16x1xf32>
    %c0_8 = arith.constant 0 : index
    %c0_9 = arith.constant 0 : index
    %16 = vector.load %arg2[%c0_8, %c0_9] : memref<16x1xf32, #tpu.memory_space<vmem>>, vector<16x1xf32>
    %cst_10 = arith.constant 9.99999974E-6 : f32
    %17 = vector.broadcast %cst_10 : f32 to vector<16x1xf32>
    %18 = arith.addf %15, %17 : vector<16x1xf32>
    %19 = math.rsqrt %18 : vector<16x1xf32>
    %20 = arith.mulf %16, %19 : vector<16x1xf32>
    %c0_11 = arith.constant 0 : index
    %c0_12 = arith.constant 0 : index
    %21 = vector.load %arg3[%c0_11, %c0_12] : memref<16x1xf32, #tpu.memory_space<vmem>>, vector<16x1xf32>
    %22 = arith.mulf %6, %20 : vector<16x1xf32>
    %23 = arith.subf %21, %22 : vector<16x1xf32>
    %24 = vector.broadcast %20 : vector<16x1xf32> to vector<16x32xf32>
    %25 = arith.mulf %2, %24 : vector<16x32xf32>
    %26 = vector.broadcast %23 : vector<16x1xf32> to vector<16x32xf32>
    %27 = arith.addf %25, %26 : vector<16x32xf32>
    %c0_13 = arith.constant 0 : index
    %c0_14 = arith.constant 0 : index
    %28 = vector.load %arg4[%c0_13, %c0_14] : memref<16x32xf32, #tpu.memory_space<vmem>>, vector<16x32xf32>
    %29 = arith.addf %27, %28 : vector<16x32xf32>
    %cst_15 = arith.constant 0.000000e+00 : f32
    %30 = vector.broadcast %cst_15 : f32 to vector<16x32xf32>
    %31 = arith.maximumf %29, %30 : vector<16x32xf32>
    %c0_16 = arith.constant 0 : index
    %c0_17 = arith.constant 0 : index
    %32 = vector.load %arg5[%c0_16, %c0_17] : memref<16x32xf32, #tpu.memory_space<vmem>>, vector<16x32xf32>
    tpu.vector_store %arg5[%c0_16, %c0_17], %31 {strides = array<i32>} : memref<16x32xf32, #tpu.memory_space<vmem>>, vector<16x32xf32>,
    return
  }
}

module attributes {stable_mosaic.version = 11 : i64} {
  func.func @_pool_fc_kernel(%arg0: memref<16x2x16xf32, #tpu.memory_space<vmem>>, %arg1: memref<10x16xbf16, #tpu.memory_space<vmem>>, %arg2: memref<10x1xf32, #tpu.memory_space<vmem>>, %arg3: memref<10x2xf32, #tpu.memory_space<vmem>>) attributes {dimension_semantics = [], scalar_prefetch = 0 : i64, scratch_operands = 0 : i64, tpu.core_type = #tpu.core_type<tc>} {
    %c0 = arith.constant 0 : index
    %c0_0 = arith.constant 0 : index
    %c0_1 = arith.constant 0 : index
    %0 = vector.load %arg0[%c0, %c0_0, %c0_1] : memref<16x2x16xf32, #tpu.memory_space<vmem>>, vector<16x2x16xf32>
    %cst = arith.constant dense<0.000000e+00> : vector<16x2xf32>
    %1 = vector.multi_reduction <add>, %0, %cst [2] : vector<16x2x16xf32> to vector<16x2xf32>
    %cst_2 = arith.constant 1.600000e+01 : f32
    %2 = vector.broadcast %cst_2 : f32 to vector<16x2xf32>
    %3 = arith.divf %1, %2 : vector<16x2xf32>
    %c0_3 = arith.constant 0 : index
    %c0_4 = arith.constant 0 : index
    %4 = vector.load %arg1[%c0_3, %c0_4] : memref<10x16xbf16, #tpu.memory_space<vmem>>, vector<10x16xbf16>
    %5 = arith.truncf %3 : vector<16x2xf32> to vector<16x2xbf16>
    %cst_5 = arith.constant dense<0.000000e+00> : vector<10x2xf32>
    %6 = tpu.matmul %4, %5, %cst_5 {dimension_numbers = #tpu.dot_dimension_numbers<[1], [0], [0], [1], [0, 0, 1, 1], [], []>} : vector<10x16xbf16>, vector<16x2xbf16>, vector<10x2xf32> -> vector<10x2xf32>
    %c0_6 = arith.constant 0 : index
    %c0_7 = arith.constant 0 : index
    %7 = vector.load %arg2[%c0_6, %c0_7] : memref<10x1xf32, #tpu.memory_space<vmem>>, vector<10x1xf32>
    %8 = vector.broadcast %7 : vector<10x1xf32> to vector<10x2xf32>
    %9 = arith.addf %6, %8 : vector<10x2xf32>
    %c0_8 = arith.constant 0 : index
    %c0_9 = arith.constant 0 : index
    %10 = vector.load %arg3[%c0_8, %c0_9] : memref<10x2xf32, #tpu.memory_space<vmem>>, vector<10x2xf32>
    tpu.vector_store %arg3[%c0_8, %c0_9], %9 {strides = array<i32>} : memref<10x2xf32, #tpu.memory_space<vmem>>, vector<10x2xf32>,
    return
  }
}

</mosaic_0001>

<bundles_post_ra>
// kernel: resnet_forward.8
= control target key start
LH: loop header
LB: loop body
LE: loop exit
PB: predicated region body
PF: predicated region fallthrough
CT: control target
= control target key end

     0   :  { %s1346_s1 = inlined_call_operand.vmem [shape: bf16[256,512], index: 1, kind: input, shape index: {}]   ;;  %s1347_s0 = inlined_call_operand.vmem [shape: bf16[8,256], index: 0, kind: input, shape index: {}]   ;;  %s1348_s2 = inlined_call_operand.vmem [shape: f32[8,1], index: 2, kind: input, shape index: {}]   ;;  %s1349_s3 = inlined_call_operand.vmem [shape: f32[8,1], index: 3, kind: input, shape index: {}]   ;;  %s1350_s4 = inlined_call_operand.vmem [shape: f32[8,512], index: 4, kind: output, shape index: {}]  }
   0x1   :  { %v692_v0 = vld [vmem:[%s1346_s1 + $0xe0] sm:$0xf]  ;;  %v864_v1 = vld [vmem:[%s1346_s1 + $0xec] sm:$0xf0]  ;;  %v862_v5 = vld [vmem:[%s1346_s1 + $0xe4] sm:$0xf] }
   0x2   :  { %v820_v2 = vld [vmem:[%s1346_s1 + $0x1e0] sm:$0xf]  ;;  %v693_v3 = vor.u32 %v864_v1, %v692_v0  ;;  %v896_v4 = vld [vmem:[%s1346_s1 + $0x1ec] sm:$0xf0]  ;;  %v694_v6 = vld [vmem:[%s1346_s1 + $0xf0] sm:$0xf0] }
   0x3   :  { %v821_v7 = vor.u32 %v896_v4, %v820_v2  ;;  %v697_v8 = vor.u32 %v862_v5, %v694_v6  ;;  %v894_v9 = vld [vmem:[%s1346_s1 + $0x1e4] sm:$0xf]  ;;  %v822_v10 = vld [vmem:[%s1346_s1 + $0x1f0] sm:$0xf0]  ;;  %v676_v11 = vld [vmem:[%s1346_s1 + $0xc0] sm:$0xf] }
   0x4   :  { %409 = vmatpush.bf16.msra.mxu0 %v693_v3  ;;  %v825_v12 = vor.u32 %v894_v9, %v822_v10  ;;  %v860_v13 = vld [vmem:[%s1346_s1 + $0xcc] sm:$0xf0]  ;;  %v804_v14 = vld [vmem:[%s1346_s1 + $0x1c0] sm:$0xf]  ;;  %v858_v18 = vld [vmem:[%s1346_s1 + $0xc4] sm:$0xf] }
   0x5   :  { %v892_v15 = vld [vmem:[%s1346_s1 + $0x1cc] sm:$0xf0]  ;;  %422 = vmatpush.bf16.msra.mxu1 %v821_v7  ;;  %435 = vmatpush.bf16.msra.mxu2 %v697_v8  ;;  %v677_v16 = vor.u32 %v860_v13, %v676_v11  ;;  %v678_v19 = vld [vmem:[%s1346_s1 + $0xd0] sm:$0xf0]  ;;  %v890_v20 = vld [vmem:[%s1346_s1 + $0x1c4] sm:$0xf] }
   0x6   :  { %v805_v17 = vor.u32 %v892_v15, %v804_v14  ;;  %448 = vmatpush.bf16.msra.mxu3 %v825_v12  ;;  %v681_v21 = vor.u32 %v858_v18, %v678_v19  ;;  %v806_v22 = vld [vmem:[%s1346_s1 + $0x1d0] sm:$0xf0]  ;;  %v660_v23 = vld [vmem:[%s1346_s1 + $0xa0] sm:$0xf]  ;;  %v856_v24 = vld [vmem:[%s1346_s1 + $0xac] sm:$0xf0] }
   0x7   :  { %v809_v25 = vor.u32 %v890_v20, %v806_v22  ;;  %v788_v26 = vld [vmem:[%s1346_s1 + $0x1a0] sm:$0xf]  ;;  %v888_v27 = vld [vmem:[%s1346_s1 + $0x1ac] sm:$0xf0]  ;;  %v854_v28 = vld [vmem:[%s1346_s1 + $0xa4] sm:$0xf]  ;;  %v661_v29 = vor.u32 %v856_v24, %v660_v23 }
   0x8   :  { %410 = vmatpush.bf16.msra.mxu0 %v677_v16  ;;  %v662_v30 = vld [vmem:[%s1346_s1 + $0xb0] sm:$0xf0]  ;;  %v886_v31 = vld [vmem:[%s1346_s1 + $0x1a4] sm:$0xf]  ;;  %v789_v33 = vor.u32 %v888_v27, %v788_v26  ;;  %v644_v35 = vld [vmem:[%s1346_s1 + $0x80] sm:$0xf] }
   0x9   :  { %v790_v32 = vld [vmem:[%s1346_s1 + $0x1b0] sm:$0xf0]  ;;  %423 = vmatpush.bf16.msra.mxu1 %v805_v17  ;;  %436 = vmatpush.bf16.msra.mxu2 %v681_v21  ;;  %v665_v34 = vor.u32 %v854_v28, %v662_v30  ;;  %v852_v36 = vld [vmem:[%s1346_s1 + $0x8c] sm:$0xf0]  ;;  %v772_v37 = vld [vmem:[%s1346_s1 + $0x180] sm:$0xf] }
   0xa   :  { %449 = vmatpush.bf16.msra.mxu3 %v809_v25  ;;  %v793_v38 = vor.u32 %v886_v31, %v790_v32  ;;  %v884_v39 = vld [vmem:[%s1346_s1 + $0x18c] sm:$0xf0]  ;;  %v850_v40 = vld [vmem:[%s1346_s1 + $0x84] sm:$0xf]  ;;  %v646_v41 = vld [vmem:[%s1346_s1 + $0x90] sm:$0xf0]  ;;  %v645_v44 = vor.u32 %v852_v36, %v644_v35 }
   0xb   :  { %v882_v42 = vld [vmem:[%s1346_s1 + $0x184] sm:$0xf]  ;;  %v774_v43 = vld [vmem:[%s1346_s1 + $0x190] sm:$0xf0]  ;;  %v773_v45 = vor.u32 %v884_v39, %v772_v37  ;;  %v649_v46 = vor.u32 %v850_v40, %v646_v41  ;;  %v628_v47 = vld [vmem:[%s1346_s1 + $0x60] sm:$0xf] }
   0xc   :  { %411 = vmatpush.bf16.msra.mxu0 %v661_v29  ;;  %v848_v48 = vld [vmem:[%s1346_s1 + $0x6c] sm:$0xf0]  ;;  %v756_v49 = vld [vmem:[%s1346_s1 + $0x160] sm:$0xf]  ;;  %v777_v50 = vor.u32 %v882_v42, %v774_v43  ;;  %v846_v52 = vld [vmem:[%s1346_s1 + $0x64] sm:$0xf] }
   0xd   :  { %424 = vmatpush.bf16.msra.mxu1 %v789_v33  ;;  %437 = vmatpush.bf16.msra.mxu2 %v665_v34  ;;  %v880_v51 = vld [vmem:[%s1346_s1 + $0x16c] sm:$0xf0]  ;;  %v630_v53 = vld [vmem:[%s1346_s1 + $0x70] sm:$0xf0]  ;;  %v878_v54 = vld [vmem:[%s1346_s1 + $0x164] sm:$0xf]  ;;  %v629_v56 = vor.u32 %v848_v48, %v628_v47 }
   0xe   :  { %450 = vmatpush.bf16.msra.mxu3 %v793_v38  ;;  %v758_v55 = vld [vmem:[%s1346_s1 + $0x170] sm:$0xf0]  ;;  %v757_v57 = vor.u32 %v880_v51, %v756_v49  ;;  %v633_v58 = vor.u32 %v846_v52, %v630_v53  ;;  %v612_v59 = vld [vmem:[%s1346_s1 + $0x40] sm:$0xf]  ;;  %v844_v60 = vld [vmem:[%s1346_s1 + $0x4c] sm:$0xf0] }
   0xf   :  { %v740_v61 = vld [vmem:[%s1346_s1 + $0x140] sm:$0xf]  ;;  %v761_v62 = vor.u32 %v878_v54, %v758_v55  ;;  %v876_v63 = vld [vmem:[%s1346_s1 + $0x14c] sm:$0xf0]  ;;  %v842_v0 = vld [vmem:[%s1346_s1 + $0x44] sm:$0xf]  ;;  %v613_v4 = vor.u32 %v844_v60, %v612_v59 }
  0x10   :  { %412 = vmatpush.bf16.msra.mxu0 %v645_v44  ;;  %v614_v1 = vld [vmem:[%s1346_s1 + $0x50] sm:$0xf0]  ;;  %v874_v2 = vld [vmem:[%s1346_s1 + $0x144] sm:$0xf]  ;;  %v741_v5 = vor.u32 %v876_v63, %v740_v61  ;;  %v596_v7 = vld [vmem:[%s1346_s1 + $0x20] sm:$0xf] }
  0x11   :  { %425 = vmatpush.bf16.msra.mxu1 %v773_v45  ;;  %438 = vmatpush.bf16.msra.mxu2 %v649_v46  ;;  %v742_v3 = vld [vmem:[%s1346_s1 + $0x150] sm:$0xf0]  ;;  %v617_v6 = vor.u32 %v842_v0, %v614_v1  ;;  %v840_v8 = vld [vmem:[%s1346_s1 + $0x2c] sm:$0xf0]  ;;  %v724_v9 = vld [vmem:[%s1346_s1 + $0x120] sm:$0xf] }
  0x12   :  { %451 = vmatpush.bf16.msra.mxu3 %v777_v50  ;;  %v745_v10 = vor.u32 %v874_v2, %v742_v3  ;;  %v872_v11 = vld [vmem:[%s1346_s1 + $0x12c] sm:$0xf0]  ;;  %v838_v12 = vld [vmem:[%s1346_s1 + $0x24] sm:$0xf]  ;;  %v598_v13 = vld [vmem:[%s1346_s1 + $0x30] sm:$0xf0]  ;;  %v597_v16 = vor.u32 %v840_v8, %v596_v7 }
  0x13   :  { %v870_v14 = vld [vmem:[%s1346_s1 + $0x124] sm:$0xf]  ;;  %v726_v15 = vld [vmem:[%s1346_s1 + $0x130] sm:$0xf0]  ;;  %v580_v17 = vld [vmem:[%s1346_s1] sm:$0xf]  ;;  %v725_v20 = vor.u32 %v872_v11, %v724_v9  ;;  %v601_v21 = vor.u32 %v838_v12, %v598_v13 }
  0x14   :  { %413 = vmatpush.bf16.msra.mxu0 %v629_v56  ;;  %v836_v18 = vld [vmem:[%s1346_s1 + $0xc] sm:$0xf0]  ;;  %v708_v19 = vld [vmem:[%s1346_s1 + $0x100] sm:$0xf]  ;;  %v834_v23 = vld [vmem:[%s1346_s1 + $0x4] sm:$0xf]  ;;  %v729_v25 = vor.u32 %v870_v14, %v726_v15 }
  0x15   :  { %426 = vmatpush.bf16.msra.mxu1 %v757_v57  ;;  %439 = vmatpush.bf16.msra.mxu2 %v633_v58  ;;  %v868_v22 = vld [vmem:[%s1346_s1 + $0x10c] sm:$0xf0]  ;;  %v582_v24 = vld [vmem:[%s1346_s1 + $0x10] sm:$0xf0]  ;;  %v866_v26 = vld [vmem:[%s1346_s1 + $0x104] sm:$0xf]  ;;  %v581_v32 = vor.u32 %v836_v18, %v580_v17 }
  0x16   :  { %452 = vmatpush.bf16.msra.mxu3 %v761_v62  ;;  %v710_v27 = vld [vmem:[%s1346_s1 + $0x110] sm:$0xf0]  ;;  %v700_v28 = vld [vmem:[%s1346_s1 + $0xe8] sm:$0xf]  ;;  %v865_v29 = vld [vmem:[%s1346_s1 + $0xf4] sm:$0xf0]  ;;  %v709_v37 = vor.u32 %v868_v22, %v708_v19  ;;  %v585_v38 = vor.u32 %v834_v23, %v582_v24 }
  0x17   :  { %v828_v30 = vld [vmem:[%s1346_s1 + $0x1e8] sm:$0xf]  ;;  %v17_v31 = vld [vmem:[%s1347_s0] sm:$0xff]  ;;  %v897_v33 = vld [vmem:[%s1346_s1 + $0x1f4] sm:$0xf0]  ;;  %v713_v42 = vor.u32 %v866_v26, %v710_v27  ;;  %v701_v43 = vor.u32 %v865_v29, %v700_v28 }
  0x18   :  { %414 = vmatpush.bf16.msra.mxu0 %v613_v4  ;;  %v863_v34 = vld [vmem:[%s1346_s1 + $0xec] sm:$0xf]  ;;  %v702_v35 = vld [vmem:[%s1346_s1 + $0xf8] sm:$0xf0]  ;;  %v83_v36 = vunpack.c.l.b16 %v17_v31  ;;  %v84_v41 = vunpack.c.h.b16 %v17_v31  ;;  %v829_v44 = vor.u32 %v897_v33, %v828_v30  ;;  %v684_v46 = vld [vmem:[%s1346_s1 + $0xc8] sm:$0xf] }
  0x19   :  { %427 = vmatpush.bf16.msra.mxu1 %v741_v5  ;;  %440 = vmatpush.bf16.msra.mxu2 %v617_v6  ;;  %v895_v39 = vld [vmem:[%s1346_s1 + $0x1ec] sm:$0xf]  ;;  %v830_v40 = vld [vmem:[%s1346_s1 + $0x1f8] sm:$0xf0]  ;;  %v705_v45 = vor.u32 %v863_v34, %v702_v35  ;;  %v861_v47 = vld [vmem:[%s1346_s1 + $0xd4] sm:$0xf0] }
  0x1a   :  { %453 = vmatpush.bf16.msra.mxu3 %v745_v10  ;;  %v812_v48 = vld [vmem:[%s1346_s1 + $0x1c8] sm:$0xf]  ;;  %v833_v49 = vor.u32 %v895_v39, %v830_v40  ;;  %v893_v50 = vld [vmem:[%s1346_s1 + $0x1d4] sm:$0xf0]  ;;  %v859_v51 = vld [vmem:[%s1346_s1 + $0xcc] sm:$0xf]  ;;  %v1166_v53 = vpack.c.b16 %v83_v36, %v83_v36  ;;  %v1174_v56 = vpack.c.b16 %v84_v41, %v84_v41  ;;  %v685_v57 = vor.u32 %v861_v47, %v684_v46 }
  0x1b   :  { %v686_v52 = vld [vmem:[%s1346_s1 + $0xd8] sm:$0xf0]  ;;  %v891_v54 = vld [vmem:[%s1346_s1 + $0x1cc] sm:$0xf]  ;;  %v813_v58 = vor.u32 %v893_v50, %v812_v48  ;;  %v668_v60 = vld [vmem:[%s1346_s1 + $0xa8] sm:$0xf] }
  0x1c   :  { %415 = vmatpush.bf16.msra.mxu0 %v597_v16  ;;  %v814_v55 = vld [vmem:[%s1346_s1 + $0x1d8] sm:$0xf0]  ;;  %v689_v59 = vor.u32 %v859_v51, %v686_v52  ;;  %v857_v61 = vld [vmem:[%s1346_s1 + $0xb4] sm:$0xf0]  ;;  %v796_v62 = vld [vmem:[%s1346_s1 + $0x1a8] sm:$0xf] }
  0x1d   :  { %428 = vmatpush.bf16.msra.mxu1 %v725_v20  ;;  %441 = vmatpush.bf16.msra.mxu2 %v601_v21  ;;  %v817_v63 = vor.u32 %v891_v54, %v814_v55  ;;  %v889_v0 = vld [vmem:[%s1346_s1 + $0x1b4] sm:$0xf0]  ;;  %v855_v1 = vld [vmem:[%s1346_s1 + $0xac] sm:$0xf]  ;;  %v670_v2 = vld [vmem:[%s1346_s1 + $0xb8] sm:$0xf0]  ;;  %v669_v5 = vor.u32 %v857_v61, %v668_v60 }
  0x1e   :  { %454 = vmatpush.bf16.msra.mxu3 %v729_v25  ;;  %v887_v3 = vld [vmem:[%s1346_s1 + $0x1ac] sm:$0xf]  ;;  %v798_v4 = vld [vmem:[%s1346_s1 + $0x1b8] sm:$0xf0]  ;;  %v797_v6 = vor.u32 %v889_v0, %v796_v62  ;;  %v673_v7 = vor.u32 %v855_v1, %v670_v2  ;;  %v652_v8 = vld [vmem:[%s1346_s1 + $0x88] sm:$0xf] }
  0x1f   :  { %v853_v9 = vld [vmem:[%s1346_s1 + $0x94] sm:$0xf0]  ;;  %v780_v10 = vld [vmem:[%s1346_s1 + $0x188] sm:$0xf]  ;;  %v801_v11 = vor.u32 %v887_v3, %v798_v4  ;;  %v851_v13 = vld [vmem:[%s1346_s1 + $0x8c] sm:$0xf] }
  0x20   :  { %416 = vmatpush.bf16.msra.mxu0 %v581_v32  ;;  %v885_v12 = vld [vmem:[%s1346_s1 + $0x194] sm:$0xf0]  ;;  %v654_v14 = vld [vmem:[%s1346_s1 + $0x98] sm:$0xf0]  ;;  %v883_v15 = vld [vmem:[%s1346_s1 + $0x18c] sm:$0xf]  ;;  %v653_v17 = vor.u32 %v853_v9, %v652_v8 }
  0x21   :  { %429 = vmatpush.bf16.msra.mxu1 %v709_v37  ;;  %442 = vmatpush.bf16.msra.mxu2 %v585_v38  ;;  %v782_v16 = vld [vmem:[%s1346_s1 + $0x198] sm:$0xf0]  ;;  %v781_v18 = vor.u32 %v885_v12, %v780_v10  ;;  %v657_v19 = vor.u32 %v851_v13, %v654_v14  ;;  %v636_v20 = vld [vmem:[%s1346_s1 + $0x68] sm:$0xf]  ;;  %v849_v21 = vld [vmem:[%s1346_s1 + $0x74] sm:$0xf0] }
  0x22   :  { %455 = vmatpush.bf16.msra.mxu3 %v713_v42  ;;  %v764_v22 = vld [vmem:[%s1346_s1 + $0x168] sm:$0xf]  ;;  %v785_v23 = vor.u32 %v883_v15, %v782_v16  ;;  %v881_v24 = vld [vmem:[%s1346_s1 + $0x174] sm:$0xf0]  ;;  %v847_v25 = vld [vmem:[%s1346_s1 + $0x6c] sm:$0xf]  ;;  %v637_v29 = vor.u32 %v849_v21, %v636_v20 }
  0x23   :  { %417 = vmatmul.bf16.vlgmr.msra.gmra.mxu0 %v1166_v53  ;;  %v638_v26 = vld [vmem:[%s1346_s1 + $0x78] sm:$0xf0]  ;;  %v879_v27 = vld [vmem:[%s1346_s1 + $0x16c] sm:$0xf]  ;;  %v765_v30 = vor.u32 %v881_v24, %v764_v22  ;;  %v620_v32 = vld [vmem:[%s1346_s1 + $0x48] sm:$0xf] }
  0x24   :  { %461 = vmatpush.bf16.msrb.mxu0 %v701_v43  ;;  %443 = vmatmul.bf16.vlgmr.msra.gmra.mxu2 %v1166_v53  ;;  %v766_v28 = vld [vmem:[%s1346_s1 + $0x178] sm:$0xf0]  ;;  %v641_v31 = vor.u32 %v847_v25, %v638_v26  ;;  %v845_v33 = vld [vmem:[%s1346_s1 + $0x54] sm:$0xf0]  ;;  %v748_v34 = vld [vmem:[%s1346_s1 + $0x148] sm:$0xf] }
  0x25   :  { %474 = vmatpush.bf16.msrb.mxu1 %v829_v44  ;;  %487 = vmatpush.bf16.msrb.mxu2 %v705_v45  ;;  %v769_v35 = vor.u32 %v879_v27, %v766_v28  ;;  %v877_v36 = vld [vmem:[%s1346_s1 + $0x154] sm:$0xf0]  ;;  %v843_v37 = vld [vmem:[%s1346_s1 + $0x4c] sm:$0xf]  ;;  %v622_v38 = vld [vmem:[%s1346_s1 + $0x58] sm:$0xf0]  ;;  %v621_v41 = vor.u32 %v845_v33, %v620_v32 }
  0x26   :  { %500 = vmatpush.bf16.msrb.mxu3 %v833_v49  ;;  %430 = vmatmul.bf16.vlgmr.msra.gmra.mxu1 %v1174_v56  ;;  %v875_v39 = vld [vmem:[%s1346_s1 + $0x14c] sm:$0xf]  ;;  %v750_v40 = vld [vmem:[%s1346_s1 + $0x158] sm:$0xf0]  ;;  %v749_v42 = vor.u32 %v877_v36, %v748_v34  ;;  %v625_v43 = vor.u32 %v843_v37, %v622_v38  ;;  %v604_v44 = vld [vmem:[%s1346_s1 + $0x28] sm:$0xf] }
  0x27   :  { %456 = vmatmul.bf16.vlgmr.msra.gmra.mxu3 %v1174_v56  ;;  %v841_v45 = vld [vmem:[%s1346_s1 + $0x34] sm:$0xf0]  ;;  %v732_v46 = vld [vmem:[%s1346_s1 + $0x128] sm:$0xf]  ;;  %v753_v47 = vor.u32 %v875_v39, %v750_v40  ;;  %v839_v49 = vld [vmem:[%s1346_s1 + $0x2c] sm:$0xf] }
  0x28   :  { %462 = vmatpush.bf16.msrb.mxu0 %v685_v57  ;;  %v873_v48 = vld [vmem:[%s1346_s1 + $0x134] sm:$0xf0]  ;;  %v606_v50 = vld [vmem:[%s1346_s1 + $0x38] sm:$0xf0]  ;;  %v871_v51 = vld [vmem:[%s1346_s1 + $0x12c] sm:$0xf]  ;;  %v605_v54 = vor.u32 %v841_v45, %v604_v44 }
  0x29   :  { %475 = vmatpush.bf16.msrb.mxu1 %v813_v58  ;;  %488 = vmatpush.bf16.msrb.mxu2 %v689_v59  ;;  %v734_v52 = vld [vmem:[%s1346_s1 + $0x138] sm:$0xf0]  ;;  %v733_v55 = vor.u32 %v873_v48, %v732_v46  ;;  %v609_v57 = vor.u32 %v839_v49, %v606_v50  ;;  %v588_v58 = vld [vmem:[%s1346_s1 + $0x8] sm:$0xf]  ;;  %v837_v59 = vld [vmem:[%s1346_s1 + $0x14] sm:$0xf0] }
  0x2a   :  { %501 = vmatpush.bf16.msrb.mxu3 %v817_v63  ;;  %v716_v60 = vld [vmem:[%s1346_s1 + $0x108] sm:$0xf]  ;;  %v737_v61 = vor.u32 %v871_v51, %v734_v52  ;;  %v869_v62 = vld [vmem:[%s1346_s1 + $0x114] sm:$0xf0]  ;;  %v835_v63 = vld [vmem:[%s1346_s1 + $0xc] sm:$0xf]  ;;  %v589_v3 = vor.u32 %v837_v59, %v588_v58 }
  0x2b   :  { %v590_v0 = vld [vmem:[%s1346_s1 + $0x18] sm:$0xf0]  ;;  %v867_v1 = vld [vmem:[%s1346_s1 + $0x10c] sm:$0xf]  ;;  %v717_v4 = vor.u32 %v869_v62, %v716_v60  ;;  %v532_v49 = vld [vmem:[%s1348_s2] sm:$0xff] }
  0x2c   :  { %463 = vmatpush.bf16.msrb.mxu0 %v669_v5  ;;  %v718_v2 = vld [vmem:[%s1346_s1 + $0x118] sm:$0xf0]  ;;  %v593_v5 = vor.u32 %v835_v63, %v590_v0 }
  0x2d   :  { %476 = vmatpush.bf16.msrb.mxu1 %v797_v6  ;;  %489 = vmatpush.bf16.msrb.mxu2 %v673_v7  ;;  %v721_v6 = vor.u32 %v867_v1, %v718_v2 }
  0x2e   :  { %502 = vmatpush.bf16.msrb.mxu3 %v801_v11 }
  0x30   :  { %464 = vmatpush.bf16.msrb.mxu0 %v653_v17 }
  0x31   :  { %477 = vmatpush.bf16.msrb.mxu1 %v781_v18  ;;  %490 = vmatpush.bf16.msrb.mxu2 %v657_v19 }
  0x32   :  { %503 = vmatpush.bf16.msrb.mxu3 %v785_v23 }
  0x34   :  { %465 = vmatpush.bf16.msrb.mxu0 %v637_v29 }
  0x35   :  { %478 = vmatpush.bf16.msrb.mxu1 %v765_v30  ;;  %491 = vmatpush.bf16.msrb.mxu2 %v641_v31 }
  0x36   :  { %504 = vmatpush.bf16.msrb.mxu3 %v769_v35  ;;  %v903_v35 = vmov 0  }
  0x37   :  { %899 = vset.pattern.permute.xlu1 %v903_v35  ;;  %900 = vset.pattern.permute.xlu0 %v903_v35 }
  0x38   :  { %466 = vmatpush.bf16.msrb.mxu0 %v621_v41 }
  0x39   :  { %479 = vmatpush.bf16.msrb.mxu1 %v749_v42  ;;  %492 = vmatpush.bf16.msrb.mxu2 %v625_v43 }
  0x3a   :  { %505 = vmatpush.bf16.msrb.mxu3 %v753_v47 }
  0x3c   :  { %467 = vmatpush.bf16.msrb.mxu0 %v605_v54 }
  0x3d   :  { %480 = vmatpush.bf16.msrb.mxu1 %v733_v55  ;;  %493 = vmatpush.bf16.msrb.mxu2 %v609_v57  ;;  %v545_v55 = vld [vmem:[%s1349_s3] sm:$0xff] }
  0x3e   :  { %506 = vmatpush.bf16.msrb.mxu3 %v737_v61 }
  0x40   :  { %468 = vmatpush.bf16.msrb.mxu0 %v589_v3 }
  0x41   :  { %481 = vmatpush.bf16.msrb.mxu1 %v717_v4  ;;  %494 = vmatpush.bf16.msrb.mxu2 %v593_v5 }
  0x42   :  { %507 = vmatpush.bf16.msrb.mxu3 %v721_v6 }
  0x43   :  { %469 = vmatmul.bf16.vlgmr.msrb.gmra.mxu0 %v1166_v53 }
  0x44   :  { %482 = vmatmul.bf16.vlgmr.msrb.gmra.mxu1 %v1174_v56  ;;  %495 = vmatmul.bf16.vlgmr.msrb.gmra.mxu2 %v1166_v53 }
  0x45   :  { %508 = vmatmul.bf16.vlgmr.msrb.gmra.mxu3 %v1174_v56 }
  0xa0   :  { %v418_v7 = vpop.f32.mrf.mxu0 }
  0xa3   :  { %v431_v8 = vpop.f32.mrf.mxu1 }
  0xa4   :  { %v432_v17 = vadd.f32 %v431_v8, %v418_v7 }
  0xa6   :  { %v519_v25 = vmul.f32 %v432_v17, %v432_v17 }
  0xa7   :  { %v444_v9 = vpop.f32.mrf.mxu2 }
  0xa8   :  { %v420_v11 = vpop.f32.mrf.mxu0 }
  0xaa   :  { %v457_v10 = vpop.f32.mrf.mxu3 }
  0xab   :  { %v433_v12 = vpop.f32.mrf.mxu1  ;;  %v458_v18 = vadd.f32 %v457_v10, %v444_v9 }
  0xad   :  { %v513_v21 = vadd.f32 %v458_v18, %v432_v17  ;;  %v520_v26 = vmul.f32 %v458_v18, %v458_v18 }
  0xaf   :  { %v446_v13 = vpop.f32.mrf.mxu2  ;;  %v523_v31 = vadd.f32 %v520_v26, %v519_v25 }
  0xb2   :  { %v459_v14 = vpop.f32.mrf.mxu3 }
  0xc0   :  { %v470_v15 = vpop.f32.mrf.mxu0 }
  0xc1   :  { %v483_v16 = vpop.f32.mrf.mxu1 }
  0xc2   :  { %v484_v19 = vadd.f32 %v483_v16, %v470_v15 }
  0xc4   :  { %v514_v56 = vadd.f32 %v513_v21, %v484_v19  ;;  %v521_v28 = vmul.f32 %v484_v19, %v484_v19 }
  0xc6   :  { %v524_v33 = vadd.f32 %v523_v31, %v521_v28 }
  0xc7   :  { %v496_v20 = vpop.f32.mrf.mxu2 }
  0xc8   :  { %v509_v22 = vpop.f32.mrf.mxu3  ;;  %v472_v23 = vpop.f32.mrf.mxu0 }
  0xc9   :  { %v510_v53 = vadd.f32 %v509_v22, %v496_v20  ;;  %v485_v24 = vpop.f32.mrf.mxu1 }
  0xcb   :  { %v515_v27 = vadd.f32 %v514_v56, %v510_v53  ;;  %v522_v30 = vmul.f32 %v510_v53, %v510_v53 }
  0xcd   :  { %516 = vadd.xlane.f32.xlu0 %v515_v27  ;;  %v525_v34 = vadd.f32 %v524_v33, %v522_v30 }
  0xcf   :  { %v498_v29 = vpop.f32.mrf.mxu2 }
  0xd0   :  { %v511_v32 = vpop.f32.mrf.mxu3 }
  0xd5   :  { %526 = vadd.xlane.f32.xlu0 %v525_v34 }
 0x140   :  { %v517_v36 = vpop.xlane.xlu0 %516 }
 0x141   :  { %v518_v37 = vmul.f32 0.001953125, %v517_v36 }
 0x143   :  { %v529_v39 = vmul.f32 %v518_v37, %v518_v37 }
 0x148   :  { %v527_v38 = vpop.xlane.xlu0 %526 }
 0x149   :  { %v528_v40 = vmul.f32 0.001953125, %v527_v38 }
 0x14b   :  { %v530_v41 = vsub.f32 %v528_v40, %v529_v39 }
 0x14d   :  { %v531_v42 = vmax.f32 %v530_v41, 0.0 }
 0x14f   :  { %v533_v43 = vadd.f32 1e-05, %v531_v42 }
 0x151   :  { %901 = vrsqrt.f32 %v533_v43  ;;  %vm540_vm1 = vweird.f32 %v533_v43 }
 0x157   :  { %v902_v44 = vpop.eup %901 }
 0x158   :  { %v535_v45 = vmul.f32 %v902_v44, %v533_v43  ;;  %vm541_vm0 = vweird.f32 %v902_v44 }
 0x159   :  { %vm542_vm2 = vmor %vm540_vm1, %vm541_vm0 }
 0x15a   :  { %v536_v46 = vmul.f32 %v902_v44, %v535_v45 }
 0x15c   :  { %v537_v47 = vmul.f32 0.5, %v536_v46 }
 0x15e   :  { %v538_v48 = vsub.f32 1.5, %v537_v47 }
 0x160   :  { %v539_v50 = vmul.f32 %v902_v44, %v538_v48 }
 0x162   :  { %v543_v51 = vsel %vm542_vm2, %v902_v44, %v539_v50 }
 0x163   :  { %v544_v52 = vmul.f32 %v543_v51, %v532_v49 }
 0x165   :  { %550 = vperm.xlu1 %899, %v544_v52   ;;  %v546_v54 = vmul.f32 %v544_v52, %v518_v37 }
 0x167   :  { %v547_v57 = vsub.f32 %v545_v55, %v546_v54 }
 0x16d   :  { %559 = vperm.xlu1 %899, %v547_v57  }
 0x1d7   :  { %v551_v58 = vpop.permute.xlu1 %550 }
 0x1d8   :  { %v553_v59 = vmul.f32 %v551_v58, %v432_v17  ;;  %v554_v60 = vmul.f32 %v551_v58, %v458_v18  ;;  %v555_v61 = vmul.f32 %v551_v58, %v484_v19  ;;  %v556_v62 = vmul.f32 %v551_v58, %v510_v53 }
 0x1df   :  { %v560_v63 = vpop.permute.xlu1 %559 }
 0x1e0   :  { %v562_v0 = vadd.f32 %v560_v63, %v553_v59  ;;  %v563_v1 = vadd.f32 %v560_v63, %v554_v60  ;;  %v564_v2 = vadd.f32 %v560_v63, %v555_v61  ;;  %v565_v3 = vadd.f32 %v560_v63, %v556_v62 }
 0x1e2   :  { %v566_v4 = vmax.f32 %v562_v0, 0.0  ;;  %v567_v5 = vmax.f32 %v563_v1, 0.0  ;;  %v568_v6 = vmax.f32 %v564_v2, 0.0  ;;  %v569_v7 = vmax.f32 %v565_v3, 0.0 }
 0x1e4   :  { %570 = vst [vmem:[%s1350_s4] sm:$0xff] %v566_v4 }
 0x1e5   :  { %571 = vst [vmem:[%s1350_s4 + $0x8] sm:$0xff] %v567_v5 }
 0x1e6   :  { %572 = vst [vmem:[%s1350_s4 + $0x10] sm:$0xff] %v568_v6 }
 0x1e7   :  { %573 = vst [vmem:[%s1350_s4 + $0x18] sm:$0xff] %v569_v7 }

// kernel: resnet_forward.9
= control target key start
LH: loop header
LB: loop body
LE: loop exit
PB: predicated region body
PF: predicated region fallthrough
CT: control target
= control target key end

     0   :  { %s1071_s12 = smov 127   ;;  %s1072_s15 = smov 126   ;;  %vm1032_vm0 = vcmask 130048   ;;  %s2897_s0 = inlined_call_operand.vmem [shape: f32[8,2,18,18], index: 0, kind: input, shape index: {}]   ;;  %s2898_s1 = inlined_call_operand.vmem [shape: f32[8,2,16,16], index: 1, kind: output, shape index: {}]  }
   0x1   :  { %v1086_v0 = vld [vmem:[%s2897_s0 + $0x30] sm:$0xff]  ;;  %v1091_v1 = vld [vmem:[%s2897_s0 + $0x18] sm:$0xff]  ;;  %v1096_v2 = vld [vmem:[%s2897_s0] sm:$0xff] }
   0x2   :  { %2982 = vst [vmem:[#allocation2_spill] sm:$0xff] %v1086_v0  ;;  %80 = vrot.lane.b32.xlu2 %v1086_v0, %s1071_s12  ;;  %76 = vrot.lane.b32.xlu1 %v1091_v1, %s1071_s12  ;;  %v1107_v3 = vld [vmem:[%s2897_s0 + $0x38] sm:$0xff]  ;;  %v1112_v4 = vld [vmem:[%s2897_s0 + $0x20] sm:$0xff] }
   0x3   :  { %2983 = vst [vmem:[#allocation3_spill] sm:$0xff] %v1091_v1  ;;  %72 = vrot.lane.b32.xlu0 %v1096_v2, %s1071_s12  ;;  %v1117_v5 = vld [vmem:[%s2897_s0 + $0x8] sm:$0xff]  ;;  %v1128_v6 = vld [vmem:[%s2897_s0 + $0x60] sm:$0xff]  ;;  %v1133_v7 = vld [vmem:[%s2897_s0 + $0x50] sm:$0xff] }
   0x4   :  { %2984 = vst [vmem:[#allocation4_spill] sm:$0xff] %v1096_v2  ;;  %v1138_v8 = vld [vmem:[%s2897_s0 + $0x48] sm:$0xff]  ;;  %v1149_v9 = vld [vmem:[%s2897_s0 + $0x80] sm:$0xff]  ;;  %v1154_v10 = vld [vmem:[%s2897_s0 + $0x78] sm:$0xff] }
   0x5   :  { %2985 = vst [vmem:[#allocation5_spill] sm:$0xff] %v1107_v3  ;;  %v1159_v11 = vld [vmem:[%s2897_s0 + $0x68] sm:$0xff]  ;;  %v1175_v13 = vld [vmem:[%s2897_s0 + $0x98] sm:$0xff]  ;;  %v1180_v14 = vld [vmem:[%s2897_s0 + $0x90] sm:$0xff] }
   0x6   :  { %2986 = vst [vmem:[#allocation6_spill] sm:$0xff] %v1112_v4  ;;  %v1170_v12 = vld [vmem:[%s2897_s0 + $0xa8] sm:$0xff]  ;;  %v1196_v16 = vld [vmem:[%s2897_s0 + $0xc0] sm:$0xff]  ;;  %v1201_v17 = vld [vmem:[%s2897_s0 + $0xb0] sm:$0xff] }
   0x7   :  { %2987 = vst [vmem:[#allocation7_spill] sm:$0xff] %v1117_v5  ;;  %v1191_v15 = vld [vmem:[%s2897_s0 + $0xc8] sm:$0xff]  ;;  %v1212_v18 = vld [vmem:[%s2897_s0 + $0xf0] sm:$0xff]  ;;  %v1217_v19 = vld [vmem:[%s2897_s0 + $0xe0] sm:$0xff] }
   0x8   :  { %2988 = vst [vmem:[#allocation8_spill] sm:$0xff] %v1128_v6  ;;  %v1222_v20 = vld [vmem:[%s2897_s0 + $0xd8] sm:$0xff]  ;;  %v1233_v21 = vld [vmem:[%s2897_s0 + $0x110] sm:$0xff]  ;;  %v1238_v22 = vld [vmem:[%s2897_s0 + $0x108] sm:$0xff] }
   0x9   :  { %2989 = vst [vmem:[#allocation9_spill] sm:$0xff] %v1133_v7  ;;  %v1243_v23 = vld [vmem:[%s2897_s0 + $0xf8] sm:$0xff]  ;;  %v1259_v25 = vld [vmem:[%s2897_s0 + $0x128] sm:$0xff]  ;;  %v1264_v26 = vld [vmem:[%s2897_s0 + $0x120] sm:$0xff] }
   0xa   :  { %82 = vrot.lane.b32.xlu2 %v1107_v3, %s1071_s12  ;;  %78 = vrot.lane.b32.xlu1 %v1112_v4, %s1071_s12  ;;  %2990 = vst [vmem:[#allocation10_spill] sm:$0xff] %v1138_v8  ;;  %v1254_v24 = vld [vmem:[%s2897_s0 + $0x138] sm:$0xff]  ;;  %v1280_v28 = vld [vmem:[%s2897_s0 + $0x150] sm:$0xff] }
   0xb   :  { %74 = vrot.lane.b32.xlu0 %v1117_v5, %s1071_s12  ;;  %2991 = vst [vmem:[#allocation11_spill] sm:$0xff] %v1149_v9  ;;  %v1275_v27 = vld [vmem:[%s2897_s0 + $0x158] sm:$0xff]  ;;  %v1285_v29 = vld [vmem:[%s2897_s0 + $0x140] sm:$0xff]  ;;  %v1296_v30 = vld [vmem:[%s2897_s0 + $0x170] sm:$0xff] }
   0xc   :  { %2992 = vst [vmem:[#allocation12_spill] sm:$0xff] %v1154_v10  ;;  %v1301_v31 = vld [vmem:[%s2897_s0 + $0x168] sm:$0xff]  ;;  %v1447_v62 = vld [vmem:[%s2897_s0 + $0x31] sm:$0xff]  ;;  %v1452_v63 = vld [vmem:[%s2897_s0 + $0x19] sm:$0xff] }
   0xd   :  { %2993 = vst [vmem:[#allocation13_spill] sm:$0xff] %v1159_v11  ;;  %v1420_v56 = vld [vmem:[%s2897_s0 + $0x1] sm:$0xff]  ;;  %v1425_v57 = vld [vmem:[%s2897_s0 + $0x9] sm:$0xff] }
   0xe   :  { %2994 = vst [vmem:[#allocation14_spill] sm:$0xff] %v1180_v14  ;;  %v1442_v61 = vld [vmem:[%s2897_s0 + $0x21] sm:$0xff] }
   0xf   :  { %2995 = vst [vmem:[#allocation15_spill] sm:$0xff] %v1212_v18 }
  0x10   :  { %2996 = vst [vmem:[#allocation16_spill] sm:$0xff] %v1233_v21 }
  0x11   :  { %2997 = vst [vmem:[#allocation17_spill] sm:$0xff] %v1254_v24 }
  0x12   :  { %88 = vrot.lane.b32.xlu2 %v1128_v6, %s1071_s12  ;;  %86 = vrot.lane.b32.xlu1 %v1133_v7, %s1071_s12  ;;  %2998 = vst [vmem:[#allocation18_spill] sm:$0xff] %v1264_v26 }
  0x13   :  { %84 = vrot.lane.b32.xlu0 %v1138_v8, %s1071_s12  ;;  %2999 = vst [vmem:[#allocation19_spill] sm:$0xff] %v1275_v27 }
  0x14   :  { %3000 = vst [vmem:[#allocation20_spill] sm:$0xff] %v1285_v29 }
  0x15   :  { %3001 = vst [vmem:[#allocation21_spill] sm:$0xff] %v1296_v30 }
  0x16   :  { %3002 = vst [vmem:[#allocation22_spill] sm:$0xff] %v1301_v31 }
  0x17   :  { %3020 = vst [vmem:[#allocation40_spill] sm:$0xff] %v1420_v56 }
  0x18   :  { %3021 = vst [vmem:[#allocation41_spill] sm:$0xff] %v1425_v57 }
  0x19   :  { %3023 = vst [vmem:[#allocation43_spill] sm:$0xff] %v1442_v61 }
  0x1a   :  { %94 = vrot.lane.b32.xlu2 %v1149_v9, %s1071_s12  ;;  %92 = vrot.lane.b32.xlu1 %v1154_v10, %s1071_s12  ;;  %3024 = vst [vmem:[#allocation44_spill] sm:$0xff] %v1447_v62 }
  0x1b   :  { %90 = vrot.lane.b32.xlu0 %v1159_v11, %s1071_s12  ;;  %3025 = vst [vmem:[#allocation45_spill] sm:$0xff] %v1452_v63 }
  0x22   :  { %100 = vrot.lane.b32.xlu2 %v1170_v12, %s1071_s12  ;;  %98 = vrot.lane.b32.xlu1 %v1175_v13, %s1071_s12 }
  0x23   :  { %96 = vrot.lane.b32.xlu0 %v1180_v14, %s1071_s12 }
  0x2a   :  { %106 = vrot.lane.b32.xlu2 %v1191_v15, %s1071_s12  ;;  %104 = vrot.lane.b32.xlu1 %v1196_v16, %s1071_s12 }
  0x2b   :  { %102 = vrot.lane.b32.xlu0 %v1201_v17, %s1071_s12 }
  0x32   :  { %112 = vrot.lane.b32.xlu2 %v1212_v18, %s1071_s12  ;;  %110 = vrot.lane.b32.xlu1 %v1217_v19, %s1071_s12 }
  0x33   :  { %108 = vrot.lane.b32.xlu0 %v1222_v20, %s1071_s12 }
  0x3a   :  { %118 = vrot.lane.b32.xlu2 %v1233_v21, %s1071_s12  ;;  %116 = vrot.lane.b32.xlu1 %v1238_v22, %s1071_s12 }
  0x3b   :  { %114 = vrot.lane.b32.xlu0 %v1243_v23, %s1071_s12 }
  0x42   :  { %124 = vrot.lane.b32.xlu2 %v1254_v24, %s1071_s12  ;;  %122 = vrot.lane.b32.xlu1 %v1259_v25, %s1071_s12 }
  0x43   :  { %120 = vrot.lane.b32.xlu0 %v1264_v26, %s1071_s12 }
  0x4a   :  { %130 = vrot.lane.b32.xlu2 %v1275_v27, %s1071_s12  ;;  %128 = vrot.lane.b32.xlu1 %v1280_v28, %s1071_s12 }
  0x4b   :  { %126 = vrot.lane.b32.xlu0 %v1285_v29, %s1071_s12 }
  0x52   :  { %134 = vrot.lane.b32.xlu1 %v1296_v30, %s1071_s12  ;;  %200 = vrot.lane.b32.xlu2 %v1096_v2, %s1072_s15  ;;  %v1533_v2 = vld [vmem:[%s2897_s0 + $0x81] sm:$0xff] }
  0x53   :  { %132 = vrot.lane.b32.xlu0 %v1301_v31, %s1071_s12 }
  0x5a   :  { %204 = vrot.lane.b32.xlu1 %v1091_v1, %s1072_s15  ;;  %206 = vrot.lane.b32.xlu2 %v1112_v4, %s1072_s15  ;;  %v1506_v4 = vld [vmem:[%s2897_s0 + $0x61] sm:$0xff] }
  0x5b   :  { %202 = vrot.lane.b32.xlu0 %v1117_v5, %s1072_s15 }
  0x5c   :  { %v1315_v32 = vpop.permute.xlu2 %80 }
  0x5d   :  { %3003 = vst [vmem:[#allocation23_spill] sm:$0xff] %v1315_v32  ;;  %v1523_v32 = vld [vmem:[%s2897_s0 + $0x91] sm:$0xff] }
  0x5e   :  { %3037 = vst [vmem:[#allocation57_spill] sm:$0xff] %v1523_v32 }
  0x62   :  { %210 = vrot.lane.b32.xlu1 %v1107_v3, %s1072_s15  ;;  %212 = vrot.lane.b32.xlu2 %v1138_v8, %s1072_s15  ;;  %v1636_v3 = vld [vmem:[%s2897_s0 + $0x129] sm:$0xff] }
  0x63   :  { %208 = vrot.lane.b32.xlu0 %v1086_v0, %s1072_s15 }
  0x64   :  { %v1323_v33 = vpop.permute.xlu2 %82 }
  0x65   :  { %3004 = vst [vmem:[#allocation24_spill] sm:$0xff] %v1323_v33  ;;  %v1641_v33 = vld [vmem:[%s2897_s0 + $0x111] sm:$0xff] }
  0x6a   :  { %216 = vrot.lane.b32.xlu1 %v1128_v6, %s1072_s15  ;;  %218 = vrot.lane.b32.xlu2 %v1159_v11, %s1072_s15 }
  0x6b   :  { %214 = vrot.lane.b32.xlu0 %v1133_v7, %s1072_s15 }
  0x6c   :  { %v1331_v34 = vpop.permute.xlu2 %88 }
  0x6d   :  { %3005 = vst [vmem:[#allocation25_spill] sm:$0xff] %v1331_v34 }
  0x72   :  { %222 = vrot.lane.b32.xlu1 %v1149_v9, %s1072_s15  ;;  %224 = vrot.lane.b32.xlu2 %v1180_v14, %s1072_s15  ;;  %v1555_v9 = vld [vmem:[%s2897_s0 + $0xc1] sm:$0xff] }
  0x73   :  { %220 = vrot.lane.b32.xlu0 %v1154_v10, %s1072_s15  ;;  %v1474_v10 = vld [vmem:[%s2897_s0 + $0x51] sm:$0xff] }
  0x74   :  { %v1339_v35 = vpop.permute.xlu2 %94  ;;  %v1341_v36 = vpop.permute.xlu1 %76  ;;  %3029 = vst [vmem:[#allocation49_spill] sm:$0xff] %v1474_v10 }
  0x75   :  { %3006 = vst [vmem:[#allocation26_spill] sm:$0xff] %v1339_v35  ;;  %v1343_v37 = vpop.permute.xlu0 %72  ;;  %v1560_v35 = vld [vmem:[%s2897_s0 + $0xa9] sm:$0xff] }
  0x76   :  { %3007 = vst [vmem:[#allocation27_spill] sm:$0xff] %v1341_v36  ;;  %v1681_v36 = vld [vmem:[%s2897_s0 + $0x169] sm:$0xff] }
  0x77   :  { %3008 = vst [vmem:[#allocation28_spill] sm:$0xff] %v1343_v37 }
  0x78   :  { %3050 = vst [vmem:[#allocation70_spill] sm:$0xff] %v1681_v36 }
  0x7a   :  { %228 = vrot.lane.b32.xlu1 %v1170_v12, %s1072_s15  ;;  %230 = vrot.lane.b32.xlu2 %v1201_v17, %s1072_s15 }
  0x7b   :  { %226 = vrot.lane.b32.xlu0 %v1175_v13, %s1072_s15 }
  0x7c   :  { %v1351_v38 = vpop.permute.xlu2 %100  ;;  %v1353_v39 = vpop.permute.xlu1 %78 }
  0x7d   :  { %3009 = vst [vmem:[#allocation29_spill] sm:$0xff] %v1353_v39  ;;  %v1355_v40 = vpop.permute.xlu0 %74 }
  0x7e   :  { %3010 = vst [vmem:[#allocation30_spill] sm:$0xff] %v1355_v40  ;;  %v1550_v40 = vld [vmem:[%s2897_s0 + $0xb1] sm:$0xff] }
  0x82   :  { %234 = vrot.lane.b32.xlu1 %v1191_v15, %s1072_s15  ;;  %236 = vrot.lane.b32.xlu2 %v1222_v20, %s1072_s15 }
  0x83   :  { %232 = vrot.lane.b32.xlu0 %v1196_v16, %s1072_s15 }
  0x84   :  { %v1363_v41 = vpop.permute.xlu2 %106  ;;  %v1365_v42 = vpop.permute.xlu1 %86 }
  0x85   :  { %3011 = vst [vmem:[#allocation31_spill] sm:$0xff] %v1365_v42  ;;  %v1367_v43 = vpop.permute.xlu0 %84  ;;  %v1496_v42 = vld [vmem:[%s2897_s0 + $0x69] sm:$0xff] }
  0x86   :  { %3012 = vst [vmem:[#allocation32_spill] sm:$0xff] %v1367_v43 }
  0x87   :  { %3032 = vst [vmem:[#allocation52_spill] sm:$0xff] %v1496_v42 }
  0x8a   :  { %240 = vrot.lane.b32.xlu1 %v1212_v18, %s1072_s15  ;;  %242 = vrot.lane.b32.xlu2 %v1243_v23, %s1072_s15  ;;  %v1691_v18 = vld [vmem:[%s2897_s0 + $0x159] sm:$0xff] }
  0x8b   :  { %238 = vrot.lane.b32.xlu0 %v1217_v19, %s1072_s15 }
  0x8c   :  { %v1375_v44 = vpop.permute.xlu2 %112  ;;  %v1377_v45 = vpop.permute.xlu1 %92 }
  0x8d   :  { %3013 = vst [vmem:[#allocation33_spill] sm:$0xff] %v1375_v44  ;;  %v1379_v46 = vpop.permute.xlu0 %90 }
  0x8e   :  { %3014 = vst [vmem:[#allocation34_spill] sm:$0xff] %v1377_v45  ;;  %v1479_v45 = vld [vmem:[%s2897_s0 + $0x39] sm:$0xff] }
  0x8f   :  { %3015 = vst [vmem:[#allocation35_spill] sm:$0xff] %v1379_v46  ;;  %v1469_v46 = vld [vmem:[%s2897_s0 + $0x49] sm:$0xff] }
  0x90   :  { %3028 = vst [vmem:[#allocation48_spill] sm:$0xff] %v1469_v46 }
  0x92   :  { %246 = vrot.lane.b32.xlu1 %v1233_v21, %s1072_s15  ;;  %248 = vrot.lane.b32.xlu2 %v1264_v26, %s1072_s15  ;;  %v1666_v26 = vld [vmem:[%s2897_s0 + $0x139] sm:$0xff] }
  0x93   :  { %244 = vrot.lane.b32.xlu0 %v1238_v22, %s1072_s15 }
  0x94   :  { %v1387_v47 = vpop.permute.xlu2 %118  ;;  %v1389_v48 = vpop.permute.xlu1 %98 }
  0x95   :  { %3016 = vst [vmem:[#allocation36_spill] sm:$0xff] %v1387_v47  ;;  %v1391_v49 = vpop.permute.xlu0 %96  ;;  %v1656_v47 = vld [vmem:[%s2897_s0 + $0x141] sm:$0xff] }
  0x96   :  { %3017 = vst [vmem:[#allocation37_spill] sm:$0xff] %v1391_v49 }
  0x9a   :  { %252 = vrot.lane.b32.xlu1 %v1254_v24, %s1072_s15  ;;  %254 = vrot.lane.b32.xlu2 %v1285_v29, %s1072_s15  ;;  %v1604_v24 = vld [vmem:[%s2897_s0 + $0xf9] sm:$0xff] }
  0x9b   :  { %250 = vrot.lane.b32.xlu0 %v1259_v25, %s1072_s15 }
  0x9c   :  { %v1399_v50 = vpop.permute.xlu2 %124  ;;  %v1401_v51 = vpop.permute.xlu1 %104 }
  0x9d   :  { %3018 = vst [vmem:[#allocation38_spill] sm:$0xff] %v1399_v50  ;;  %v1403_v52 = vpop.permute.xlu0 %102  ;;  %v1609_v50 = vld [vmem:[%s2897_s0 + $0x109] sm:$0xff] }
  0xa2   :  { %258 = vrot.lane.b32.xlu1 %v1275_v27, %s1072_s15  ;;  %260 = vrot.lane.b32.xlu2 %v1301_v31, %s1072_s15  ;;  %v1582_v31 = vld [vmem:[%s2897_s0 + $0xe1] sm:$0xff] }
  0xa3   :  { %256 = vrot.lane.b32.xlu0 %v1280_v28, %s1072_s15 }
  0xa4   :  { %v1411_v53 = vpop.permute.xlu2 %130  ;;  %v1413_v54 = vpop.permute.xlu1 %110 }
  0xa5   :  { %3019 = vst [vmem:[#allocation39_spill] sm:$0xff] %v1411_v53  ;;  %v1415_v55 = vpop.permute.xlu0 %108  ;;  %v1577_v53 = vld [vmem:[%s2897_s0 + $0xd9] sm:$0xff] }
  0xaa   :  { %424 = vrot.lane.b32.xlu1 %v1420_v56, %s1071_s12  ;;  %426 = vrot.lane.b32.xlu2 %v1425_v57, %s1071_s12 }
  0xab   :  { %262 = vrot.lane.b32.xlu0 %v1296_v30, %s1072_s15 }
  0xac   :  { %v1433_v58 = vpop.permute.xlu1 %116  ;;  %v1435_v59 = vpop.permute.xlu2 %200 }
  0xad   :  { %3022 = vst [vmem:[#allocation42_spill] sm:$0xff] %v1435_v59  ;;  %v1437_v60 = vpop.permute.xlu0 %114  ;;  %v1528_v59 = vld [vmem:[%s2897_s0 + $0x99] sm:$0xff] }
  0xb2   :  { %430 = vrot.lane.b32.xlu1 %v1442_v61, %s1071_s12  ;;  %432 = vrot.lane.b32.xlu2 %v1447_v62, %s1071_s12 }
  0xb3   :  { %428 = vrot.lane.b32.xlu0 %v1452_v63, %s1071_s12 }
  0xb4   :  { %v1460_v14 = vpop.permute.xlu1 %122  ;;  %v1462_v49 = vpop.permute.xlu2 %206 }
  0xb5   :  { %3026 = vst [vmem:[#allocation46_spill] sm:$0xff] %v1462_v49  ;;  %v1464_v11 = vpop.permute.xlu0 %120  ;;  %v1501_v49 = vld [vmem:[%s2897_s0 + $0x79] sm:$0xff] }
  0xb6   :  { %3027 = vst [vmem:[#allocation47_spill] sm:$0xff] %v1464_v11 }
  0xb7   :  { %3033 = vst [vmem:[#allocation53_spill] sm:$0xff] %v1501_v49 }
  0xba   :  { %436 = vrot.lane.b32.xlu1 %v1469_v46, %s1071_s12  ;;  %438 = vrot.lane.b32.xlu2 %v1474_v10, %s1071_s12 }
  0xbb   :  { %434 = vrot.lane.b32.xlu0 %v1479_v45, %s1071_s12 }
  0xbc   :  { %v1487_v8 = vpop.permute.xlu1 %128  ;;  %v1489_v43 = vpop.permute.xlu2 %212 }
  0xbd   :  { %3030 = vst [vmem:[#allocation50_spill] sm:$0xff] %v1489_v43  ;;  %v1491_v7 = vpop.permute.xlu0 %126 }
  0xbe   :  { %3031 = vst [vmem:[#allocation51_spill] sm:$0xff] %v1491_v7  ;;  %v1631_v7 = vld [vmem:[%s2897_s0 + $0x121] sm:$0xff] }
  0xc2   :  { %442 = vrot.lane.b32.xlu1 %v1496_v42, %s1071_s12  ;;  %444 = vrot.lane.b32.xlu2 %v1501_v49, %s1071_s12 }
  0xc3   :  { %440 = vrot.lane.b32.xlu0 %v1506_v4, %s1071_s12 }
  0xc4   :  { %v1514_v43 = vpop.permute.xlu1 %134  ;;  %v1516_v39 = vpop.permute.xlu2 %218 }
  0xc5   :  { %3034 = vst [vmem:[#allocation54_spill] sm:$0xff] %v1514_v43  ;;  %v1518_v0 = vpop.permute.xlu0 %132 }
  0xc6   :  { %3035 = vst [vmem:[#allocation55_spill] sm:$0xff] %v1516_v39 }
  0xc7   :  { %3036 = vst [vmem:[#allocation56_spill] sm:$0xff] %v1518_v0  ;;  %v1587_v0 = vld [vmem:[%s2897_s0 + $0xc9] sm:$0xff] }
  0xca   :  { %448 = vrot.lane.b32.xlu1 %v1523_v32, %s1071_s12  ;;  %450 = vrot.lane.b32.xlu2 %v1528_v59, %s1071_s12 }
  0xcb   :  { %446 = vrot.lane.b32.xlu0 %v1533_v2, %s1071_s12 }
  0xcc   :  { %v1541_v39 = vpop.permute.xlu1 %204  ;;  %v1543_v37 = vpop.permute.xlu2 %224 }
  0xcd   :  { %3038 = vst [vmem:[#allocation58_spill] sm:$0xff] %v1541_v39  ;;  %v1545_v5 = vpop.permute.xlu0 %202  ;;  %v1661_v39 = vld [vmem:[%s2897_s0 + $0x151] sm:$0xff] }
  0xce   :  { %3039 = vst [vmem:[#allocation59_spill] sm:$0xff] %v1543_v37 }
  0xcf   :  { %3040 = vst [vmem:[#allocation60_spill] sm:$0xff] %v1545_v5 }
  0xd2   :  { %454 = vrot.lane.b32.xlu1 %v1550_v40, %s1071_s12  ;;  %456 = vrot.lane.b32.xlu2 %v1555_v9, %s1071_s12 }
  0xd3   :  { %452 = vrot.lane.b32.xlu0 %v1560_v35, %s1071_s12 }
  0xd4   :  { %v1568_v37 = vpop.permute.xlu1 %210  ;;  %v1570_v5 = vpop.permute.xlu2 %230 }
  0xd5   :  { %3041 = vst [vmem:[#allocation61_spill] sm:$0xff] %v1568_v37  ;;  %v1572_v27 = vpop.permute.xlu0 %208  ;;  %v1614_v37 = vld [vmem:[%s2897_s0 + $0xf1] sm:$0xff] }
  0xd6   :  { %3042 = vst [vmem:[#allocation62_spill] sm:$0xff] %v1572_v27 }
  0xda   :  { %460 = vrot.lane.b32.xlu1 %v1577_v53, %s1071_s12  ;;  %462 = vrot.lane.b32.xlu2 %v1582_v31, %s1071_s12 }
  0xdb   :  { %458 = vrot.lane.b32.xlu0 %v1587_v0, %s1071_s12 }
  0xdc   :  { %v1595_v27 = vpop.permute.xlu1 %216  ;;  %v1597_v6 = vpop.permute.xlu2 %236 }
  0xdd   :  { %3043 = vst [vmem:[#allocation63_spill] sm:$0xff] %v1595_v27  ;;  %v1599_v34 = vpop.permute.xlu0 %214 }
  0xde   :  { %3044 = vst [vmem:[#allocation64_spill] sm:$0xff] %v1599_v34 }
  0xe2   :  { %466 = vrot.lane.b32.xlu1 %v1604_v24, %s1071_s12  ;;  %468 = vrot.lane.b32.xlu2 %v1609_v50, %s1071_s12 }
  0xe3   :  { %464 = vrot.lane.b32.xlu0 %v1614_v37, %s1071_s12 }
  0xe4   :  { %v1622_v34 = vpop.permute.xlu1 %222  ;;  %v1624_v27 = vpop.permute.xlu2 %242 }
  0xe5   :  { %3045 = vst [vmem:[#allocation65_spill] sm:$0xff] %v1622_v34  ;;  %v1626_v29 = vpop.permute.xlu0 %220 }
  0xe6   :  { %3046 = vst [vmem:[#allocation66_spill] sm:$0xff] %v1624_v27  ;;  %v1686_v27 = vld [vmem:[%s2897_s0 + $0x171] sm:$0xff] }
  0xe7   :  { %3047 = vst [vmem:[#allocation67_spill] sm:$0xff] %v1626_v29 }
  0xe8   :  { %3051 = vst [vmem:[#allocation71_spill] sm:$0xff] %v1686_v27 }
  0xea   :  { %472 = vrot.lane.b32.xlu1 %v1631_v7, %s1071_s12  ;;  %474 = vrot.lane.b32.xlu2 %v1636_v3, %s1071_s12 }
  0xeb   :  { %470 = vrot.lane.b32.xlu0 %v1641_v33, %s1071_s12 }
  0xec   :  { %v1649_v29 = vpop.permute.xlu1 %228  ;;  %v1651_v34 = vpop.permute.xlu2 %248 }
  0xed   :  { %3048 = vst [vmem:[#allocation68_spill] sm:$0xff] %v1651_v34  ;;  %v227_v21 = vpop.permute.xlu0 %226 }
  0xf2   :  { %478 = vrot.lane.b32.xlu1 %v1656_v47, %s1071_s12  ;;  %480 = vrot.lane.b32.xlu2 %v1661_v39, %s1071_s12 }
  0xf3   :  { %476 = vrot.lane.b32.xlu0 %v1666_v26, %s1071_s12 }
  0xf4   :  { %v1674_v34 = vpop.permute.xlu1 %234  ;;  %v1676_v11 = vpop.permute.xlu2 %254 }
  0xf5   :  { %3049 = vst [vmem:[#allocation69_spill] sm:$0xff] %v1676_v11  ;;  %v233_v1 = vpop.permute.xlu0 %232 }
  0xfa   :  { %484 = vrot.lane.b32.xlu1 %v1681_v36, %s1071_s12  ;;  %486 = vrot.lane.b32.xlu2 %v1686_v27, %s1071_s12 }
  0xfb   :  { %482 = vrot.lane.b32.xlu0 %v1691_v18, %s1071_s12 }
  0xfc   :  { %v1699_v11 = vpop.permute.xlu1 %240  ;;  %v1701_v44 = vpop.permute.xlu2 %260 }
  0xfd   :  { %3052 = vst [vmem:[#allocation72_spill] sm:$0xff] %v1701_v44  ;;  %v239_v30 = vpop.permute.xlu0 %238 }
 0x102   :  { %554 = vrot.lane.b32.xlu1 %v1425_v57, %s1072_s15  ;;  %556 = vrot.lane.b32.xlu2 %v1452_v63, %s1072_s15 }
 0x103   :  { %552 = vrot.lane.b32.xlu0 %v1420_v56, %s1072_s15 }
 0x104   :  { %v1709_v36 = vpop.permute.xlu1 %246  ;;  %v1711_v27 = vpop.permute.xlu2 %426 }
 0x105   :  { %3053 = vst [vmem:[#allocation73_spill] sm:$0xff] %v1711_v27  ;;  %v245_v43 = vpop.permute.xlu0 %244 }
 0x10a   :  { %560 = vrot.lane.b32.xlu1 %v1447_v62, %s1072_s15  ;;  %562 = vrot.lane.b32.xlu2 %v1479_v45, %s1072_s15 }
 0x10b   :  { %558 = vrot.lane.b32.xlu0 %v1442_v61, %s1072_s15 }
 0x10c   :  { %v1719_v57 = vpop.permute.xlu1 %252  ;;  %v1721_v44 = vpop.permute.xlu2 %432 }
 0x10d   :  { %3054 = vst [vmem:[#allocation74_spill] sm:$0xff] %v1721_v44  ;;  %v251_v63 = vpop.permute.xlu0 %250 }
 0x112   :  { %566 = vrot.lane.b32.xlu1 %v1474_v10, %s1072_s15  ;;  %568 = vrot.lane.b32.xlu2 %v1506_v4, %s1072_s15 }
 0x113   :  { %564 = vrot.lane.b32.xlu0 %v1469_v46, %s1072_s15  ;;  %v181_v46 = vmax.f32 %v1175_v13, %v1389_v48  ;;  %v184_v13 = vmax.f32 %v1196_v16, %v1401_v51  ;;  %v187_v16 = vmax.f32 %v1217_v19, %v1413_v54  ;;  %v190_v19 = vmax.f32 %v1238_v22, %v1433_v58 }
 0x114   :  { %v1729_v62 = vpop.permute.xlu1 %258  ;;  %v1731_v27 = vpop.permute.xlu2 %438  ;;  %v183_v22 = vmax.f32 %v1201_v17, %v1403_v52 }
 0x115   :  { %3055 = vst [vmem:[#allocation75_spill] sm:$0xff] %v1731_v27  ;;  %v1733_v56 = vpop.permute.xlu0 %256  ;;  %v309_v27 = vmax.f32 %v181_v46, %v227_v21  ;;  %v312_v46 = vmax.f32 %v184_v13, %v233_v1  ;;  %v318_v54 = vmax.f32 %v190_v19, %v245_v43  ;;  %v193_v43 = vmax.f32 %v1259_v25, %v1460_v14 }
 0x11a   :  { %572 = vrot.lane.b32.xlu1 %v1501_v49, %s1072_s15  ;;  %574 = vrot.lane.b32.xlu2 %v1533_v2, %s1072_s15 }
 0x11b   :  { %570 = vrot.lane.b32.xlu0 %v1496_v42, %s1072_s15  ;;  %v373_v42 = vmax.f32 %v309_v27, %v1528_v59  ;;  %v376_v27 = vmax.f32 %v312_v46, %v1555_v9 }
 0x11c   :  { %v1741_v10 = vpop.permute.xlu1 %424  ;;  %v1743_v44 = vpop.permute.xlu2 %444 }
 0x11d   :  { %3056 = vst [vmem:[#allocation76_spill] sm:$0xff] %v1743_v44  ;;  %v1747_v61 = vpop.permute.xlu0 %262 }
 0x122   :  { %578 = vrot.lane.b32.xlu1 %v1528_v59, %s1072_s15  ;;  %580 = vrot.lane.b32.xlu2 %v1560_v35, %s1072_s15 }
 0x123   :  { %576 = vrot.lane.b32.xlu0 %v1523_v32, %s1072_s15 }
 0x124   :  { %v1756_v49 = vpop.permute.xlu1 %430  ;;  %v451_v44 = vpop.permute.xlu2 %450 }
 0x125   :  { %v1760_v48 = vmax.f32 %v373_v42, %v451_v44  ;;  %v1762_v21 = vpop.permute.xlu0 %428  ;;  %v315_v44 = vmax.f32 %v187_v16, %v239_v30 }
 0x127   :  { %3057 = vst [vmem:[#allocation77_spill] sm:$0xff] %v1760_v48 }
 0x12a   :  { %584 = vrot.lane.b32.xlu1 %v1555_v9, %s1072_s15  ;;  %586 = vrot.lane.b32.xlu2 %v1587_v0, %s1072_s15  ;;  %v379_v9 = vmax.f32 %v315_v44, %v1582_v31  ;;  %v182_v44 = vmax.f32 %v1170_v12, %v1351_v38  ;;  %v196_v38 = vmax.f32 %v1280_v28, %v1487_v8 }
 0x12b   :  { %582 = vrot.lane.b32.xlu0 %v1550_v40, %s1072_s15 }
 0x12c   :  { %v1771_v59 = vpop.permute.xlu1 %436  ;;  %v457_v32 = vpop.permute.xlu2 %456 }
 0x12d   :  { %v1775_v42 = vmax.f32 %v376_v27, %v457_v32  ;;  %v1777_v1 = vpop.permute.xlu0 %434 }
 0x12f   :  { %3058 = vst [vmem:[#allocation78_spill] sm:$0xff] %v1775_v42 }
 0x132   :  { %590 = vrot.lane.b32.xlu1 %v1582_v31, %s1072_s15  ;;  %592 = vrot.lane.b32.xlu2 %v1614_v37, %s1072_s15  ;;  %v382_v31 = vmax.f32 %v318_v54, %v1609_v50 }
 0x133   :  { %588 = vrot.lane.b32.xlu0 %v1577_v53, %s1072_s15 }
 0x134   :  { %v1786_v51 = vpop.permute.xlu1 %442  ;;  %v463_v13 = vpop.permute.xlu2 %462 }
 0x135   :  { %v1790_v32 = vmax.f32 %v379_v9, %v463_v13  ;;  %v1792_v30 = vpop.permute.xlu0 %440  ;;  %v311_v9 = vmax.f32 %v183_v22, %v1570_v5  ;;  %v321_v13 = vmax.f32 %v193_v43, %v251_v63 }
 0x137   :  { %3059 = vst [vmem:[#allocation79_spill] sm:$0xff] %v1790_v32  ;;  %v375_v14 = vmax.f32 %v311_v9, %v1550_v40  ;;  %v385_v17 = vmax.f32 %v321_v13, %v1636_v3  ;;  %v185_v40 = vmax.f32 %v1191_v15, %v1363_v41  ;;  %v3061_v41 = vld [vmem:[#allocation54_spill] sm:$0xff]  ;;  %v3064_v9 = vld [vmem:[#allocation15_spill] sm:$0xff] }
 0x13a   :  { %596 = vrot.lane.b32.xlu1 %v1609_v50, %s1072_s15  ;;  %598 = vrot.lane.b32.xlu2 %v1641_v33, %s1072_s15  ;;  %v310_v50 = vmax.f32 %v182_v44, %v1649_v29  ;;  %v186_v29 = vmax.f32 %v1222_v20, %v1415_v55  ;;  %v3062_v55 = vld [vmem:[#allocation21_spill] sm:$0xff] }
 0x13b   :  { %594 = vrot.lane.b32.xlu0 %v1604_v24, %s1072_s15  ;;  %v3063_v44 = vld [vmem:[#allocation33_spill] sm:$0xff] }
 0x13c   :  { %v1801_v46 = vpop.permute.xlu1 %448  ;;  %v469_v27 = vpop.permute.xlu2 %468  ;;  %v374_v5 = vmax.f32 %v310_v50, %v1560_v35  ;;  %v324_v35 = vmax.f32 %v196_v38, %v1733_v56  ;;  %v199_v56 = vmax.f32 %v3062_v55, %v3061_v41  ;;  %v3078_v55 = vld [vmem:[#allocation68_spill] sm:$0xff] }
 0x13d   :  { %v1807_v58 = vmax.f32 %v382_v31, %v469_v27  ;;  %v1809_v16 = vpop.permute.xlu0 %446  ;;  %v313_v31 = vmax.f32 %v185_v40, %v1674_v34  ;;  %v189_v34 = vmax.f32 %v1243_v23, %v1437_v60  ;;  %v1865_v23 = vld [vmem:[%s2897_s0 + $0x2] sm:$0xff] }
 0x13e   :  { %v388_v15 = vmax.f32 %v324_v35, %v1661_v39  ;;  %v3071_v40 = vld [vmem:[#allocation47_spill] sm:$0xff] }
 0x142   :  { %602 = vrot.lane.b32.xlu1 %v1636_v3, %s1072_s15  ;;  %604 = vrot.lane.b32.xlu2 %v1666_v26, %s1072_s15  ;;  %v314_v3 = vmax.f32 %v186_v29, %v1597_v6  ;;  %v377_v6 = vmax.f32 %v313_v31, %v1587_v0  ;;  %v327_v0 = vmax.f32 %v199_v56, %v1747_v61  ;;  %v3073_v31 = vld [vmem:[#allocation58_spill] sm:$0xff] }
 0x143   :  { %600 = vrot.lane.b32.xlu0 %v1631_v7, %s1072_s15 }
 0x144   :  { %v455_v25 = vpop.permute.xlu1 %454  ;;  %v475_v12 = vpop.permute.xlu2 %474  ;;  %v378_v8 = vmax.f32 %v314_v3, %v1577_v53  ;;  %v188_v53 = vmax.f32 %v3064_v9, %v3063_v44  ;;  %v3072_v3 = vld [vmem:[#allocation18_spill] sm:$0xff]  ;;  %v1905_v9 = vld [vmem:[%s2897_s0 + $0xa] sm:$0xff] }
 0x145   :  { %v1828_v52 = vmax.f32 %v375_v14, %v455_v25  ;;  %v1830_v63 = vmax.f32 %v385_v17, %v475_v12  ;;  %v453_v19 = vpop.permute.xlu0 %452  ;;  %v3067_v14 = vld [vmem:[#allocation71_spill] sm:$0xff]  ;;  %v192_v35 = vmax.f32 %v3072_v3, %v3071_v40  ;;  %3079 = vst [vmem:[#allocation15_spill] sm:$0xff] %v1905_v9 }
 0x146   :  { %v1834_v54 = vmax.f32 %v374_v5, %v453_v19  ;;  %v316_v60 = vmax.f32 %v188_v53, %v1699_v11  ;;  %v3068_v17 = vld [vmem:[#allocation27_spill] sm:$0xff]  ;;  %v3070_v5 = vld [vmem:[#allocation70_spill] sm:$0xff]  ;;  %v391_v29 = vmax.f32 %v327_v0, %v3067_v14  ;;  %v3080_v53 = vld [vmem:[#allocation45_spill] sm:$0xff] }
 0x147   :  { %v3069_v25 = vld [vmem:[#allocation3_spill] sm:$0xff]  ;;  %v320_v56 = vmax.f32 %v192_v35, %v3078_v55  ;;  %v3082_v0 = vld [vmem:[#allocation5_spill] sm:$0xff]  ;;  %v3086_v35 = vld [vmem:[#allocation38_spill] sm:$0xff] }
 0x148   :  { %3060 = vst [vmem:[#allocation80_spill] sm:$0xff] %v1834_v54  ;;  %v170_v12 = vmax.f32 %v3069_v25, %v3068_v17  ;;  %v380_v11 = vmax.f32 %v316_v60, %v1614_v37  ;;  %v1894_v37 = vld [vmem:[%s2897_s0 + $0x1a] sm:$0xff]  ;;  %v1949_v55 = vld [vmem:[%s2897_s0 + $0x32] sm:$0xff] }
 0x149   :  { %v3143_v54 = vld [vmem:[#allocation13_spill] sm:$0xff] }
 0x14a   :  { %608 = vrot.lane.b32.xlu1 %v1661_v39, %s1072_s15  ;;  %610 = vrot.lane.b32.xlu2 %v1691_v18, %s1072_s15  ;;  %v3066_v39 = vld [vmem:[#allocation66_spill] sm:$0xff] }
 0x14b   :  { %606 = vrot.lane.b32.xlu0 %v1656_v47, %s1072_s15  ;;  %v317_v50 = vmax.f32 %v189_v34, %v3066_v39  ;;  %v3076_v34 = vld [vmem:[#allocation16_spill] sm:$0xff] }
 0x14c   :  { %v461_v20 = vpop.permute.xlu1 %460  ;;  %v481_v28 = vpop.permute.xlu2 %480 }
 0x14d   :  { %v1852_v27 = vmax.f32 %v378_v8, %v461_v20  ;;  %v1854_v22 = vmax.f32 %v388_v15, %v481_v28  ;;  %v459_v43 = vpop.permute.xlu0 %458  ;;  %v381_v61 = vmax.f32 %v317_v50, %v1604_v24  ;;  %v298_v8 = vmax.f32 %v170_v12, %v3073_v31  ;;  %v3081_v50 = vld [vmem:[#allocation24_spill] sm:$0xff]  ;;  %v3087_v31 = vld [vmem:[#allocation17_spill] sm:$0xff] }
 0x14e   :  { %v1858_v13 = vmax.f32 %v377_v6, %v459_v43  ;;  %v3075_v6 = vld [vmem:[#allocation36_spill] sm:$0xff]  ;;  %v1899_v43 = vld [vmem:[%s2897_s0 + $0x22] sm:$0xff]  ;;  %v173_v60 = vmax.f32 %v3082_v0, %v3081_v50 }
 0x14f   :  { %v191_v41 = vmax.f32 %v3076_v34, %v3075_v6  ;;  %v362_v39 = vmax.f32 %v298_v8, %v3080_v53  ;;  %v194_v8 = vmax.f32 %v3087_v31, %v3086_v35  ;;  %v1943_v34 = vld [vmem:[%s2897_s0 + $0x4a] sm:$0xff] }
 0x150   :  { %3065 = vst [vmem:[#allocation54_spill] sm:$0xff] %v1858_v13  ;;  %v3091_v53 = vld [vmem:[#allocation8_spill] sm:$0xff] }
 0x151   :  { %v319_v44 = vmax.f32 %v191_v41, %v1709_v36  ;;  %v384_v36 = vmax.f32 %v320_v56, %v1631_v7  ;;  %v322_v41 = vmax.f32 %v194_v8, %v1719_v57  ;;  %v3098_v31 = vld [vmem:[#allocation72_spill] sm:$0xff] }
 0x152   :  { %614 = vrot.lane.b32.xlu1 %v3067_v14, %s1072_s15  ;;  %776 = vrot.lane.b32.xlu2 %v1865_v23, %s1071_s12  ;;  %v1915_v14 = vmax.f32 %v362_v39, %v1762_v21  ;;  %v3130_v21 = vld [vmem:[#allocation32_spill] sm:$0xff] }
 0x153   :  { %612 = vrot.lane.b32.xlu0 %v3070_v5, %s1072_s15  ;;  %v383_v12 = vmax.f32 %v319_v44, %v1641_v33  ;;  %v1938_v33 = vld [vmem:[%s2897_s0 + $0x3a] sm:$0xff] }
 0x154   :  { %v467_v38 = vpop.permute.xlu1 %466  ;;  %v487_v19 = vpop.permute.xlu2 %486  ;;  %v3090_v44 = vld [vmem:[#allocation25_spill] sm:$0xff] }
 0x155   :  { %v1882_v15 = vmax.f32 %v381_v61, %v467_v38  ;;  %v1884_v20 = vmax.f32 %v391_v29, %v487_v19  ;;  %v465_v28 = vpop.permute.xlu0 %464  ;;  %v3083_v61 = vld [vmem:[#allocation51_spill] sm:$0xff]  ;;  %v3084_v29 = vld [vmem:[#allocation20_spill] sm:$0xff]  ;;  %v3085_v19 = vld [vmem:[#allocation61_spill] sm:$0xff]  ;;  %v176_v39 = vmax.f32 %v3091_v53, %v3090_v44 }
 0x156   :  { %v1888_v24 = vmax.f32 %v380_v11, %v465_v28  ;;  %v195_v38 = vmax.f32 %v3084_v29, %v3083_v61  ;;  %v301_v11 = vmax.f32 %v173_v60, %v3085_v19  ;;  %v3089_v28 = vld [vmem:[#allocation69_spill] sm:$0xff]  ;;  %v3094_v61 = vld [vmem:[#allocation63_spill] sm:$0xff]  ;;  %v3099_v44 = vld [vmem:[#allocation26_spill] sm:$0xff] }
 0x157   :  { %3074 = vst [vmem:[#allocation21_spill] sm:$0xff] %v1884_v20  ;;  %v304_v29 = vmax.f32 %v176_v39, %v3094_v61  ;;  %v3100_v53 = vld [vmem:[#allocation11_spill] sm:$0xff] }
 0x158   :  { %3077 = vst [vmem:[#allocation33_spill] sm:$0xff] %v1888_v24  ;;  %v323_v6 = vmax.f32 %v195_v38, %v3089_v28  ;;  %v365_v56 = vmax.f32 %v301_v11, %v1479_v45  ;;  %v386_v45 = vmax.f32 %v322_v41, %v1666_v26  ;;  %v3095_v11 = vld [vmem:[#allocation39_spill] sm:$0xff]  ;;  %v1993_v41 = vld [vmem:[%s2897_s0 + $0x52] sm:$0xff]  ;;  %v179_v39 = vmax.f32 %v3100_v53, %v3099_v44  ;;  %v3109_v53 = vld [vmem:[#allocation42_spill] sm:$0xff] }
 0x159   :  { %v1982_v26 = vld [vmem:[%s2897_s0 + $0x62] sm:$0xff]  ;;  %v1987_v28 = vld [vmem:[%s2897_s0 + $0x6a] sm:$0xff] }
 0x15a   :  { %780 = vrot.lane.b32.xlu1 %v1894_v37, %s1071_s12  ;;  %782 = vrot.lane.b32.xlu2 %v1899_v43, %s1071_s12  ;;  %v1959_v50 = vmax.f32 %v365_v56, %v1777_v1  ;;  %v387_v57 = vmax.f32 %v323_v6, %v1656_v47  ;;  %v368_v56 = vmax.f32 %v304_v29, %v1506_v4  ;;  %v2291_v24 = vld [vmem:[%s2897_s0 + $0x16a] sm:$0xff] }
 0x15b   :  { %778 = vrot.lane.b32.xlu0 %v1905_v9, %s1071_s12 }
 0x15c   :  { %v473_v17 = vpop.permute.xlu1 %472  ;;  %v1920_v25 = vpop.permute.xlu2 %556 }
 0x15d   :  { %v1926_v40 = vmax.f32 %v384_v36, %v473_v17  ;;  %v471_v3 = vpop.permute.xlu0 %470  ;;  %v3092_v36 = vld [vmem:[#allocation56_spill] sm:$0xff]  ;;  %v3093_v17 = vld [vmem:[#allocation22_spill] sm:$0xff] }
 0x15e   :  { %v1932_v7 = vmax.f32 %v383_v12, %v471_v3  ;;  %v198_v12 = vmax.f32 %v3093_v17, %v3092_v36  ;;  %v3096_v3 = vld [vmem:[#allocation19_spill] sm:$0xff]  ;;  %v3104_v36 = vld [vmem:[#allocation28_spill] sm:$0xff] }
 0x15f   :  { %v197_v35 = vmax.f32 %v3096_v3, %v3095_v11  ;;  %v3105_v17 = vld [vmem:[#allocation4_spill] sm:$0xff] }
 0x160   :  { %3088 = vst [vmem:[#allocation66_spill] sm:$0xff] %v1932_v7  ;;  %v326_v8 = vmax.f32 %v198_v12, %v3098_v31  ;;  %v168_v12 = vmax.f32 %v3105_v17, %v3104_v36  ;;  %v3107_v11 = vld [vmem:[#allocation60_spill] sm:$0xff]  ;;  %v3113_v17 = vld [vmem:[#allocation23_spill] sm:$0xff] }
 0x161   :  { %v325_v6 = vmax.f32 %v197_v35, %v1729_v62  ;;  %v2005_v62 = vmax.f32 %v368_v56, %v1792_v30  ;;  %v3108_v35 = vld [vmem:[#allocation65_spill] sm:$0xff]  ;;  %v3128_v30 = vld [vmem:[#allocation74_spill] sm:$0xff] }
 0x162   :  { %786 = vrot.lane.b32.xlu1 %v1938_v33, %s1071_s12  ;;  %788 = vrot.lane.b32.xlu2 %v1943_v34, %s1071_s12  ;;  %v390_v4 = vmax.f32 %v326_v8, %v3070_v5  ;;  %v307_v31 = vmax.f32 %v179_v39, %v3108_v35  ;;  %v296_v5 = vmax.f32 %v168_v12, %v3109_v53  ;;  %v3111_v39 = vld [vmem:[#allocation41_spill] sm:$0xff]  ;;  %v3114_v12 = vld [vmem:[#allocation2_spill] sm:$0xff] }
 0x163   :  { %784 = vrot.lane.b32.xlu0 %v1949_v55, %s1071_s12  ;;  %3103 = vst [vmem:[#allocation27_spill] sm:$0xff] %v2005_v62 }
 0x164   :  { %v479_v0 = vpop.permute.xlu1 %478  ;;  %v1964_v60 = vpop.permute.xlu2 %562 }
 0x165   :  { %v1970_v38 = vmax.f32 %v387_v57, %v479_v0  ;;  %v477_v19 = vpop.permute.xlu0 %476  ;;  %v3101_v57 = vld [vmem:[#allocation30_spill] sm:$0xff]  ;;  %v3102_v0 = vld [vmem:[#allocation7_spill] sm:$0xff] }
 0x166   :  { %v1976_v47 = vmax.f32 %v386_v45, %v477_v19  ;;  %v169_v45 = vmax.f32 %v3102_v0, %v3101_v57  ;;  %v389_v19 = vmax.f32 %v325_v6, %v1691_v18  ;;  %v2027_v57 = vld [vmem:[%s2897_s0 + $0x82] sm:$0xff]  ;;  %v2032_v18 = vld [vmem:[%s2897_s0 + $0x92] sm:$0xff]  ;;  %v2037_v6 = vld [vmem:[%s2897_s0 + $0x7a] sm:$0xff] }
 0x168   :  { %3097 = vst [vmem:[#allocation71_spill] sm:$0xff] %v1976_v47  ;;  %v297_v3 = vmax.f32 %v169_v45, %v3107_v11  ;;  %v371_v45 = vmax.f32 %v307_v31, %v1533_v2  ;;  %v3118_v2 = vld [vmem:[#allocation29_spill] sm:$0xff] }
 0x16a   :  { %792 = vrot.lane.b32.xlu1 %v1982_v26, %s1071_s12  ;;  %794 = vrot.lane.b32.xlu2 %v1987_v28, %s1071_s12  ;;  %v361_v0 = vmax.f32 %v297_v3, %v3111_v39  ;;  %v2052_v35 = vmax.f32 %v371_v45, %v1809_v16  ;;  %v3119_v3 = vld [vmem:[#allocation6_spill] sm:$0xff] }
 0x16b   :  { %790 = vrot.lane.b32.xlu0 %v1993_v41, %s1071_s12  ;;  %v171_v31 = vmax.f32 %v3119_v3, %v3118_v2  ;;  %v3122_v39 = vld [vmem:[#allocation62_spill] sm:$0xff]  ;;  %v3124_v2 = vld [vmem:[#allocation44_spill] sm:$0xff] }
 0x16c   :  { %v485_v61 = vpop.permute.xlu1 %484  ;;  %v2012_v29 = vpop.permute.xlu2 %568  ;;  %3117 = vst [vmem:[#allocation18_spill] sm:$0xff] %v2052_v35  ;;  %v3146_v35 = vld [vmem:[#allocation67_spill] sm:$0xff] }
 0x16d   :  { %3106 = vst [vmem:[#allocation3_spill] sm:$0xff] %v2012_v29  ;;  %v2017_v44 = vmax.f32 %v390_v4, %v485_v61  ;;  %v483_v56 = vpop.permute.xlu0 %482  ;;  %v3112_v4 = vld [vmem:[#allocation40_spill] sm:$0xff]  ;;  %v172_v61 = vmax.f32 %v3114_v12, %v3113_v17  ;;  %v3123_v17 = vld [vmem:[#allocation46_spill] sm:$0xff] }
 0x16e   :  { %v2022_v8 = vmax.f32 %v389_v19, %v483_v56  ;;  %v360_v36 = vmax.f32 %v296_v5, %v3112_v4  ;;  %v3115_v19 = vld [vmem:[#allocation73_spill] sm:$0xff]  ;;  %v299_v12 = vmax.f32 %v171_v31, %v3123_v17  ;;  %v3125_v31 = vld [vmem:[#allocation43_spill] sm:$0xff] }
 0x16f   :  { %v2049_v11 = vmax.f32 %v361_v0, %v3115_v19  ;;  %v300_v4 = vmax.f32 %v172_v61, %v3122_v39  ;;  %v2083_v61 = vld [vmem:[%s2897_s0 + $0xb2] sm:$0xff]  ;;  %v2088_v19 = vld [vmem:[%s2897_s0 + $0x9a] sm:$0xff]  ;;  %v3126_v17 = vld [vmem:[#allocation31_spill] sm:$0xff] }
 0x170   :  { %3110 = vst [vmem:[#allocation70_spill] sm:$0xff] %v2022_v8  ;;  %v2059_v56 = vmax.f32 %v360_v36, %v1741_v10  ;;  %v2078_v36 = vld [vmem:[%s2897_s0 + $0xaa] sm:$0xff]  ;;  %v363_v39 = vmax.f32 %v299_v12, %v3125_v31  ;;  %v3127_v0 = vld [vmem:[#allocation9_spill] sm:$0xff]  ;;  %v3131_v10 = vld [vmem:[#allocation10_spill] sm:$0xff] }
 0x171   :  { %3116 = vst [vmem:[#allocation47_spill] sm:$0xff] %v2049_v11  ;;  %v364_v3 = vmax.f32 %v300_v4, %v3124_v2  ;;  %v175_v16 = vmax.f32 %v3127_v0, %v3126_v17  ;;  %v174_v4 = vmax.f32 %v3131_v10, %v3130_v21  ;;  %v3135_v17 = vld [vmem:[#allocation50_spill] sm:$0xff]  ;;  %v2125_v21 = vld [vmem:[%s2897_s0 + $0xca] sm:$0xff]  ;;  %v3136_v10 = vld [vmem:[#allocation49_spill] sm:$0xff] }
 0x172   :  { %798 = vrot.lane.b32.xlu1 %v2027_v57, %s1071_s12  ;;  %800 = vrot.lane.b32.xlu2 %v2032_v18, %s1071_s12  ;;  %v2106_v12 = vmax.f32 %v363_v39, %v1756_v49  ;;  %v3138_v0 = vld [vmem:[#allocation34_spill] sm:$0xff] }
 0x173   :  { %796 = vrot.lane.b32.xlu0 %v2037_v6, %s1071_s12  ;;  %v2099_v1 = vmax.f32 %v364_v3, %v3128_v30  ;;  %v3139_v30 = vld [vmem:[#allocation12_spill] sm:$0xff] }
 0x174   :  { %v2061_v53 = vpop.permute.xlu1 %554  ;;  %v2063_v5 = vpop.permute.xlu2 %574  ;;  %v178_v49 = vmax.f32 %v3139_v30, %v3138_v0  ;;  %v3150_v0 = vld [vmem:[#allocation76_spill] sm:$0xff] }
 0x175   :  { %3120 = vst [vmem:[#allocation58_spill] sm:$0xff] %v2061_v53  ;;  %v2070_v45 = vpop.permute.xlu0 %552  ;;  %v3134_v53 = vld [vmem:[#allocation64_spill] sm:$0xff] }
 0x176   :  { %3121 = vst [vmem:[#allocation36_spill] sm:$0xff] %v2063_v5  ;;  %v303_v11 = vmax.f32 %v175_v16, %v3134_v53  ;;  %v302_v5 = vmax.f32 %v174_v4, %v3135_v17  ;;  %v2130_v53 = vld [vmem:[%s2897_s0 + $0xda] sm:$0xff]  ;;  %v2135_v16 = vld [vmem:[%s2897_s0 + $0xc2] sm:$0xff]  ;;  %v3137_v4 = vld [vmem:[#allocation48_spill] sm:$0xff]  ;;  %v306_v29 = vmax.f32 %v178_v49, %v3146_v35 }
 0x177   :  { %3129 = vst [vmem:[#allocation16_spill] sm:$0xff] %v2099_v1  ;;  %v2177_v35 = vld [vmem:[%s2897_s0 + $0xfa] sm:$0xff] }
 0x178   :  { %v367_v39 = vmax.f32 %v303_v11, %v3136_v10  ;;  %v366_v17 = vmax.f32 %v302_v5, %v3137_v4  ;;  %v3148_v49 = vld [vmem:[#allocation53_spill] sm:$0xff] }
 0x17a   :  { %804 = vrot.lane.b32.xlu1 %v2078_v36, %s1071_s12  ;;  %806 = vrot.lane.b32.xlu2 %v2083_v61, %s1071_s12  ;;  %v2153_v5 = vmax.f32 %v366_v17, %v1771_v59  ;;  %v370_v17 = vmax.f32 %v306_v29, %v3148_v49  ;;  %v3152_v59 = vld [vmem:[#allocation37_spill] sm:$0xff] }
 0x17b   :  { %802 = vrot.lane.b32.xlu0 %v2088_v19, %s1071_s12  ;;  %v3157_v49 = vld [vmem:[#allocation57_spill] sm:$0xff] }
 0x17c   :  { %v2108_v2 = vpop.permute.xlu1 %560  ;;  %v2110_v31 = vpop.permute.xlu2 %580 }
 0x17d   :  { %3132 = vst [vmem:[#allocation68_spill] sm:$0xff] %v2108_v2  ;;  %v2117_v3 = vpop.permute.xlu0 %558  ;;  %v3140_v2 = vld [vmem:[#allocation75_spill] sm:$0xff] }
 0x17e   :  { %3133 = vst [vmem:[#allocation45_spill] sm:$0xff] %v2110_v31  ;;  %v2146_v1 = vmax.f32 %v367_v39, %v3140_v2  ;;  %v3142_v31 = vld [vmem:[#allocation35_spill] sm:$0xff]  ;;  %v2191_v2 = vmax.f32 %v370_v17, %v3150_v0 }
 0x17f   :  { %v177_v11 = vmax.f32 %v3143_v54, %v3142_v31  ;;  %v3147_v39 = vld [vmem:[#allocation55_spill] sm:$0xff]  ;;  %v2172_v54 = vld [vmem:[%s2897_s0 + $0xf2] sm:$0xff] }
 0x180   :  { %3141 = vst [vmem:[#allocation24_spill] sm:$0xff] %v2146_v1  ;;  %v2182_v31 = vld [vmem:[%s2897_s0 + $0xe2] sm:$0xff] }
 0x181   :  { %v305_v62 = vmax.f32 %v177_v11, %v3147_v39  ;;  %v3149_v11 = vld [vmem:[#allocation52_spill] sm:$0xff]  ;;  %3151 = vst [vmem:[#allocation20_spill] sm:$0xff] %v2191_v2 }
 0x182   :  { %810 = vrot.lane.b32.xlu1 %v2125_v21, %s1071_s12  ;;  %812 = vrot.lane.b32.xlu2 %v2130_v53, %s1071_s12 }
 0x183   :  { %808 = vrot.lane.b32.xlu0 %v2135_v16, %s1071_s12  ;;  %v369_v39 = vmax.f32 %v305_v62, %v3149_v11  ;;  %v3156_v11 = vld [vmem:[#allocation59_spill] sm:$0xff] }
 0x184   :  { %v2155_v10 = vpop.permute.xlu1 %566  ;;  %v2157_v4 = vpop.permute.xlu2 %586 }
 0x185   :  { %3144 = vst [vmem:[#allocation5_spill] sm:$0xff] %v2155_v10  ;;  %v2164_v30 = vpop.permute.xlu0 %564  ;;  %v3153_v10 = vld [vmem:[#allocation14_spill] sm:$0xff] }
 0x186   :  { %3145 = vst [vmem:[#allocation51_spill] sm:$0xff] %v2157_v4  ;;  %v180_v1 = vmax.f32 %v3153_v10, %v3152_v59  ;;  %v2198_v4 = vmax.f32 %v369_v39, %v1786_v51  ;;  %v2216_v51 = vld [vmem:[%s2897_s0 + $0x112] sm:$0xff]  ;;  %v2221_v59 = vld [vmem:[%s2897_s0 + $0x122] sm:$0xff]  ;;  %v2226_v39 = vld [vmem:[%s2897_s0 + $0x10a] sm:$0xff] }
 0x188   :  { %v308_v13 = vmax.f32 %v180_v1, %v3156_v11 }
 0x18a   :  { %816 = vrot.lane.b32.xlu1 %v2172_v54, %s1071_s12  ;;  %818 = vrot.lane.b32.xlu2 %v2177_v35, %s1071_s12  ;;  %v372_v1 = vmax.f32 %v308_v13, %v3157_v49 }
 0x18b   :  { %814 = vrot.lane.b32.xlu0 %v2182_v31, %s1071_s12 }
 0x18c   :  { %v2200_v29 = vpop.permute.xlu1 %572  ;;  %v2202_v62 = vpop.permute.xlu2 %592  ;;  %v2236_v11 = vmax.f32 %v372_v1, %v1801_v46  ;;  %v2253_v46 = vld [vmem:[%s2897_s0 + $0x13a] sm:$0xff]  ;;  %v2258_v1 = vld [vmem:[%s2897_s0 + $0x142] sm:$0xff] }
 0x18d   :  { %3154 = vst [vmem:[#allocation61_spill] sm:$0xff] %v2200_v29  ;;  %v2208_v17 = vpop.permute.xlu0 %570  ;;  %v2263_v29 = vld [vmem:[%s2897_s0 + $0x12a] sm:$0xff] }
 0x18e   :  { %3155 = vst [vmem:[#allocation38_spill] sm:$0xff] %v2202_v62  ;;  %v2286_v62 = vld [vmem:[%s2897_s0 + $0x15a] sm:$0xff] }
 0x18f   :  { %3162 = vst [vmem:[#allocation56_spill] sm:$0xff] %v2286_v62 }
 0x192   :  { %822 = vrot.lane.b32.xlu1 %v2216_v51, %s1071_s12  ;;  %824 = vrot.lane.b32.xlu2 %v2221_v59, %s1071_s12 }
 0x193   :  { %820 = vrot.lane.b32.xlu0 %v2226_v39, %s1071_s12 }
 0x194   :  { %v2238_v0 = vpop.permute.xlu1 %578  ;;  %v2240_v10 = vpop.permute.xlu2 %598 }
 0x195   :  { %3158 = vst [vmem:[#allocation17_spill] sm:$0xff] %v2238_v0  ;;  %v2246_v49 = vpop.permute.xlu0 %576  ;;  %v2296_v0 = vld [vmem:[%s2897_s0 + $0x152] sm:$0xff] }
 0x196   :  { %3159 = vst [vmem:[#allocation69_spill] sm:$0xff] %v2240_v10 }
 0x19a   :  { %828 = vrot.lane.b32.xlu1 %v2253_v46, %s1071_s12  ;;  %830 = vrot.lane.b32.xlu2 %v2258_v1, %s1071_s12 }
 0x19b   :  { %826 = vrot.lane.b32.xlu0 %v2263_v29, %s1071_s12 }
 0x19c   :  { %v2271_v13 = vpop.permute.xlu1 %584  ;;  %v2273_v2 = vpop.permute.xlu2 %604 }
 0x19d   :  { %3160 = vst [vmem:[#allocation25_spill] sm:$0xff] %v2271_v13  ;;  %v2279_v10 = vpop.permute.xlu0 %582  ;;  %v3166_v13 = vmax.f32 %v2059_v56, %v2070_v45 }
 0x19e   :  { %3161 = vst [vmem:[#allocation8_spill] sm:$0xff] %v2273_v2 }
 0x19f   :  { %v2331_v42 = vmax.f32 %v3166_v13, %v1865_v23 }
 0x1a2   :  { %834 = vrot.lane.b32.xlu1 %v2286_v62, %s1071_s12  ;;  %836 = vrot.lane.b32.xlu2 %v2291_v24, %s1071_s12  ;;  %v2319_v62 = vld [vmem:[%s2897_s0 + $0x172] sm:$0xff] }
 0x1a3   :  { %832 = vrot.lane.b32.xlu0 %v2296_v0, %s1071_s12  ;;  %3165 = vst [vmem:[#allocation39_spill] sm:$0xff] %v2319_v62 }
 0x1a4   :  { %v2304_v48 = vpop.permute.xlu1 %590  ;;  %v2306_v7 = vpop.permute.xlu2 %610 }
 0x1a5   :  { %3163 = vst [vmem:[#allocation22_spill] sm:$0xff] %v2304_v48  ;;  %v2312_v2 = vpop.permute.xlu0 %588 }
 0x1a6   :  { %3164 = vst [vmem:[#allocation63_spill] sm:$0xff] %v2306_v7 }
 0x1aa   :  { %904 = vrot.lane.b32.xlu1 %v1865_v23, %s1072_s15  ;;  %906 = vrot.lane.b32.xlu2 %v1905_v9, %s1072_s15  ;;  %v3168_v23 = vmax.f32 %v2106_v12, %v2117_v3 }
 0x1ab   :  { %838 = vrot.lane.b32.xlu0 %v2319_v62, %s1071_s12 }
 0x1ac   :  { %v2333_v47 = vpop.permute.xlu1 %596  ;;  %v2335_v48 = vpop.permute.xlu2 %776  ;;  %v2355_v56 = vmax.f32 %v3168_v23, %v1899_v43 }
 0x1ad   :  { %3167 = vst [vmem:[#allocation19_spill] sm:$0xff] %v2333_v47  ;;  %v2341_v8 = vpop.permute.xlu0 %594 }
 0x1b2   :  { %910 = vrot.lane.b32.xlu1 %v1899_v43, %s1072_s15  ;;  %912 = vrot.lane.b32.xlu2 %v1949_v55, %s1072_s15  ;;  %v3170_v43 = vmax.f32 %v2153_v5, %v2164_v30 }
 0x1b3   :  { %908 = vrot.lane.b32.xlu0 %v1894_v37, %s1072_s15 }
 0x1b4   :  { %v2357_v45 = vpop.permute.xlu1 %602  ;;  %v2359_v13 = vpop.permute.xlu2 %782  ;;  %v2379_v12 = vmax.f32 %v3170_v43, %v1943_v34 }
 0x1b5   :  { %3169 = vst [vmem:[#allocation72_spill] sm:$0xff] %v2357_v45  ;;  %v2365_v9 = vpop.permute.xlu0 %600 }
 0x1ba   :  { %916 = vrot.lane.b32.xlu1 %v1943_v34, %s1072_s15  ;;  %918 = vrot.lane.b32.xlu2 %v1993_v41, %s1072_s15  ;;  %v3172_v34 = vmax.f32 %v2198_v4, %v2208_v17  ;;  %v3175_v17 = vmax.f32 %v2236_v11, %v2246_v49 }
 0x1bb   :  { %914 = vrot.lane.b32.xlu0 %v1938_v33, %s1072_s15 }
 0x1bc   :  { %v2381_v3 = vpop.permute.xlu1 %608  ;;  %v2383_v23 = vpop.permute.xlu2 %788  ;;  %v2403_v5 = vmax.f32 %v3172_v34, %v1987_v28  ;;  %v2433_v34 = vmax.f32 %v3175_v17, %v2032_v18 }
 0x1bd   :  { %3171 = vst [vmem:[#allocation26_spill] sm:$0xff] %v2381_v3  ;;  %v2389_v47 = vpop.permute.xlu0 %606 }
 0x1c2   :  { %922 = vrot.lane.b32.xlu1 %v1987_v28, %s1072_s15  ;;  %924 = vrot.lane.b32.xlu2 %v2037_v6, %s1072_s15  ;;  %v3174_v28 = vmax.f32 %v1915_v14, %v1920_v25  ;;  %v3177_v25 = vmax.f32 %v1828_v52, %v2279_v10  ;;  %v3178_v52 = vld [vmem:[#allocation27_spill] sm:$0xff] }
 0x1c3   :  { %920 = vrot.lane.b32.xlu0 %v1982_v26, %s1072_s15 }
 0x1c4   :  { %v2405_v30 = vpop.permute.xlu1 %614  ;;  %v2407_v43 = vpop.permute.xlu2 %794  ;;  %v2427_v4 = vmax.f32 %v3174_v28, %v1894_v37  ;;  %v3176_v37 = vmax.f32 %v1959_v50, %v1964_v60 }
 0x1c5   :  { %3173 = vst [vmem:[#allocation11_spill] sm:$0xff] %v2405_v30  ;;  %v2413_v45 = vpop.permute.xlu0 %612 }
 0x1c6   :  { %v2455_v14 = vmax.f32 %v3176_v37, %v1938_v33  ;;  %v3179_v33 = vld [vmem:[#allocation3_spill] sm:$0xff] }
 0x1c7   :  { %v3180_v50 = vmax.f32 %v3178_v52, %v3179_v33  ;;  %v3186_v52 = vmax.f32 %v1882_v15, %v2341_v8  ;;  %v3189_v15 = vld [vmem:[#allocation80_spill] sm:$0xff]  ;;  %v3190_v8 = vld [vmem:[#allocation45_spill] sm:$0xff] }
 0x1c9   :  { %v2483_v60 = vmax.f32 %v3180_v50, %v1982_v26  ;;  %v3184_v26 = vld [vmem:[#allocation36_spill] sm:$0xff]  ;;  %v2517_v33 = vmax.f32 %v3186_v52, %v2177_v35 }
 0x1ca   :  { %928 = vrot.lane.b32.xlu1 %v2032_v18, %s1072_s15  ;;  %930 = vrot.lane.b32.xlu2 %v2088_v19, %s1072_s15  ;;  %v2461_v18 = vmax.f32 %v3177_v25, %v2083_v61 }
 0x1cb   :  { %926 = vrot.lane.b32.xlu0 %v2027_v57, %s1072_s15  ;;  %3187 = vst [vmem:[#allocation7_spill] sm:$0xff] %v2517_v33 }
 0x1cc   :  { %v2435_v32 = vpop.permute.xlu1 %780  ;;  %v2437_v7 = vpop.permute.xlu2 %800 }
 0x1cd   :  { %v2443_v20 = vpop.permute.xlu0 %778 }
 0x1d2   :  { %934 = vrot.lane.b32.xlu1 %v2083_v61, %s1072_s15  ;;  %936 = vrot.lane.b32.xlu2 %v2135_v16, %s1072_s15  ;;  %v3181_v61 = vmax.f32 %v1852_v27, %v2312_v2  ;;  %v3183_v27 = vld [vmem:[#allocation18_spill] sm:$0xff] }
 0x1d3   :  { %932 = vrot.lane.b32.xlu0 %v2078_v36, %s1072_s15 }
 0x1d4   :  { %v2463_v11 = vpop.permute.xlu1 %786  ;;  %v2465_v49 = vpop.permute.xlu2 %806  ;;  %v2489_v10 = vmax.f32 %v3181_v61, %v2130_v53 }
 0x1d5   :  { %v2471_v30 = vpop.permute.xlu0 %784 }
 0x1da   :  { %940 = vrot.lane.b32.xlu1 %v2130_v53, %s1072_s15  ;;  %942 = vrot.lane.b32.xlu2 %v2182_v31, %s1072_s15  ;;  %v3185_v53 = vmax.f32 %v3183_v27, %v3184_v26  ;;  %v3192_v27 = vmax.f32 %v1926_v40, %v2365_v9  ;;  %v3195_v9 = vld [vmem:[#allocation54_spill] sm:$0xff]  ;;  %v3196_v40 = vld [vmem:[#allocation51_spill] sm:$0xff] }
 0x1db   :  { %938 = vrot.lane.b32.xlu0 %v2125_v21, %s1072_s15 }
 0x1dc   :  { %v2491_v37 = vpop.permute.xlu1 %792  ;;  %v2493_v25 = vpop.permute.xlu2 %812  ;;  %v2511_v2 = vmax.f32 %v3185_v53, %v2027_v57  ;;  %v3191_v57 = vmax.f32 %v3189_v15, %v3190_v8  ;;  %v2545_v26 = vmax.f32 %v3192_v27, %v2221_v59  ;;  %v3198_v15 = vmax.f32 %v1970_v38, %v2389_v47  ;;  %v3201_v38 = vld [vmem:[#allocation56_spill] sm:$0xff]  ;;  %v3202_v47 = vld [vmem:[#allocation33_spill] sm:$0xff] }
 0x1dd   :  { %3182 = vst [vmem:[#allocation30_spill] sm:$0xff] %v2493_v25  ;;  %v2499_v3 = vpop.permute.xlu0 %790 }
 0x1de   :  { %3193 = vst [vmem:[#allocation4_spill] sm:$0xff] %v2545_v26  ;;  %v2573_v8 = vmax.f32 %v3198_v15, %v2258_v1 }
 0x1e0   :  { %3199 = vst [vmem:[#allocation65_spill] sm:$0xff] %v2573_v8 }
 0x1e2   :  { %946 = vrot.lane.b32.xlu1 %v2177_v35, %s1072_s15  ;;  %948 = vrot.lane.b32.xlu2 %v2226_v39, %s1072_s15  ;;  %v2539_v35 = vmax.f32 %v3191_v57, %v2078_v36  ;;  %v3197_v36 = vmax.f32 %v3195_v9, %v3196_v40  ;;  %v3205_v40 = vmax.f32 %v2017_v44, %v2413_v45  ;;  %v3212_v44 = vld [vmem:[#allocation66_spill] sm:$0xff]  ;;  %v3213_v45 = vld [vmem:[#allocation69_spill] sm:$0xff] }
 0x1e3   :  { %944 = vrot.lane.b32.xlu0 %v2172_v54, %s1072_s15 }
 0x1e4   :  { %v2519_v50 = vpop.permute.xlu1 %798  ;;  %v2521_v61 = vpop.permute.xlu2 %818 }
 0x1e5   :  { %3188 = vst [vmem:[#allocation28_spill] sm:$0xff] %v2521_v61  ;;  %v2527_v25 = vpop.permute.xlu0 %796 }
 0x1ea   :  { %952 = vrot.lane.b32.xlu1 %v2221_v59, %s1072_s15  ;;  %954 = vrot.lane.b32.xlu2 %v2263_v29, %s1072_s15  ;;  %v2567_v59 = vmax.f32 %v3197_v36, %v2125_v21  ;;  %v3203_v21 = vld [vmem:[#allocation38_spill] sm:$0xff]  ;;  %v2601_v36 = vmax.f32 %v3205_v40, %v2291_v24  ;;  %v3214_v40 = vmax.f32 %v3212_v44, %v3213_v45 }
 0x1eb   :  { %950 = vrot.lane.b32.xlu0 %v2216_v51, %s1072_s15 }
 0x1ec   :  { %v2547_v53 = vpop.permute.xlu1 %804  ;;  %v2549_v52 = vpop.permute.xlu2 %824  ;;  %3206 = vst [vmem:[#allocation41_spill] sm:$0xff] %v2601_v36  ;;  %v2622_v33 = vmax.f32 %v3214_v40, %v2216_v51 }
 0x1ed   :  { %3194 = vst [vmem:[#allocation60_spill] sm:$0xff] %v2549_v52  ;;  %v2555_v61 = vpop.permute.xlu0 %802 }
 0x1f2   :  { %958 = vrot.lane.b32.xlu1 %v2258_v1, %s1072_s15  ;;  %960 = vrot.lane.b32.xlu2 %v2296_v0, %s1072_s15  ;;  %v3204_v1 = vmax.f32 %v3202_v47, %v3203_v21  ;;  %v3209_v47 = vld [vmem:[#allocation47_spill] sm:$0xff]  ;;  %v3210_v21 = vld [vmem:[#allocation58_spill] sm:$0xff] }
 0x1f3   :  { %956 = vrot.lane.b32.xlu0 %v2253_v46, %s1072_s15 }
 0x1f4   :  { %v2575_v57 = vpop.permute.xlu1 %810  ;;  %v2577_v27 = vpop.permute.xlu2 %830  ;;  %v2595_v9 = vmax.f32 %v3204_v1, %v2172_v54  ;;  %v3208_v54 = vld [vmem:[#allocation15_spill] sm:$0xff]  ;;  %v3211_v1 = vmax.f32 %v3209_v47, %v3210_v21 }
 0x1f5   :  { %3200 = vst [vmem:[#allocation42_spill] sm:$0xff] %v2577_v27  ;;  %v2583_v52 = vpop.permute.xlu0 %808  ;;  %v3218_v21 = vld [vmem:[#allocation71_spill] sm:$0xff] }
 0x1f6   :  { %v713_v26 = vmax.f32 %v3211_v1, %v3208_v54  ;;  %v3219_v1 = vld [vmem:[#allocation8_spill] sm:$0xff] }
 0x1f7   :  { %v3220_v44 = vmax.f32 %v3218_v21, %v3219_v1 }
 0x1f9   :  { %v2643_v45 = vmax.f32 %v3220_v44, %v2253_v46 }
 0x1fa   :  { %964 = vrot.lane.b32.xlu1 %v2291_v24, %s1072_s15  ;;  %966 = vrot.lane.b32.xlu2 %v2319_v62, %s1072_s15  ;;  %v873_v24 = vmax.f32 %v713_v26, %v2443_v20  ;;  %v3215_v20 = vld [vmem:[#allocation16_spill] sm:$0xff] }
 0x1fb   :  { %962 = vrot.lane.b32.xlu0 %v3201_v38, %s1072_s15  ;;  %v3216_v26 = vld [vmem:[#allocation68_spill] sm:$0xff] }
 0x1fc   :  { %v2603_v15 = vpop.permute.xlu1 %816  ;;  %v2605_v17 = vpop.permute.xlu2 %836  ;;  %v3217_v51 = vmax.f32 %v3215_v20, %v3216_v26 }
 0x1fd   :  { %3207 = vst [vmem:[#allocation40_spill] sm:$0xff] %v2605_v17  ;;  %v2611_v8 = vpop.permute.xlu0 %814 }
 0x1fe   :  { %v716_v54 = vmax.f32 %v3217_v51, %v1949_v55  ;;  %v3221_v55 = vld [vmem:[#allocation24_spill] sm:$0xff]  ;;  %v3224_v51 = vld [vmem:[#allocation70_spill] sm:$0xff] }
 0x200   :  { %v876_v47 = vmax.f32 %v716_v54, %v2471_v30  ;;  %v3222_v30 = vld [vmem:[#allocation5_spill] sm:$0xff]  ;;  %v3225_v54 = vld [vmem:[#allocation63_spill] sm:$0xff] }
 0x201   :  { %v3223_v20 = vmax.f32 %v3221_v55, %v3222_v30  ;;  %v3226_v21 = vmax.f32 %v3224_v51, %v3225_v54  ;;  %v3230_v51 = vmax.f32 %v2331_v42, %v2335_v48 }
 0x203   :  { %v719_v46 = vmax.f32 %v3223_v20, %v1993_v41  ;;  %v2664_v1 = vmax.f32 %v3226_v21, %v3201_v38  ;;  %v3227_v41 = vld [vmem:[#allocation20_spill] sm:$0xff] }
 0x204   :  { %v2624_v62 = vpop.permute.xlu1 %822  ;;  %v907_v28 = vpop.permute.xlu2 %906 }
 0x205   :  { %v1001_v17 = vmax.f32 %v873_v24, %v907_v28  ;;  %v2628_v36 = vpop.permute.xlu0 %820  ;;  %v879_v26 = vmax.f32 %v719_v46, %v2499_v3  ;;  %v3228_v3 = vld [vmem:[#allocation61_spill] sm:$0xff] }
 0x206   :  { %v3229_v55 = vmax.f32 %v3227_v41, %v3228_v3  ;;  %v3234_v3 = vmax.f32 %v2355_v56, %v2359_v13  ;;  %v3237_v56 = vld [vmem:[#allocation25_spill] sm:$0xff] }
 0x207   :  { %1034 = vst.msk [vmem:[%s2898_s1 + $0x8] sm:$0xff] %vm1032_vm0, %v1001_v17 }
 0x208   :  { %v722_v38 = vmax.f32 %v3229_v55, %v2037_v6  ;;  %v3231_v6 = vld [vmem:[#allocation77_spill] sm:$0xff] }
 0x20a   :  { %v882_v30 = vmax.f32 %v722_v38, %v2527_v25  ;;  %v3232_v25 = vld [vmem:[#allocation17_spill] sm:$0xff] }
 0x20c   :  { %v2645_v28 = vpop.permute.xlu1 %828  ;;  %v913_v24 = vpop.permute.xlu2 %912 }
 0x20d   :  { %v1004_v17 = vmax.f32 %v876_v47, %v913_v24  ;;  %v2649_v27 = vpop.permute.xlu0 %826 }
 0x20f   :  { %1037 = vst.msk [vmem:[%s2898_s1 + $0x20] sm:$0xff] %vm1032_vm0, %v1004_v17 }
 0x214   :  { %v2666_v47 = vpop.permute.xlu1 %834  ;;  %v919_v44 = vpop.permute.xlu2 %918 }
 0x215   :  { %v901_v24 = vmax.f32 %v2664_v1, %v2666_v47  ;;  %v1007_v17 = vmax.f32 %v879_v26, %v919_v44  ;;  %v2670_v40 = vpop.permute.xlu0 %832  ;;  %v3233_v44 = vmax.f32 %v3231_v6, %v3232_v25 }
 0x217   :  { %1040 = vst.msk [vmem:[%s2898_s1 + $0x38] sm:$0xff] %vm1032_vm0, %v1007_v17  ;;  %v725_v17 = vmax.f32 %v3233_v44, %v2088_v19  ;;  %v3236_v19 = vld [vmem:[#allocation78_spill] sm:$0xff]  ;;  %v3240_v44 = vmax.f32 %v2455_v14, %v2463_v11 }
 0x218   :  { %v3238_v13 = vmax.f32 %v3236_v19, %v3237_v56 }
 0x219   :  { %v885_v48 = vmax.f32 %v725_v17, %v2555_v61 }
 0x21a   :  { %v728_v61 = vmax.f32 %v3238_v13, %v2135_v16  ;;  %v3241_v16 = vld [vmem:[#allocation79_spill] sm:$0xff]  ;;  %v3249_v13 = vmax.f32 %v2511_v2, %v2519_v50 }
 0x21c   :  { %v905_v20 = vpop.permute.xlu1 %904  ;;  %v925_v46 = vpop.permute.xlu2 %924 }
 0x21d   :  { %v1000_v26 = vmax.f32 %v3230_v51, %v905_v20  ;;  %v1010_v54 = vmax.f32 %v882_v30, %v925_v46  ;;  %v2684_v21 = vpop.permute.xlu0 %838  ;;  %v3235_v20 = vmax.f32 %v2427_v4, %v2435_v32  ;;  %v888_v32 = vmax.f32 %v728_v61, %v2583_v52 }
 0x21e   :  { %v3252_v61 = vmax.f32 %v2461_v18, %v2465_v49 }
 0x21f   :  { %1033 = vst.msk [vmem:[%s2898_s1] sm:$0xff] %vm1032_vm0, %v1000_v26  ;;  %v3239_v26 = vmax.f32 %v2379_v12, %v2383_v23  ;;  %v3242_v12 = vld [vmem:[#allocation22_spill] sm:$0xff] }
 0x220   :  { %1043 = vst.msk [vmem:[%s2898_s1 + $0x50] sm:$0xff] %vm1032_vm0, %v1010_v54  ;;  %v3243_v23 = vmax.f32 %v3241_v16, %v3242_v12  ;;  %v3258_v16 = vmax.f32 %v2567_v59, %v2575_v57 }
 0x222   :  { %v731_v52 = vmax.f32 %v3243_v23, %v2182_v31  ;;  %v3246_v31 = vld [vmem:[#allocation19_spill] sm:$0xff] }
 0x224   :  { %v911_v42 = vpop.permute.xlu1 %910  ;;  %v931_v41 = vpop.permute.xlu2 %930  ;;  %v891_v14 = vmax.f32 %v731_v52, %v2611_v8 }
 0x225   :  { %v1003_v55 = vmax.f32 %v3234_v3, %v911_v42  ;;  %v1013_v38 = vmax.f32 %v885_v48, %v931_v41  ;;  %v909_v30 = vpop.permute.xlu0 %908  ;;  %v3244_v42 = vmax.f32 %v2403_v5, %v2407_v43  ;;  %v3247_v5 = vmax.f32 %v1807_v58, %v3246_v31  ;;  %v3268_v31 = vld [vmem:[#allocation60_spill] sm:$0xff] }
 0x226   :  { %v1002_v46 = vmax.f32 %v3235_v20, %v909_v30  ;;  %v3248_v20 = vmax.f32 %v2433_v34, %v2437_v7  ;;  %v3250_v7 = vld [vmem:[#allocation72_spill] sm:$0xff] }
 0x227   :  { %1036 = vst.msk [vmem:[%s2898_s1 + $0x18] sm:$0xff] %vm1032_vm0, %v1003_v55  ;;  %v734_v43 = vmax.f32 %v3247_v5, %v2226_v39  ;;  %v3251_v39 = vmax.f32 %v1830_v63, %v3250_v7  ;;  %v3276_v7 = vld [vmem:[#allocation40_spill] sm:$0xff] }
 0x228   :  { %1046 = vst.msk [vmem:[%s2898_s1 + $0x68] sm:$0xff] %vm1032_vm0, %v1013_v38  ;;  %v3245_v38 = vmax.f32 %v2483_v60, %v2491_v37 }
 0x229   :  { %1035 = vst.msk [vmem:[%s2898_s1 + $0x10] sm:$0xff] %vm1032_vm0, %v1002_v46  ;;  %v894_v60 = vmax.f32 %v734_v43, %v2628_v36  ;;  %v737_v34 = vmax.f32 %v3251_v39, %v2263_v29  ;;  %v3254_v29 = vld [vmem:[#allocation26_spill] sm:$0xff]  ;;  %v3270_v43 = vmax.f32 %v2622_v33, %v2624_v62  ;;  %v3274_v62 = vmax.f32 %v2643_v45, %v2645_v28 }
 0x22a   :  { %v3255_v18 = vmax.f32 %v1854_v22, %v3254_v29 }
 0x22b   :  { %v897_v2 = vmax.f32 %v737_v34, %v2649_v27 }
 0x22c   :  { %v917_v4 = vpop.permute.xlu1 %916  ;;  %v937_v51 = vpop.permute.xlu2 %936  ;;  %v740_v49 = vmax.f32 %v3255_v18, %v2296_v0  ;;  %v3259_v0 = vld [vmem:[#allocation39_spill] sm:$0xff] }
 0x22d   :  { %v1006_v54 = vmax.f32 %v3239_v26, %v917_v4  ;;  %v1016_v6 = vmax.f32 %v888_v32, %v937_v51  ;;  %v915_v25 = vpop.permute.xlu0 %914  ;;  %v3253_v26 = vmax.f32 %v2539_v35, %v2547_v53 }
 0x22e   :  { %v1005_v17 = vmax.f32 %v3240_v44, %v915_v25  ;;  %v900_v35 = vmax.f32 %v740_v49, %v2670_v40  ;;  %v3260_v40 = vld [vmem:[#allocation21_spill] sm:$0xff] }
 0x22f   :  { %1039 = vst.msk [vmem:[%s2898_s1 + $0x30] sm:$0xff] %vm1032_vm0, %v1006_v54  ;;  %v3256_v54 = vld [vmem:[#allocation30_spill] sm:$0xff] }
 0x230   :  { %1049 = vst.msk [vmem:[%s2898_s1 + $0x80] sm:$0xff] %vm1032_vm0, %v1016_v6  ;;  %v3257_v6 = vmax.f32 %v2489_v10, %v3256_v54  ;;  %v3261_v10 = vld [vmem:[#allocation11_spill] sm:$0xff] }
 0x231   :  { %1038 = vst.msk [vmem:[%s2898_s1 + $0x28] sm:$0xff] %vm1032_vm0, %v1005_v17  ;;  %v3262_v12 = vmax.f32 %v3260_v40, %v3261_v10 }
 0x233   :  { %v743_v23 = vmax.f32 %v3262_v12, %v3259_v0 }
 0x234   :  { %v923_v11 = vpop.permute.xlu1 %922  ;;  %v943_v48 = vpop.permute.xlu2 %942 }
 0x235   :  { %v1009_v41 = vmax.f32 %v3244_v42, %v923_v11  ;;  %v1019_v3 = vmax.f32 %v891_v14, %v943_v48  ;;  %v921_v55 = vpop.permute.xlu0 %920  ;;  %v903_v59 = vmax.f32 %v743_v23, %v2684_v21  ;;  %v3263_v14 = vld [vmem:[#allocation7_spill] sm:$0xff]  ;;  %v3264_v11 = vld [vmem:[#allocation28_spill] sm:$0xff] }
 0x236   :  { %v1008_v30 = vmax.f32 %v3245_v38, %v921_v55  ;;  %v3265_v48 = vmax.f32 %v3263_v14, %v3264_v11  ;;  %v3266_v55 = vmax.f32 %v2595_v9, %v2603_v15 }
 0x237   :  { %1042 = vst.msk [vmem:[%s2898_s1 + $0x48] sm:$0xff] %vm1032_vm0, %v1009_v41 }
 0x238   :  { %1052 = vst.msk [vmem:[%s2898_s1 + $0x98] sm:$0xff] %vm1032_vm0, %v1019_v3 }
 0x239   :  { %1041 = vst.msk [vmem:[%s2898_s1 + $0x40] sm:$0xff] %vm1032_vm0, %v1008_v30  ;;  %v3267_v30 = vld [vmem:[#allocation4_spill] sm:$0xff] }
 0x23a   :  { %v3269_v9 = vmax.f32 %v3267_v30, %v3268_v31 }
 0x23c   :  { %v929_v37 = vpop.permute.xlu1 %928  ;;  %v949_v8 = vpop.permute.xlu2 %948 }
 0x23d   :  { %v1012_v46 = vmax.f32 %v3248_v20, %v929_v37  ;;  %v1022_v19 = vmax.f32 %v894_v60, %v949_v8  ;;  %v927_v56 = vpop.permute.xlu0 %926  ;;  %v3271_v8 = vld [vmem:[#allocation65_spill] sm:$0xff]  ;;  %v3272_v20 = vld [vmem:[#allocation42_spill] sm:$0xff] }
 0x23e   :  { %v1011_v58 = vmax.f32 %v3249_v13, %v927_v56 }
 0x23f   :  { %1045 = vst.msk [vmem:[%s2898_s1 + $0x60] sm:$0xff] %vm1032_vm0, %v1012_v46  ;;  %v3273_v46 = vmax.f32 %v3271_v8, %v3272_v20 }
 0x240   :  { %1055 = vst.msk [vmem:[%s2898_s1 + $0xb0] sm:$0xff] %vm1032_vm0, %v1022_v19 }
 0x241   :  { %1044 = vst.msk [vmem:[%s2898_s1 + $0x58] sm:$0xff] %vm1032_vm0, %v1011_v58  ;;  %v3275_v58 = vld [vmem:[#allocation41_spill] sm:$0xff] }
 0x242   :  { %v3277_v39 = vmax.f32 %v3275_v58, %v3276_v7 }
 0x244   :  { %v935_v50 = vpop.permute.xlu1 %934  ;;  %v955_v36 = vpop.permute.xlu2 %954 }
 0x245   :  { %v1015_v32 = vmax.f32 %v3252_v61, %v935_v50  ;;  %v1025_v4 = vmax.f32 %v897_v2, %v955_v36  ;;  %v933_v51 = vpop.permute.xlu0 %932 }
 0x246   :  { %v1014_v63 = vmax.f32 %v3253_v26, %v933_v51 }
 0x247   :  { %1048 = vst.msk [vmem:[%s2898_s1 + $0x78] sm:$0xff] %vm1032_vm0, %v1015_v32 }
 0x248   :  { %1058 = vst.msk [vmem:[%s2898_s1 + $0xc8] sm:$0xff] %vm1032_vm0, %v1025_v4 }
 0x249   :  { %1047 = vst.msk [vmem:[%s2898_s1 + $0x70] sm:$0xff] %vm1032_vm0, %v1014_v63 }
 0x24c   :  { %v941_v53 = vpop.permute.xlu1 %940  ;;  %v961_v27 = vpop.permute.xlu2 %960 }
 0x24d   :  { %v1018_v25 = vmax.f32 %v3257_v6, %v941_v53  ;;  %v1028_v44 = vmax.f32 %v900_v35, %v961_v27  ;;  %v939_v17 = vpop.permute.xlu0 %938 }
 0x24e   :  { %v1017_v22 = vmax.f32 %v3258_v16, %v939_v17 }
 0x24f   :  { %1051 = vst.msk [vmem:[%s2898_s1 + $0x90] sm:$0xff] %vm1032_vm0, %v1018_v25 }
 0x250   :  { %1061 = vst.msk [vmem:[%s2898_s1 + $0xe0] sm:$0xff] %vm1032_vm0, %v1028_v44 }
 0x251   :  { %1050 = vst.msk [vmem:[%s2898_s1 + $0x88] sm:$0xff] %vm1032_vm0, %v1017_v22 }
 0x254   :  { %v947_v57 = vpop.permute.xlu1 %946  ;;  %v967_v52 = vpop.permute.xlu2 %966 }
 0x255   :  { %v1021_v42 = vmax.f32 %v3265_v48, %v947_v57  ;;  %v1031_v41 = vmax.f32 %v903_v59, %v967_v52  ;;  %v945_v3 = vpop.permute.xlu0 %944 }
 0x256   :  { %v1020_v38 = vmax.f32 %v3266_v55, %v945_v3 }
 0x257   :  { %1054 = vst.msk [vmem:[%s2898_s1 + $0xa8] sm:$0xff] %vm1032_vm0, %v1021_v42 }
 0x258   :  { %1064 = vst.msk [vmem:[%s2898_s1 + $0xf8] sm:$0xff] %vm1032_vm0, %v1031_v41 }
 0x259   :  { %1053 = vst.msk [vmem:[%s2898_s1 + $0xa0] sm:$0xff] %vm1032_vm0, %v1020_v38 }
 0x25c   :  { %v953_v21 = vpop.permute.xlu1 %952 }
 0x25d   :  { %v1024_v15 = vmax.f32 %v3269_v9, %v953_v21  ;;  %v951_v5 = vpop.permute.xlu0 %950 }
 0x25e   :  { %v1023_v60 = vmax.f32 %v3270_v43, %v951_v5 }
 0x25f   :  { %1057 = vst.msk [vmem:[%s2898_s1 + $0xc0] sm:$0xff] %vm1032_vm0, %v1024_v15 }
 0x260   :  { %1056 = vst.msk [vmem:[%s2898_s1 + $0xb8] sm:$0xff] %vm1032_vm0, %v1023_v60 }
 0x264   :  { %v959_v37 = vpop.permute.xlu1 %958 }
 0x265   :  { %v1027_v19 = vmax.f32 %v3273_v46, %v959_v37  ;;  %v957_v56 = vpop.permute.xlu0 %956 }
 0x266   :  { %v1026_v33 = vmax.f32 %v3274_v62, %v957_v56 }
 0x267   :  { %1060 = vst.msk [vmem:[%s2898_s1 + $0xd8] sm:$0xff] %vm1032_vm0, %v1027_v19 }
 0x268   :  { %1059 = vst.msk [vmem:[%s2898_s1 + $0xd0] sm:$0xff] %vm1032_vm0, %v1026_v33 }
 0x26c   :  { %v965_v13 = vpop.permute.xlu1 %964 }
 0x26d   :  { %v1030_v34 = vmax.f32 %v3277_v39, %v965_v13  ;;  %v963_v2 = vpop.permute.xlu0 %962 }
 0x26e   :  { %v1029_v45 = vmax.f32 %v901_v24, %v963_v2 }
 0x26f   :  { %1063 = vst.msk [vmem:[%s2898_s1 + $0xf0] sm:$0xff] %vm1032_vm0, %v1030_v34 }
 0x270   :  { %1062 = vst.msk [vmem:[%s2898_s1 + $0xe8] sm:$0xff] %vm1032_vm0, %v1029_v45 }

// kernel: resnet_forward.10
= control target key start
LH: loop header
LB: loop body
LE: loop exit
PB: predicated region body
PF: predicated region fallthrough
CT: control target
= control target key end

     0   :  { %v184_v12 = vmov 0   ;;  %s246_s1 = inlined_call_operand.vmem [shape: bf16[128,128], index: 1, kind: input, shape index: {}]   ;;  %s247_s0 = inlined_call_operand.vmem [shape: bf16[8,128], index: 0, kind: input, shape index: {}]   ;;  %s248_s2 = inlined_call_operand.vmem [shape: f32[8,1], index: 2, kind: input, shape index: {}]   ;;  %s249_s3 = inlined_call_operand.vmem [shape: f32[8,1], index: 3, kind: input, shape index: {}]   ;;  %s250_s4 = inlined_call_operand.vmem [shape: f32[8,128], index: 4, kind: output, shape index: {}]  }
   0x1   :  { %v178_v0 = vld [vmem:[%s246_s1 + $0x38] sm:$0xff]  ;;  %v177_v1 = vld [vmem:[%s246_s1 + $0x30] sm:$0xff]  ;;  %v176_v2 = vld [vmem:[%s246_s1 + $0x28] sm:$0xff]  ;;  %180 = vset.pattern.permute.xlu1 %v184_v12  ;;  %181 = vset.pattern.permute.xlu0 %v184_v12 }
   0x2   :  { %82 = vmatpush.bf16.msra.mxu0 %v178_v0  ;;  %v175_v3 = vld [vmem:[%s246_s1 + $0x20] sm:$0xff]  ;;  %v174_v4 = vld [vmem:[%s246_s1 + $0x18] sm:$0xff]  ;;  %v173_v5 = vld [vmem:[%s246_s1 + $0x10] sm:$0xff] }
   0x3   :  { %v172_v6 = vld [vmem:[%s246_s1 + $0x8] sm:$0xff]  ;;  %v171_v7 = vld [vmem:[%s246_s1] sm:$0xff] }
   0x4   :  { %v17_v8 = vld [vmem:[%s247_s0] sm:$0xf] }
   0x5   :  { %v105_v26 = vld [vmem:[%s248_s2] sm:$0xff] }
   0x6   :  { %83 = vmatpush.bf16.msra.mxu0 %v177_v1  ;;  %v118_v31 = vld [vmem:[%s249_s3] sm:$0xff] }
   0xa   :  { %84 = vmatpush.bf16.msra.mxu0 %v176_v2 }
   0xe   :  { %85 = vmatpush.bf16.msra.mxu0 %v175_v3 }
  0x12   :  { %86 = vmatpush.bf16.msra.mxu0 %v174_v4 }
  0x16   :  { %87 = vmatpush.bf16.msra.mxu0 %v173_v5 }
  0x1a   :  { %88 = vmatpush.bf16.msra.mxu0 %v172_v6 }
  0x1e   :  { %89 = vmatpush.bf16.msra.mxu0 %v171_v7 }
  0x21   :  { %90 = vmatmul.bf16.vlgmr.msra.gmra.mxu0 %v17_v8 }
  0x9e   :  { %v91_v9 = vpop.f32.mrf.mxu0 }
  0x9f   :  { %95 = vadd.xlane.f32.xlu0 %v91_v9  ;;  %v98_v10 = vmul.f32 %v91_v9, %v91_v9 }
  0xa6   :  { %v93_v11 = vpop.f32.mrf.mxu0 }
  0xa7   :  { %99 = vadd.xlane.f32.xlu0 %v98_v10 }
 0x112   :  { %v96_v13 = vpop.xlane.xlu0 %95 }
 0x113   :  { %v97_v14 = vmul.f32 0.0078125, %v96_v13 }
 0x115   :  { %v102_v16 = vmul.f32 %v97_v14, %v97_v14 }
 0x11a   :  { %v100_v15 = vpop.xlane.xlu0 %99 }
 0x11b   :  { %v101_v17 = vmul.f32 0.0078125, %v100_v15 }
 0x11d   :  { %v103_v18 = vsub.f32 %v101_v17, %v102_v16 }
 0x11f   :  { %v104_v19 = vmax.f32 %v103_v18, 0.0 }
 0x121   :  { %v106_v20 = vadd.f32 1e-05, %v104_v19 }
 0x123   :  { %182 = vrsqrt.f32 %v106_v20  ;;  %vm113_vm1 = vweird.f32 %v106_v20 }
 0x129   :  { %v183_v21 = vpop.eup %182 }
 0x12a   :  { %v108_v22 = vmul.f32 %v183_v21, %v106_v20  ;;  %vm114_vm0 = vweird.f32 %v183_v21 }
 0x12b   :  { %vm115_vm2 = vmor %vm113_vm1, %vm114_vm0 }
 0x12c   :  { %v109_v23 = vmul.f32 %v183_v21, %v108_v22 }
 0x12e   :  { %v110_v24 = vmul.f32 0.5, %v109_v23 }
 0x130   :  { %v111_v25 = vsub.f32 1.5, %v110_v24 }
 0x132   :  { %v112_v27 = vmul.f32 %v183_v21, %v111_v25 }
 0x134   :  { %v116_v28 = vsel %vm115_vm2, %v183_v21, %v112_v27 }
 0x135   :  { %v117_v29 = vmul.f32 %v116_v28, %v105_v26 }
 0x137   :  { %123 = vperm.xlu1 %180, %v117_v29   ;;  %v119_v30 = vmul.f32 %v117_v29, %v97_v14 }
 0x139   :  { %v120_v32 = vsub.f32 %v118_v31, %v119_v30 }
 0x13f   :  { %129 = vperm.xlu1 %180, %v120_v32  }
 0x1a9   :  { %v124_v33 = vpop.permute.xlu1 %123 }
 0x1aa   :  { %v126_v34 = vmul.f32 %v124_v33, %v91_v9 }
 0x1b1   :  { %v130_v35 = vpop.permute.xlu1 %129 }
 0x1b2   :  { %v132_v36 = vadd.f32 %v130_v35, %v126_v34 }
 0x1b4   :  { %v133_v37 = vmax.f32 %v132_v36, 0.0 }
 0x1b6   :  { %134 = vst [vmem:[%s250_s4] sm:$0xff] %v133_v37 }

// kernel: resnet_forward.11
= control target key start
LH: loop header
LB: loop body
LE: loop exit
PB: predicated region body
PF: predicated region fallthrough
CT: control target
= control target key end

     0   :  { %v189_v12 = vmov 0   ;;  %s259_s1 = inlined_call_operand.vmem [shape: bf16[128,128], index: 1, kind: input, shape index: {}]   ;;  %s260_s0 = inlined_call_operand.vmem [shape: bf16[8,128], index: 0, kind: input, shape index: {}]   ;;  %s261_s2 = inlined_call_operand.vmem [shape: f32[8,1], index: 2, kind: input, shape index: {}]   ;;  %s262_s3 = inlined_call_operand.vmem [shape: f32[8,1], index: 3, kind: input, shape index: {}]   ;;  %s263_s4 = inlined_call_operand.vmem [shape: f32[8,128], index: 4, kind: input, shape index: {}]   ;;  %s264_s5 = inlined_call_operand.vmem [shape: f32[8,128], index: 5, kind: output, shape index: {}]  }
   0x1   :  { %v183_v0 = vld [vmem:[%s259_s1 + $0x38] sm:$0xff]  ;;  %v182_v1 = vld [vmem:[%s259_s1 + $0x30] sm:$0xff]  ;;  %v181_v2 = vld [vmem:[%s259_s1 + $0x28] sm:$0xff]  ;;  %185 = vset.pattern.permute.xlu1 %v189_v12  ;;  %186 = vset.pattern.permute.xlu0 %v189_v12 }
   0x2   :  { %85 = vmatpush.bf16.msra.mxu0 %v183_v0  ;;  %v180_v3 = vld [vmem:[%s259_s1 + $0x20] sm:$0xff]  ;;  %v179_v4 = vld [vmem:[%s259_s1 + $0x18] sm:$0xff]  ;;  %v178_v5 = vld [vmem:[%s259_s1 + $0x10] sm:$0xff] }
   0x3   :  { %v177_v6 = vld [vmem:[%s259_s1 + $0x8] sm:$0xff]  ;;  %v176_v7 = vld [vmem:[%s259_s1] sm:$0xff] }
   0x4   :  { %v20_v8 = vld [vmem:[%s260_s0] sm:$0xf] }
   0x5   :  { %v108_v26 = vld [vmem:[%s261_s2] sm:$0xff] }
   0x6   :  { %86 = vmatpush.bf16.msra.mxu0 %v182_v1  ;;  %v121_v31 = vld [vmem:[%s262_s3] sm:$0xff] }
   0x7   :  { %v136_v35 = vld [vmem:[%s263_s4] sm:$0xff] }
   0xa   :  { %87 = vmatpush.bf16.msra.mxu0 %v181_v2 }
   0xe   :  { %88 = vmatpush.bf16.msra.mxu0 %v180_v3 }
  0x12   :  { %89 = vmatpush.bf16.msra.mxu0 %v179_v4 }
  0x16   :  { %90 = vmatpush.bf16.msra.mxu0 %v178_v5 }
  0x1a   :  { %91 = vmatpush.bf16.msra.mxu0 %v177_v6 }
  0x1e   :  { %92 = vmatpush.bf16.msra.mxu0 %v176_v7 }
  0x21   :  { %93 = vmatmul.bf16.vlgmr.msra.gmra.mxu0 %v20_v8 }
  0x9e   :  { %v94_v9 = vpop.f32.mrf.mxu0 }
  0x9f   :  { %98 = vadd.xlane.f32.xlu0 %v94_v9  ;;  %v101_v10 = vmul.f32 %v94_v9, %v94_v9 }
  0xa6   :  { %v96_v11 = vpop.f32.mrf.mxu0 }
  0xa7   :  { %102 = vadd.xlane.f32.xlu0 %v101_v10 }
 0x112   :  { %v99_v13 = vpop.xlane.xlu0 %98 }
 0x113   :  { %v100_v14 = vmul.f32 0.0078125, %v99_v13 }
 0x115   :  { %v105_v16 = vmul.f32 %v100_v14, %v100_v14 }
 0x11a   :  { %v103_v15 = vpop.xlane.xlu0 %102 }
 0x11b   :  { %v104_v17 = vmul.f32 0.0078125, %v103_v15 }
 0x11d   :  { %v106_v18 = vsub.f32 %v104_v17, %v105_v16 }
 0x11f   :  { %v107_v19 = vmax.f32 %v106_v18, 0.0 }
 0x121   :  { %v109_v20 = vadd.f32 1e-05, %v107_v19 }
 0x123   :  { %187 = vrsqrt.f32 %v109_v20  ;;  %vm116_vm1 = vweird.f32 %v109_v20 }
 0x129   :  { %v188_v21 = vpop.eup %187 }
 0x12a   :  { %v111_v22 = vmul.f32 %v188_v21, %v109_v20  ;;  %vm117_vm0 = vweird.f32 %v188_v21 }
 0x12b   :  { %vm118_vm2 = vmor %vm116_vm1, %vm117_vm0 }
 0x12c   :  { %v112_v23 = vmul.f32 %v188_v21, %v111_v22 }
 0x12e   :  { %v113_v24 = vmul.f32 0.5, %v112_v23 }
 0x130   :  { %v114_v25 = vsub.f32 1.5, %v113_v24 }
 0x132   :  { %v115_v27 = vmul.f32 %v188_v21, %v114_v25 }
 0x134   :  { %v119_v28 = vsel %vm118_vm2, %v188_v21, %v115_v27 }
 0x135   :  { %v120_v29 = vmul.f32 %v119_v28, %v108_v26 }
 0x137   :  { %126 = vperm.xlu1 %185, %v120_v29   ;;  %v122_v30 = vmul.f32 %v120_v29, %v100_v14 }
 0x139   :  { %v123_v32 = vsub.f32 %v121_v31, %v122_v30 }
 0x13f   :  { %132 = vperm.xlu1 %185, %v123_v32  }
 0x1a9   :  { %v127_v33 = vpop.permute.xlu1 %126 }
 0x1aa   :  { %v129_v34 = vmul.f32 %v127_v33, %v94_v9 }
 0x1b1   :  { %v133_v36 = vpop.permute.xlu1 %132 }
 0x1b2   :  { %v135_v37 = vadd.f32 %v133_v36, %v129_v34 }
 0x1b4   :  { %v137_v38 = vadd.f32 %v136_v35, %v135_v37 }
 0x1b6   :  { %v138_v39 = vmax.f32 %v137_v38, 0.0 }
 0x1b8   :  { %139 = vst [vmem:[%s264_s5] sm:$0xff] %v138_v39 }

// kernel: resnet_forward.12
= control target key start
LH: loop header
LB: loop body
LE: loop exit
PB: predicated region body
PF: predicated region fallthrough
CT: control target
= control target key end

     0   :  { %vm103_vm0 = vcmask 261120   ;;  %v245_v17 = vmov 0   ;;  %s334_s1 = inlined_call_operand.vmem [shape: bf16[128,32], index: 1, kind: input, shape index: {}]   ;;  %s335_s0 = inlined_call_operand.vmem [shape: bf16[16,128], index: 0, kind: input, shape index: {}]   ;;  %s336_s2 = inlined_call_operand.vmem [shape: f32[16,1], index: 2, kind: input, shape index: {}]   ;;  %s337_s3 = inlined_call_operand.vmem [shape: f32[16,1], index: 3, kind: input, shape index: {}]   ;;  %s338_s4 = inlined_call_operand.vmem [shape: f32[16,32], index: 4, kind: output, shape index: {}]  }
   0x1   :  { %v236_v0 = vld [vmem:[%s334_s1 + $0x38] sm:$0xff]  ;;  %v235_v1 = vld [vmem:[%s334_s1 + $0x30] sm:$0xff]  ;;  %v234_v2 = vld [vmem:[%s334_s1 + $0x28] sm:$0xff]  ;;  %238 = vset.pattern.permute.xlu2 %v245_v17  ;;  %239 = vset.pattern.permute.xlu0 %v245_v17 }
   0x2   :  { %89 = vmatpush.bf16.msra.mxu0 %v236_v0  ;;  %v233_v3 = vld [vmem:[%s334_s1 + $0x20] sm:$0xff]  ;;  %v232_v4 = vld [vmem:[%s334_s1 + $0x18] sm:$0xff]  ;;  %v231_v5 = vld [vmem:[%s334_s1 + $0x10] sm:$0xff]  ;;  %240 = vset.pattern.permute.xlu1 %v245_v17 }
   0x3   :  { %v230_v6 = vld [vmem:[%s334_s1 + $0x8] sm:$0xff]  ;;  %v229_v7 = vld [vmem:[%s334_s1] sm:$0xff] }
   0x4   :  { %v228_v8 = vld [vmem:[%s335_s0] sm:$0xff]  ;;  %v129_v51 = vld [vmem:[%s336_s2 + $0x8] sm:$0xff] }
   0x5   :  { %v128_v41 = vld [vmem:[%s336_s2] sm:$0xff]  ;;  %v155_v55 = vld [vmem:[%s337_s3 + $0x8] sm:$0xff] }
   0x6   :  { %90 = vmatpush.bf16.msra.mxu0 %v235_v1  ;;  %v154_v47 = vld [vmem:[%s337_s3] sm:$0xff] }
   0xa   :  { %91 = vmatpush.bf16.msra.mxu0 %v234_v2 }
   0xe   :  { %92 = vmatpush.bf16.msra.mxu0 %v233_v3 }
  0x12   :  { %93 = vmatpush.bf16.msra.mxu0 %v232_v4 }
  0x16   :  { %94 = vmatpush.bf16.msra.mxu0 %v231_v5 }
  0x1a   :  { %95 = vmatpush.bf16.msra.mxu0 %v230_v6 }
  0x1e   :  { %96 = vmatpush.bf16.msra.mxu0 %v229_v7 }
  0x21   :  { %97 = vmatmul.bf16.vlgmr.msra.gmra.mxu0 %v228_v8 }
  0x9e   :  { %v298_v9 = vpop.f32.mrf.mxu0 }
  0x9f   :  { %v104_v10 = vsel %vm103_vm0, %v298_v9, 0.0  ;;  %v112_v11 = vmul.f32 %v298_v9, %v298_v9 }
  0xa0   :  { %105 = vadd.xlane.f32.xlu0 %v104_v10 }
  0xa1   :  { %v114_v12 = vsel %vm103_vm0, %v112_v11, 0.0 }
  0xa2   :  { %115 = vadd.xlane.f32.xlu1 %v114_v12 }
  0xa6   :  { %v305_v13 = vpop.f32.mrf.mxu0 }
  0xa7   :  { %v113_v14 = vmul.f32 %v305_v13, %v305_v13  ;;  %v107_v15 = vsel %vm103_vm0, %v305_v13, 0.0 }
  0xa8   :  { %108 = vadd.xlane.f32.xlu0 %v107_v15 }
  0xa9   :  { %v117_v16 = vsel %vm103_vm0, %v113_v14, 0.0 }
  0xaa   :  { %118 = vadd.xlane.f32.xlu1 %v117_v16 }
 0x113   :  { %v106_v18 = vpop.xlane.xlu0 %105 }
 0x114   :  { %v110_v19 = vmul.f32 0.03125, %v106_v18 }
 0x115   :  { %v116_v20 = vpop.xlane.xlu1 %115 }
 0x116   :  { %v122_v21 = vmul.f32 %v110_v19, %v110_v19  ;;  %v120_v22 = vmul.f32 0.03125, %v116_v20 }
 0x118   :  { %v124_v23 = vsub.f32 %v120_v22, %v122_v21 }
 0x11a   :  { %v126_v24 = vmax.f32 %v124_v23, 0.0 }
 0x11b   :  { %v109_v25 = vpop.xlane.xlu0 %108 }
 0x11c   :  { %v130_v26 = vadd.f32 1e-05, %v126_v24  ;;  %v111_v27 = vmul.f32 0.03125, %v109_v25 }
 0x11d   :  { %v119_v28 = vpop.xlane.xlu1 %118 }
 0x11e   :  { %241 = vrsqrt.f32 %v130_v26  ;;  %v123_v29 = vmul.f32 %v111_v27, %v111_v27  ;;  %v121_v30 = vmul.f32 0.03125, %v119_v28  ;;  %vm138_vm2 = vweird.f32 %v130_v26 }
 0x120   :  { %v125_v31 = vsub.f32 %v121_v30, %v123_v29 }
 0x122   :  { %v127_v32 = vmax.f32 %v125_v31, 0.0 }
 0x124   :  { %v242_v33 = vpop.eup %241  ;;  %v131_v34 = vadd.f32 1e-05, %v127_v32 }
 0x125   :  { %v133_v35 = vmul.f32 %v242_v33, %v130_v26  ;;  %vm139_vm1 = vweird.f32 %v242_v33 }
 0x126   :  { %243 = vrsqrt.f32 %v131_v34  ;;  %vm140_vm3 = vmor %vm138_vm2, %vm139_vm1  ;;  %vm148_vm5 = vweird.f32 %v131_v34 }
 0x127   :  { %v134_v36 = vmul.f32 %v242_v33, %v133_v35 }
 0x129   :  { %v135_v37 = vmul.f32 0.5, %v134_v36 }
 0x12b   :  { %v136_v38 = vsub.f32 1.5, %v135_v37 }
 0x12c   :  { %v244_v39 = vpop.eup %243 }
 0x12d   :  { %v143_v40 = vmul.f32 %v244_v39, %v131_v34  ;;  %v137_v42 = vmul.f32 %v242_v33, %v136_v38  ;;  %vm149_vm4 = vweird.f32 %v244_v39 }
 0x12e   :  { %vm150_vm6 = vmor %vm148_vm5, %vm149_vm4 }
 0x12f   :  { %v144_v43 = vmul.f32 %v244_v39, %v143_v40  ;;  %v141_v44 = vsel %vm140_vm3, %v242_v33, %v137_v42 }
 0x130   :  { %v152_v45 = vmul.f32 %v141_v44, %v128_v41 }
 0x131   :  { %v145_v46 = vmul.f32 0.5, %v144_v43 }
 0x132   :  { %162 = vperm.xlu2 %238, %v152_v45   ;;  %v156_v48 = vmul.f32 %v152_v45, %v110_v19 }
 0x133   :  { %v146_v49 = vsub.f32 1.5, %v145_v46 }
 0x134   :  { %v158_v50 = vsub.f32 %v154_v47, %v156_v48 }
 0x135   :  { %v147_v52 = vmul.f32 %v244_v39, %v146_v49 }
 0x136   :  { %174 = vperm.xlu0 %239, %v158_v50  }
 0x137   :  { %v151_v53 = vsel %vm150_vm6, %v244_v39, %v147_v52 }
 0x138   :  { %v153_v54 = vmul.f32 %v151_v53, %v129_v51 }
 0x13a   :  { %167 = vperm.xlu2 %238, %v153_v54   ;;  %v157_v56 = vmul.f32 %v153_v54, %v111_v27 }
 0x13c   :  { %v159_v57 = vsub.f32 %v155_v55, %v157_v56 }
 0x13e   :  { %179 = vperm.xlu1 %240, %v159_v57  }
 0x18c   :  { %v163_v58 = vpop.permute.xlu2 %162 }
 0x18d   :  { %v170_v59 = vmul.f32 %v163_v58, %v298_v9 }
 0x194   :  { %v168_v63 = vpop.permute.xlu2 %167 }
 0x195   :  { %v171_v0 = vmul.f32 %v168_v63, %v305_v13 }
 0x1a8   :  { %v175_v60 = vpop.permute.xlu0 %174 }
 0x1a9   :  { %v182_v61 = vadd.f32 %v175_v60, %v170_v59 }
 0x1ab   :  { %v184_v62 = vmax.f32 %v182_v61, 0.0 }
 0x1ad   :  { %186 = vst.msk [vmem:[%s338_s4] sm:$0xff] %vm103_vm0, %v184_v62 }
 0x1b0   :  { %v180_v1 = vpop.permute.xlu1 %179 }
 0x1b1   :  { %v183_v2 = vadd.f32 %v180_v1, %v171_v0 }
 0x1b3   :  { %v185_v3 = vmax.f32 %v183_v2, 0.0 }
 0x1b5   :  { %187 = vst.msk [vmem:[%s338_s4 + $0x8] sm:$0xff] %vm103_vm0, %v185_v3 }

// kernel: resnet_forward.13
= control target key start
LH: loop header
LB: loop body
LE: loop exit
PB: predicated region body
PF: predicated region fallthrough
CT: control target
= control target key end

     0   :  { %vm103_vm0 = vcmask 261120   ;;  %v243_v17 = vmov 0   ;;  %s332_s1 = inlined_call_operand.vmem [shape: bf16[128,32], index: 1, kind: input, shape index: {}]   ;;  %s333_s0 = inlined_call_operand.vmem [shape: bf16[16,128], index: 0, kind: input, shape index: {}]   ;;  %s334_s2 = inlined_call_operand.vmem [shape: f32[16,1], index: 2, kind: input, shape index: {}]   ;;  %s335_s3 = inlined_call_operand.vmem [shape: f32[16,1], index: 3, kind: input, shape index: {}]   ;;  %s336_s4 = inlined_call_operand.vmem [shape: f32[16,32], index: 4, kind: output, shape index: {}]  }
   0x1   :  { %v234_v0 = vld [vmem:[%s332_s1 + $0x38] sm:$0xff]  ;;  %v233_v1 = vld [vmem:[%s332_s1 + $0x30] sm:$0xff]  ;;  %v232_v2 = vld [vmem:[%s332_s1 + $0x28] sm:$0xff]  ;;  %236 = vset.pattern.permute.xlu2 %v243_v17  ;;  %237 = vset.pattern.permute.xlu0 %v243_v17 }
   0x2   :  { %89 = vmatpush.bf16.msra.mxu0 %v234_v0  ;;  %v231_v3 = vld [vmem:[%s332_s1 + $0x20] sm:$0xff]  ;;  %v230_v4 = vld [vmem:[%s332_s1 + $0x18] sm:$0xff]  ;;  %v229_v5 = vld [vmem:[%s332_s1 + $0x10] sm:$0xff]  ;;  %238 = vset.pattern.permute.xlu1 %v243_v17 }
   0x3   :  { %v228_v6 = vld [vmem:[%s332_s1 + $0x8] sm:$0xff]  ;;  %v227_v7 = vld [vmem:[%s332_s1] sm:$0xff] }
   0x4   :  { %v226_v8 = vld [vmem:[%s333_s0] sm:$0xff]  ;;  %v129_v51 = vld [vmem:[%s334_s2 + $0x8] sm:$0xff] }
   0x5   :  { %v128_v41 = vld [vmem:[%s334_s2] sm:$0xff]  ;;  %v155_v55 = vld [vmem:[%s335_s3 + $0x8] sm:$0xff] }
   0x6   :  { %90 = vmatpush.bf16.msra.mxu0 %v233_v1  ;;  %v154_v47 = vld [vmem:[%s335_s3] sm:$0xff] }
   0xa   :  { %91 = vmatpush.bf16.msra.mxu0 %v232_v2 }
   0xe   :  { %92 = vmatpush.bf16.msra.mxu0 %v231_v3 }
  0x12   :  { %93 = vmatpush.bf16.msra.mxu0 %v230_v4 }
  0x16   :  { %94 = vmatpush.bf16.msra.mxu0 %v229_v5 }
  0x1a   :  { %95 = vmatpush.bf16.msra.mxu0 %v228_v6 }
  0x1e   :  { %96 = vmatpush.bf16.msra.mxu0 %v227_v7 }
  0x21   :  { %97 = vmatmul.bf16.vlgmr.msra.gmra.mxu0 %v226_v8 }
  0x9e   :  { %v296_v9 = vpop.f32.mrf.mxu0 }
  0x9f   :  { %v104_v10 = vsel %vm103_vm0, %v296_v9, 0.0  ;;  %v112_v11 = vmul.f32 %v296_v9, %v296_v9 }
  0xa0   :  { %105 = vadd.xlane.f32.xlu0 %v104_v10 }
  0xa1   :  { %v114_v12 = vsel %vm103_vm0, %v112_v11, 0.0 }
  0xa2   :  { %115 = vadd.xlane.f32.xlu1 %v114_v12 }
  0xa6   :  { %v303_v13 = vpop.f32.mrf.mxu0 }
  0xa7   :  { %v113_v14 = vmul.f32 %v303_v13, %v303_v13  ;;  %v107_v15 = vsel %vm103_vm0, %v303_v13, 0.0 }
  0xa8   :  { %108 = vadd.xlane.f32.xlu0 %v107_v15 }
  0xa9   :  { %v117_v16 = vsel %vm103_vm0, %v113_v14, 0.0 }
  0xaa   :  { %118 = vadd.xlane.f32.xlu1 %v117_v16 }
 0x113   :  { %v106_v18 = vpop.xlane.xlu0 %105 }
 0x114   :  { %v110_v19 = vmul.f32 0.03125, %v106_v18 }
 0x115   :  { %v116_v20 = vpop.xlane.xlu1 %115 }
 0x116   :  { %v122_v21 = vmul.f32 %v110_v19, %v110_v19  ;;  %v120_v22 = vmul.f32 0.03125, %v116_v20 }
 0x118   :  { %v124_v23 = vsub.f32 %v120_v22, %v122_v21 }
 0x11a   :  { %v126_v24 = vmax.f32 %v124_v23, 0.0 }
 0x11b   :  { %v109_v25 = vpop.xlane.xlu0 %108 }
 0x11c   :  { %v130_v26 = vadd.f32 1e-05, %v126_v24  ;;  %v111_v27 = vmul.f32 0.03125, %v109_v25 }
 0x11d   :  { %v119_v28 = vpop.xlane.xlu1 %118 }
 0x11e   :  { %239 = vrsqrt.f32 %v130_v26  ;;  %v123_v29 = vmul.f32 %v111_v27, %v111_v27  ;;  %v121_v30 = vmul.f32 0.03125, %v119_v28  ;;  %vm138_vm2 = vweird.f32 %v130_v26 }
 0x120   :  { %v125_v31 = vsub.f32 %v121_v30, %v123_v29 }
 0x122   :  { %v127_v32 = vmax.f32 %v125_v31, 0.0 }
 0x124   :  { %v240_v33 = vpop.eup %239  ;;  %v131_v34 = vadd.f32 1e-05, %v127_v32 }
 0x125   :  { %v133_v35 = vmul.f32 %v240_v33, %v130_v26  ;;  %vm139_vm1 = vweird.f32 %v240_v33 }
 0x126   :  { %241 = vrsqrt.f32 %v131_v34  ;;  %vm140_vm3 = vmor %vm138_vm2, %vm139_vm1  ;;  %vm148_vm5 = vweird.f32 %v131_v34 }
 0x127   :  { %v134_v36 = vmul.f32 %v240_v33, %v133_v35 }
 0x129   :  { %v135_v37 = vmul.f32 0.5, %v134_v36 }
 0x12b   :  { %v136_v38 = vsub.f32 1.5, %v135_v37 }
 0x12c   :  { %v242_v39 = vpop.eup %241 }
 0x12d   :  { %v143_v40 = vmul.f32 %v242_v39, %v131_v34  ;;  %v137_v42 = vmul.f32 %v240_v33, %v136_v38  ;;  %vm149_vm4 = vweird.f32 %v242_v39 }
 0x12e   :  { %vm150_vm6 = vmor %vm148_vm5, %vm149_vm4 }
 0x12f   :  { %v144_v43 = vmul.f32 %v242_v39, %v143_v40  ;;  %v141_v44 = vsel %vm140_vm3, %v240_v33, %v137_v42 }
 0x130   :  { %v152_v45 = vmul.f32 %v141_v44, %v128_v41 }
 0x131   :  { %v145_v46 = vmul.f32 0.5, %v144_v43 }
 0x132   :  { %162 = vperm.xlu2 %236, %v152_v45   ;;  %v156_v48 = vmul.f32 %v152_v45, %v110_v19 }
 0x133   :  { %v146_v49 = vsub.f32 1.5, %v145_v46 }
 0x134   :  { %v158_v50 = vsub.f32 %v154_v47, %v156_v48 }
 0x135   :  { %v147_v52 = vmul.f32 %v242_v39, %v146_v49 }
 0x136   :  { %174 = vperm.xlu0 %237, %v158_v50  }
 0x137   :  { %v151_v53 = vsel %vm150_vm6, %v242_v39, %v147_v52 }
 0x138   :  { %v153_v54 = vmul.f32 %v151_v53, %v129_v51 }
 0x13a   :  { %167 = vperm.xlu2 %236, %v153_v54   ;;  %v157_v56 = vmul.f32 %v153_v54, %v111_v27 }
 0x13c   :  { %v159_v57 = vsub.f32 %v155_v55, %v157_v56 }
 0x13e   :  { %179 = vperm.xlu1 %238, %v159_v57  }
 0x18c   :  { %v163_v58 = vpop.permute.xlu2 %162 }
 0x18d   :  { %v170_v59 = vmul.f32 %v163_v58, %v296_v9 }
 0x194   :  { %v168_v62 = vpop.permute.xlu2 %167 }
 0x195   :  { %v171_v63 = vmul.f32 %v168_v62, %v303_v13 }
 0x1a8   :  { %v175_v60 = vpop.permute.xlu0 %174 }
 0x1a9   :  { %v182_v61 = vadd.f32 %v175_v60, %v170_v59 }
 0x1ab   :  { %184 = vst.msk [vmem:[%s336_s4] sm:$0xff] %vm103_vm0, %v182_v61 }
 0x1b0   :  { %v180_v0 = vpop.permute.xlu1 %179 }
 0x1b1   :  { %v183_v1 = vadd.f32 %v180_v0, %v171_v63 }
 0x1b3   :  { %185 = vst.msk [vmem:[%s336_s4 + $0x8] sm:$0xff] %vm103_vm0, %v183_v1 }

// kernel: resnet_forward.14
= control target key start
LH: loop header
LB: loop body
LE: loop exit
PB: predicated region body
PF: predicated region fallthrough
CT: control target
= control target key end

     0   :  { %vm188_vm0 = vcmask 261120   ;;  %v379_v34 = vmov 0   ;;  %s512_s1 = inlined_call_operand.vmem [shape: bf16[256,32], index: 1, kind: input, shape index: {}]   ;;  %s513_s0 = inlined_call_operand.vmem [shape: bf16[16,256], index: 0, kind: input, shape index: {}]   ;;  %s514_s2 = inlined_call_operand.vmem [shape: f32[16,1], index: 2, kind: input, shape index: {}]   ;;  %s515_s3 = inlined_call_operand.vmem [shape: f32[16,1], index: 3, kind: input, shape index: {}]   ;;  %s516_s4 = inlined_call_operand.vmem [shape: f32[16,32], index: 4, kind: input, shape index: {}]   ;;  %s517_s5 = inlined_call_operand.vmem [shape: f32[16,32], index: 5, kind: output, shape index: {}]  }
   0x1   :  { %v362_v0 = vld [vmem:[%s512_s1 + $0x38] sm:$0xff]  ;;  %v361_v2 = vld [vmem:[%s512_s1 + $0x30] sm:$0xff]  ;;  %v360_v4 = vld [vmem:[%s512_s1 + $0x28] sm:$0xff]  ;;  %372 = vset.pattern.permute.xlu2 %v379_v34  ;;  %373 = vset.pattern.permute.xlu0 %v379_v34 }
   0x2   :  { %v370_v1 = vld [vmem:[%s512_s1 + $0x78] sm:$0xff]  ;;  %160 = vmatpush.bf16.msra.mxu0 %v362_v0  ;;  %v369_v3 = vld [vmem:[%s512_s1 + $0x70] sm:$0xff]  ;;  %v368_v5 = vld [vmem:[%s512_s1 + $0x68] sm:$0xff]  ;;  %374 = vset.pattern.permute.xlu1 %v379_v34 }
   0x3   :  { %174 = vmatpush.bf16.msra.mxu1 %v370_v1  ;;  %v359_v6 = vld [vmem:[%s512_s1 + $0x20] sm:$0xff]  ;;  %v358_v8 = vld [vmem:[%s512_s1 + $0x18] sm:$0xff]  ;;  %v357_v10 = vld [vmem:[%s512_s1 + $0x10] sm:$0xff] }
   0x4   :  { %v367_v7 = vld [vmem:[%s512_s1 + $0x60] sm:$0xff]  ;;  %v366_v9 = vld [vmem:[%s512_s1 + $0x58] sm:$0xff]  ;;  %v365_v11 = vld [vmem:[%s512_s1 + $0x50] sm:$0xff] }
   0x5   :  { %v356_v12 = vld [vmem:[%s512_s1 + $0x8] sm:$0xff]  ;;  %v355_v14 = vld [vmem:[%s512_s1] sm:$0xff] }
   0x6   :  { %161 = vmatpush.bf16.msra.mxu0 %v361_v2  ;;  %v364_v13 = vld [vmem:[%s512_s1 + $0x48] sm:$0xff]  ;;  %v363_v15 = vld [vmem:[%s512_s1 + $0x40] sm:$0xff] }
   0x7   :  { %175 = vmatpush.bf16.msra.mxu1 %v369_v3  ;;  %v283_v16 = vld [vmem:[%s513_s0] sm:$0xf]  ;;  %v354_v17 = vld [vmem:[%s513_s0 + $0x4] sm:$0xf0]  ;;  %v353_v18 = vld [vmem:[%s513_s0 + $0x4] sm:$0xf] }
   0x8   :  { %v285_v19 = vld [vmem:[%s513_s0 + $0x8] sm:$0xf0]  ;;  %v284_v20 = vor.u32 %v354_v17, %v283_v16  ;;  %v213_v58 = vld [vmem:[%s514_s2] sm:$0xff] }
   0x9   :  { %v288_v21 = vor.u32 %v353_v18, %v285_v19  ;;  %v239_v0 = vld [vmem:[%s515_s3] sm:$0xff] }
   0xa   :  { %162 = vmatpush.bf16.msra.mxu0 %v360_v4  ;;  %v214_v4 = vld [vmem:[%s514_s2 + $0x8] sm:$0xff] }
   0xb   :  { %176 = vmatpush.bf16.msra.mxu1 %v368_v5 }
   0xe   :  { %163 = vmatpush.bf16.msra.mxu0 %v359_v6 }
   0xf   :  { %177 = vmatpush.bf16.msra.mxu1 %v367_v7 }
  0x12   :  { %164 = vmatpush.bf16.msra.mxu0 %v358_v8  ;;  %v240_v8 = vld [vmem:[%s515_s3 + $0x8] sm:$0xff] }
  0x13   :  { %178 = vmatpush.bf16.msra.mxu1 %v366_v9 }
  0x16   :  { %165 = vmatpush.bf16.msra.mxu0 %v357_v10 }
  0x17   :  { %179 = vmatpush.bf16.msra.mxu1 %v365_v11 }
  0x1a   :  { %166 = vmatpush.bf16.msra.mxu0 %v356_v12 }
  0x1b   :  { %180 = vmatpush.bf16.msra.mxu1 %v364_v13  ;;  %v269_v13 = vld [vmem:[%s516_s4] sm:$0xff] }
  0x1e   :  { %167 = vmatpush.bf16.msra.mxu0 %v355_v14 }
  0x1f   :  { %181 = vmatpush.bf16.msra.mxu1 %v363_v15 }
  0x21   :  { %168 = vmatmul.bf16.vlgmr.msra.gmra.mxu0 %v284_v20  ;;  %v270_v20 = vld [vmem:[%s516_s4 + $0x8] sm:$0xff] }
  0x22   :  { %182 = vmatmul.bf16.vlgmr.msra.gmra.mxu1 %v288_v21 }
  0x9e   :  { %v169_v22 = vpop.f32.mrf.mxu0 }
  0x9f   :  { %v183_v23 = vpop.f32.mrf.mxu1 }
  0xa0   :  { %v470_v24 = vadd.f32 %v183_v23, %v169_v22 }
  0xa2   :  { %v189_v25 = vsel %vm188_vm0, %v470_v24, 0.0  ;;  %v197_v26 = vmul.f32 %v470_v24, %v470_v24 }
  0xa3   :  { %190 = vadd.xlane.f32.xlu0 %v189_v25 }
  0xa4   :  { %v199_v27 = vsel %vm188_vm0, %v197_v26, 0.0 }
  0xa5   :  { %200 = vadd.xlane.f32.xlu1 %v199_v27 }
  0xa6   :  { %v171_v28 = vpop.f32.mrf.mxu0 }
  0xa7   :  { %v185_v29 = vpop.f32.mrf.mxu1 }
  0xa8   :  { %v477_v30 = vadd.f32 %v185_v29, %v171_v28 }
  0xaa   :  { %v192_v31 = vsel %vm188_vm0, %v477_v30, 0.0  ;;  %v198_v32 = vmul.f32 %v477_v30, %v477_v30 }
  0xab   :  { %193 = vadd.xlane.f32.xlu0 %v192_v31 }
  0xac   :  { %v202_v33 = vsel %vm188_vm0, %v198_v32, 0.0 }
  0xad   :  { %203 = vadd.xlane.f32.xlu1 %v202_v33 }
 0x116   :  { %v191_v35 = vpop.xlane.xlu0 %190 }
 0x117   :  { %v195_v36 = vmul.f32 0.03125, %v191_v35 }
 0x118   :  { %v201_v37 = vpop.xlane.xlu1 %200 }
 0x119   :  { %v207_v38 = vmul.f32 %v195_v36, %v195_v36  ;;  %v205_v39 = vmul.f32 0.03125, %v201_v37 }
 0x11b   :  { %v209_v40 = vsub.f32 %v205_v39, %v207_v38 }
 0x11d   :  { %v211_v41 = vmax.f32 %v209_v40, 0.0 }
 0x11e   :  { %v194_v42 = vpop.xlane.xlu0 %193 }
 0x11f   :  { %v215_v43 = vadd.f32 1e-05, %v211_v41  ;;  %v196_v44 = vmul.f32 0.03125, %v194_v42 }
 0x120   :  { %v204_v45 = vpop.xlane.xlu1 %203 }
 0x121   :  { %375 = vrsqrt.f32 %v215_v43  ;;  %v208_v46 = vmul.f32 %v196_v44, %v196_v44  ;;  %v206_v47 = vmul.f32 0.03125, %v204_v45  ;;  %vm223_vm2 = vweird.f32 %v215_v43 }
 0x123   :  { %v210_v48 = vsub.f32 %v206_v47, %v208_v46 }
 0x125   :  { %v212_v49 = vmax.f32 %v210_v48, 0.0 }
 0x127   :  { %v376_v50 = vpop.eup %375  ;;  %v216_v51 = vadd.f32 1e-05, %v212_v49 }
 0x128   :  { %v218_v52 = vmul.f32 %v376_v50, %v215_v43  ;;  %vm224_vm1 = vweird.f32 %v376_v50 }
 0x129   :  { %377 = vrsqrt.f32 %v216_v51  ;;  %vm225_vm3 = vmor %vm223_vm2, %vm224_vm1  ;;  %vm233_vm5 = vweird.f32 %v216_v51 }
 0x12a   :  { %v219_v53 = vmul.f32 %v376_v50, %v218_v52 }
 0x12c   :  { %v220_v54 = vmul.f32 0.5, %v219_v53 }
 0x12e   :  { %v221_v55 = vsub.f32 1.5, %v220_v54 }
 0x12f   :  { %v378_v56 = vpop.eup %377 }
 0x130   :  { %v228_v57 = vmul.f32 %v378_v56, %v216_v51  ;;  %v222_v59 = vmul.f32 %v376_v50, %v221_v55  ;;  %vm234_vm4 = vweird.f32 %v378_v56 }
 0x131   :  { %vm235_vm6 = vmor %vm233_vm5, %vm234_vm4 }
 0x132   :  { %v229_v60 = vmul.f32 %v378_v56, %v228_v57  ;;  %v226_v61 = vsel %vm225_vm3, %v376_v50, %v222_v59 }
 0x133   :  { %v237_v62 = vmul.f32 %v226_v61, %v213_v58 }
 0x134   :  { %v230_v63 = vmul.f32 0.5, %v229_v60 }
 0x135   :  { %247 = vperm.xlu2 %372, %v237_v62   ;;  %v241_v1 = vmul.f32 %v237_v62, %v195_v36 }
 0x136   :  { %v231_v2 = vsub.f32 1.5, %v230_v63 }
 0x137   :  { %v243_v3 = vsub.f32 %v239_v0, %v241_v1 }
 0x138   :  { %v232_v5 = vmul.f32 %v378_v56, %v231_v2 }
 0x139   :  { %259 = vperm.xlu0 %373, %v243_v3  }
 0x13a   :  { %v236_v6 = vsel %vm235_vm6, %v378_v56, %v232_v5 }
 0x13b   :  { %v238_v7 = vmul.f32 %v236_v6, %v214_v4 }
 0x13d   :  { %252 = vperm.xlu2 %372, %v238_v7   ;;  %v242_v9 = vmul.f32 %v238_v7, %v196_v44 }
 0x13f   :  { %v244_v10 = vsub.f32 %v240_v8, %v242_v9 }
 0x141   :  { %264 = vperm.xlu1 %374, %v244_v10  }
 0x18f   :  { %v248_v11 = vpop.permute.xlu2 %247 }
 0x190   :  { %v255_v12 = vmul.f32 %v248_v11, %v470_v24 }
 0x197   :  { %v253_v17 = vpop.permute.xlu2 %252 }
 0x198   :  { %v256_v19 = vmul.f32 %v253_v17, %v477_v30 }
 0x1ab   :  { %v260_v14 = vpop.permute.xlu0 %259 }
 0x1ac   :  { %v267_v15 = vadd.f32 %v260_v14, %v255_v12 }
 0x1ae   :  { %v271_v16 = vadd.f32 %v269_v13, %v267_v15 }
 0x1b0   :  { %v273_v18 = vmax.f32 %v271_v16, 0.0 }
 0x1b2   :  { %275 = vst.msk [vmem:[%s517_s5] sm:$0xff] %vm188_vm0, %v273_v18 }
 0x1b3   :  { %v265_v21 = vpop.permute.xlu1 %264 }
 0x1b4   :  { %v268_v22 = vadd.f32 %v265_v21, %v256_v19 }
 0x1b6   :  { %v272_v23 = vadd.f32 %v270_v20, %v268_v22 }
 0x1b8   :  { %v274_v24 = vmax.f32 %v272_v23, 0.0 }
 0x1ba   :  { %276 = vst.msk [vmem:[%s517_s5 + $0x8] sm:$0xff] %vm188_vm0, %v274_v24 }

// kernel: resnet_forward.15
= control target key start
LH: loop header
LB: loop body
LE: loop exit
PB: predicated region body
PF: predicated region fallthrough
CT: control target
= control target key end

     0   :  { %vm31_vm0 = vcmask 123904   ;;  %v250_v32 = vmov 16.0   ;;  %v251_v58 = vmov 0   ;;  %v170_v59 = vlaneseq  ;;  %s398_s0 = inlined_call_operand.vmem [shape: f32[16,2,16], index: 0, kind: input, shape index: {}]   ;;  %s399_s2 = inlined_call_operand.vmem [shape: f32[10,1], index: 2, kind: input, shape index: {}]   ;;  %s400_s1 = inlined_call_operand.vmem [shape: bf16[10,16], index: 1, kind: input, shape index: {}]   ;;  %s401_s3 = inlined_call_operand.vmem [shape: f32[10,2], index: 3, kind: output, shape index: {}]  }
   0x1   :  { %v23_v0 = vld [vmem:[%s398_s0 + $0x10] sm:$0x3]  ;;  %v15_v1 = vld [vmem:[%s398_s0] sm:$0x3]  ;;  %v17_v2 = vld [vmem:[%s398_s0 + $0x4] sm:$0x3]  ;;  %248 = vrcp.f32 %v250_v32  ;;  %245 = vset.pattern.permute.xlu1 %v251_v58  ;;  %246 = vset.pattern.permute.xlu2 %v251_v58 }
   0x2   :  { %v56_v3 = vsel %vm31_vm0, %v23_v0, 0.0  ;;  %v32_v4 = vsel %vm31_vm0, %v15_v1, 0.0  ;;  %v38_v5 = vsel %vm31_vm0, %v17_v2, 0.0  ;;  %v24_v6 = vld [vmem:[%s398_s0 + $0x12] sm:$0x3]  ;;  %v121_v52 = vld [vmem:[%s399_s2] sm:$0xff]  ;;  %247 = vset.pattern.permute.xlu0 %v251_v58 }
   0x3   :  { %57 = vadd.xlane.f32.xlu1 %v56_v3  ;;  %33 = vadd.xlane.f32.xlu0 %v32_v4  ;;  %v16_v7 = vld [vmem:[%s398_s0 + $0x2] sm:$0x3]  ;;  %v25_v8 = vld [vmem:[%s398_s0 + $0x14] sm:$0x3]  ;;  %v59_v9 = vsel %vm31_vm0, %v24_v6, 0.0  ;;  %vm188_vm2 = vcmask 1041409  }
   0x4   :  { %39 = vadd.xlane.f32.xlu2 %v38_v5  ;;  %v35_v10 = vsel %vm31_vm0, %v16_v7, 0.0  ;;  %v62_v11 = vsel %vm31_vm0, %v25_v8, 0.0  ;;  %v26_v12 = vld [vmem:[%s398_s0 + $0x16] sm:$0x3]  ;;  %v18_v13 = vld [vmem:[%s398_s0 + $0x6] sm:$0x3] }
   0x5   :  { %v19_v14 = vld [vmem:[%s398_s0 + $0x8] sm:$0x3]  ;;  %v65_v15 = vsel %vm31_vm0, %v26_v12, 0.0  ;;  %v41_v16 = vsel %vm31_vm0, %v18_v13, 0.0  ;;  %v20_v18 = vld [vmem:[%s398_s0 + $0xa] sm:$0x3] }
   0x6   :  { %v44_v17 = vsel %vm31_vm0, %v19_v14, 0.0  ;;  %v27_v19 = vld [vmem:[%s398_s0 + $0x18] sm:$0x3]  ;;  %v28_v20 = vld [vmem:[%s398_s0 + $0x1a] sm:$0x3]  ;;  %v47_v21 = vsel %vm31_vm0, %v20_v18, 0.0 }
   0x7   :  { %v68_v22 = vsel %vm31_vm0, %v27_v19, 0.0  ;;  %v71_v23 = vsel %vm31_vm0, %v28_v20, 0.0  ;;  %v29_v24 = vld [vmem:[%s398_s0 + $0x1c] sm:$0x3]  ;;  %v21_v25 = vld [vmem:[%s398_s0 + $0xc] sm:$0x3]  ;;  %v249_v33 = vpop.eup %248 }
   0x8   :  { %v22_v26 = vld [vmem:[%s398_s0 + $0xe] sm:$0x3]  ;;  %v74_v27 = vsel %vm31_vm0, %v29_v24, 0.0  ;;  %v50_v28 = vsel %vm31_vm0, %v21_v25, 0.0  ;;  %v30_v30 = vld [vmem:[%s398_s0 + $0x1e] sm:$0x3]  ;;  %vm85_vm1 = vweird.f32 %v249_v33 }
   0x9   :  { %v53_v29 = vsel %vm31_vm0, %v22_v26, 0.0  ;;  %v77_v31 = vsel %vm31_vm0, %v30_v30, 0.0  ;;  %v81_v37 = vmul.f32 16.0, %v249_v33  ;;  %v122_v53 = vld [vmem:[%s399_s2 + $0x8] sm:$0x3]  ;;  %v354_v7 = vand.u32 127, %v170_v59 }
   0xa   :  { %vm190_vm3 = vcmask 1042434   ;;  %vm192_vm4 = vcmask 1043459   ;;  %vm194_vm5 = vcmask 1044484   ;;  %vm196_vm6 = vcmask 1045509  }
   0xb   :  { %60 = vadd.xlane.f32.xlu1 %v59_v9  ;;  %36 = vadd.xlane.f32.xlu0 %v35_v10  ;;  %v82_v38 = vsub.f32 1.0, %v81_v37  ;;  %vm198_vm7 = vcmask 1046534   ;;  %vm200_vm8 = vcmask 1047559   ;;  %vm211_vm9 = vcmask 130048  }
   0xc   :  { %63 = vadd.xlane.f32.xlu2 %v62_v11  ;;  %vm229_vm10 = vcmask 15360   ;;  %vm231_vm11 = vcmask 9216  }
   0xd   :  { %v83_v42 = vmul.f32 %v249_v33, %v82_v38 }
   0xf   :  { %v84_v43 = vadd.f32 %v249_v33, %v83_v42 }
  0x11   :  { %v336_v47 = vsel %vm85_vm1, %v249_v33, %v84_v43 }
  0x13   :  { %66 = vadd.xlane.f32.xlu1 %v65_v15  ;;  %42 = vadd.xlane.f32.xlu0 %v41_v16 }
  0x14   :  { %45 = vadd.xlane.f32.xlu2 %v44_v17 }
  0x1b   :  { %48 = vadd.xlane.f32.xlu1 %v47_v21  ;;  %69 = vadd.xlane.f32.xlu0 %v68_v22 }
  0x1c   :  { %72 = vadd.xlane.f32.xlu2 %v71_v23 }
  0x23   :  { %75 = vadd.xlane.f32.xlu1 %v74_v27  ;;  %51 = vadd.xlane.f32.xlu0 %v50_v28 }
  0x24   :  { %54 = vadd.xlane.f32.xlu2 %v53_v29 }
  0x2b   :  { %78 = vadd.xlane.f32.xlu0 %v77_v31 }
  0x3c   :  { %125 = vperm.xlu1 %245, %v121_v52   ;;  %130 = vperm.xlu2 %246, %v122_v53  }
  0x76   :  { %v58_v34 = vpop.xlane.xlu1 %57  ;;  %v34_v35 = vpop.xlane.xlu0 %33 }
  0x77   :  { %v40_v36 = vpop.xlane.xlu2 %39  ;;  %v95_v49 = vmul.f32 %v336_v47, %v58_v34  ;;  %v87_v50 = vmul.f32 %v336_v47, %v34_v35 }
  0x78   :  { %v89_v54 = vmul.f32 %v336_v47, %v40_v36 }
  0x79   :  { %v113_v62 = vpack.c.bf16 %v95_v49, %v95_v49  ;;  %v105_v63 = vpack.c.bf16 %v87_v50, %v87_v50 }
  0x7a   :  { %v107_v3 = vpack.c.bf16 %v89_v54, %v89_v54 }
  0x7b   :  { %v162_v10 = vunpack.c.l.b16 %v113_v62  ;;  %v154_v11 = vunpack.c.l.b16 %v105_v63 }
  0x7c   :  { %v156_v16 = vunpack.c.l.b16 %v107_v3 }
  0x7d   :  { %v180_v27 = vperm.slane %v162_v10, %v354_v7  ;;  %v172_v28 = vperm.slane %v154_v11, %v354_v7  ;;  %v242_v10 = vld [vmem:[%s400_s1] sm:$0x10] }
  0x7e   :  { %v61_v39 = vpop.xlane.xlu1 %60  ;;  %v37_v40 = vpop.xlane.xlu0 %36  ;;  %v174_v35 = vperm.slane %v156_v16, %v354_v7 }
  0x7f   :  { %v64_v41 = vpop.xlane.xlu2 %63  ;;  %v88_v48 = vmul.f32 %v336_v47, %v37_v40  ;;  %v96_v51 = vmul.f32 %v336_v47, %v61_v39 }
  0x80   :  { %v97_v0 = vmul.f32 %v336_v47, %v64_v41 }
  0x81   :  { %v106_v55 = vpack.c.bf16 %v88_v48, %v88_v48  ;;  %v114_v1 = vpack.c.bf16 %v96_v51, %v96_v51 }
  0x82   :  { %v115_v12 = vpack.c.bf16 %v97_v0, %v97_v0 }
  0x83   :  { %v155_v4 = vunpack.c.l.b16 %v106_v55  ;;  %v163_v13 = vunpack.c.l.b16 %v114_v1 }
  0x84   :  { %v164_v29 = vunpack.c.l.b16 %v115_v12 }
  0x85   :  { %v173_v17 = vperm.slane %v155_v4, %v354_v7  ;;  %v181_v31 = vperm.slane %v163_v13, %v354_v7 }
  0x86   :  { %v67_v44 = vpop.xlane.xlu1 %66  ;;  %v43_v45 = vpop.xlane.xlu0 %42  ;;  %v182_v43 = vperm.slane %v164_v29, %v354_v7 }
  0x87   :  { %v46_v46 = vpop.xlane.xlu2 %45  ;;  %v90_v60 = vmul.f32 %v336_v47, %v43_v45  ;;  %v98_v2 = vmul.f32 %v336_v47, %v67_v44  ;;  %v189_v39 = vsel %vm188_vm2, %v173_v17, %v172_v28  ;;  %v202_v45 = vsel %vm188_vm2, %v181_v31, %v180_v27 }
  0x88   :  { %v91_v5 = vmul.f32 %v336_v47, %v46_v46  ;;  %v191_v49 = vsel %vm190_vm3, %v174_v35, %v189_v39  ;;  %v203_v58 = vsel %vm190_vm3, %v182_v43, %v202_v45 }
  0x89   :  { %v108_v8 = vpack.c.bf16 %v90_v60, %v90_v60  ;;  %v116_v14 = vpack.c.bf16 %v98_v2, %v98_v2 }
  0x8a   :  { %v109_v18 = vpack.c.bf16 %v91_v5, %v91_v5 }
  0x8b   :  { %v157_v22 = vunpack.c.l.b16 %v108_v8  ;;  %v165_v32 = vunpack.c.l.b16 %v116_v14 }
  0x8c   :  { %v158_v36 = vunpack.c.l.b16 %v109_v18 }
  0x8d   :  { %v175_v40 = vperm.slane %v157_v22, %v354_v7  ;;  %v183_v46 = vperm.slane %v165_v32, %v354_v7 }
  0x8e   :  { %v49_v56 = vpop.xlane.xlu1 %48  ;;  %v70_v57 = vpop.xlane.xlu0 %69  ;;  %v176_v50 = vperm.slane %v158_v36, %v354_v7 }
  0x8f   :  { %v73_v61 = vpop.xlane.xlu2 %72  ;;  %v99_v6 = vmul.f32 %v336_v47, %v70_v57  ;;  %v92_v9 = vmul.f32 %v336_v47, %v49_v56  ;;  %v193_v54 = vsel %vm192_vm4, %v175_v40, %v191_v49  ;;  %v204_v60 = vsel %vm192_vm4, %v183_v46, %v203_v58 }
  0x90   :  { %v100_v15 = vmul.f32 %v336_v47, %v73_v61  ;;  %v195_v0 = vsel %vm194_vm5, %v176_v50, %v193_v54 }
  0x91   :  { %v117_v19 = vpack.c.bf16 %v99_v6, %v99_v6  ;;  %v110_v23 = vpack.c.bf16 %v92_v9, %v92_v9  ;;  %v239_v9 = vld [vmem:[%s400_s1] sm:$0xf] }
  0x92   :  { %v118_v33 = vpack.c.bf16 %v100_v15, %v100_v15  ;;  %v240_v14 = vor.u32 %v242_v10, %v239_v9 }
  0x93   :  { %v166_v37 = vunpack.c.l.b16 %v117_v19  ;;  %v159_v41 = vunpack.c.l.b16 %v110_v23 }
  0x94   :  { %v167_v48 = vunpack.c.l.b16 %v118_v33 }
  0x95   :  { %v184_v51 = vperm.slane %v166_v37, %v354_v7  ;;  %v177_v55 = vperm.slane %v159_v41, %v354_v7 }
  0x96   :  { %v76_v20 = vpop.xlane.xlu1 %75  ;;  %v52_v21 = vpop.xlane.xlu0 %51  ;;  %v185_v61 = vperm.slane %v167_v48, %v354_v7 }
  0x97   :  { %v101_v24 = vmul.f32 %v336_v47, %v76_v20  ;;  %v93_v25 = vmul.f32 %v336_v47, %v52_v21  ;;  %v55_v26 = vpop.xlane.xlu2 %54  ;;  %v205_v1 = vsel %vm194_vm5, %v184_v51, %v204_v60  ;;  %v197_v3 = vsel %vm196_vm6, %v177_v55, %v195_v0 }
  0x98   :  { %v94_v30 = vmul.f32 %v336_v47, %v55_v26  ;;  %v206_v6 = vsel %vm196_vm6, %v185_v61, %v205_v1 }
  0x99   :  { %v111_v34 = vpack.c.bf16 %v93_v25, %v93_v25  ;;  %v119_v38 = vpack.c.bf16 %v101_v24, %v101_v24 }
  0x9a   :  { %v112_v42 = vpack.c.bf16 %v94_v30, %v94_v30 }
  0x9b   :  { %v160_v44 = vunpack.c.l.b16 %v111_v34  ;;  %v168_v52 = vunpack.c.l.b16 %v119_v38 }
  0x9c   :  { %v161_v56 = vunpack.c.l.b16 %v112_v42 }
  0x9d   :  { %v178_v59 = vperm.slane %v160_v44, %v354_v7  ;;  %v186_v63 = vperm.slane %v168_v52, %v354_v7 }
  0x9e   :  { %v79_v53 = vpop.xlane.xlu0 %78  ;;  %v179_v2 = vperm.slane %v161_v56, %v354_v7 }
  0x9f   :  { %v102_v57 = vmul.f32 %v336_v47, %v79_v53  ;;  %v199_v4 = vsel %vm198_vm7, %v178_v59, %v197_v3  ;;  %v207_v8 = vsel %vm198_vm7, %v186_v63, %v206_v6  ;;  %v131_v17 = vpop.permute.xlu2 %130 }
  0xa0   :  { %v201_v11 = vsel %vm200_vm8, %v179_v2, %v199_v4 }
  0xa1   :  { %v120_v62 = vpack.c.bf16 %v102_v57, %v102_v57 }
  0xa3   :  { %v169_v47 = vunpack.c.l.b16 %v120_v62 }
  0xa5   :  { %v187_v5 = vperm.slane %v169_v47, %v354_v7 }
  0xa7   :  { %v208_v12 = vsel %vm200_vm8, %v187_v5, %v207_v8 }
  0xa8   :  { %v209_v13 = vpack.c.b16 %v208_v12, %v201_v11 }
  0xaa   :  { %222 = vmatpush.bf16.msra.mxu0 %v209_v13 }
  0xad   :  { %241 = vmatmul.msk.bf16.vlgmr.msra.gmra.mxu0 %vm211_vm9, %v240_v14 }
  0xae   :  { %v126_v15 = vpop.permute.xlu1 %125 }
 0x12a   :  { %v224_v16 = vpop.f32.mrf.mxu0 }
 0x12b   :  { %v225_v7 = vadd.f32 %v224_v16, %v126_v15 }
 0x12d   :  { %230 = vst.msk [vmem:[%s401_s3] sm:$0xff] %vm229_vm10, %v225_v7 }
 0x132   :  { %v226_v18 = vpop.f32.mrf.mxu0 }
 0x133   :  { %v227_v19 = vadd.f32 %v226_v18, %v131_v17 }
 0x135   :  { %232 = vst.msk [vmem:[%s401_s3 + $0x8] sm:$0x3] %vm231_vm11, %v227_v19 }

</bundles_post_ra>
